<compile_context>
chip_gen: v7x
topology: tpu7x:2x2x1
jax: 0.10.0
libtpu: 0.0.40
codegen_flags: <defaults>
</compile_context>

<pallas_src>
import functools

import jax
import jax.numpy as jnp
from jax.experimental import pallas as pl
from jax.experimental.pallas import tpu as pltpu

# ---------------------------------------------------------------- constants
B = 2                      # batch
H = W = 16                 # input image spatial size
NUM_KP = 16                # scaled-down num_kp (module default is 500)
HIDDEN = 312               # cotr_args.hidden_dim
ENC_HW = 4                 # enc_out spatial size (Hf = Wf = 4)
CORR_FEAT = NUM_KP * 9     # 144
FEAT = CORR_FEAT + HIDDEN  # 456  (logical regressor input dim)
FEAT_PAD = 512             # padded contraction dim  (4 x 128)
Y_PAD = FEAT_PAD - HIDDEN  # 200  (144 real corr cols + 56 zero cols)
OUT_PAD = 128              # lane-dense output width per branch
N_BRANCH = 2               # grid: 0 = trasl branch, 1 = rot branch
BIAS_W = 1024 + 512 + 256 + OUT_PAD   # 1920 coalesced bias columns per branch


# ---------------------------------------------------------------- helpers
def _mish(x):
  # mish(x) = x * tanh(softplus(x)); numerically-safe softplus, kept in f32.
  sp = jnp.where(x > 20.0, x, jnp.log1p(jnp.exp(jnp.minimum(x, 20.0))))
  return x * jnp.tanh(sp)


# ---------------------------------------------------------------- fused head kernel
def _branch_head_kernel(enc_ref, y_ref, w0_ref, wa_ref, wb_ref, wc_ref,
                        bias_ref, out_ref):
  branch = pl.program_id(0)  # 0 = trasl, 1 = rot

  # AdaptiveAvgPool2d((1,1)) + Flatten: mean over the flattened HW axis.
  pooled = jnp.mean(enc_ref[...], axis=1)                       # [B, 312] f32

  # feature_emb = cat(pooled, corrs_emb) padded to 512 (pad cols are zero).
  feat = jnp.concatenate([pooled, y_ref[...]], axis=-1)         # [B, 512]

  # coalesced per-branch biases: [aggr 1024 | fc0 512 | fc1 256 | fc2 128]
  b_aggr = bias_ref[0, :, 0:1024]
  b_fc0 = bias_ref[0, :, 1024:1536]
  b_fc1 = bias_ref[0, :, 1536:1792]
  b_fc2 = bias_ref[0, :, 1792:1920]

  def linear_bf16(x_f32, w, b):
    # bf16 weights / bf16 MXU inputs, f32 accumulation, f32 bias.
    return jnp.dot(x_f32.astype(w.dtype), w,
                   preferred_element_type=jnp.float32) + b

  # fc0_{tarsl,rot}_aggr  (Dropout(0.5) is identity at inference)
  h = _mish(linear_bf16(feat, w0_ref[0], b_aggr))               # [B, 1024]
  # fc0_trasl / fc0_rot
  h = _mish(linear_bf16(h, wa_ref[0], b_fc0))                   # [B, 512]
  # fc1_trasl / fc1_rot
  h = _mish(linear_bf16(h, wb_ref[0], b_fc1))                   # [B, 256]
  # fc2_trasl / fc2_rot: kept fully f32 (tiny matmul, feeds quaternion norm).
  o = jnp.dot(h, wc_ref[0].astype(jnp.float32),
              preferred_element_type=jnp.float32) + b_fc2       # [B, 128]

  # F.normalize(rot, dim=1) for the rot branch only.  Padded lanes of the
  # fc2 rot weight/bias are exactly zero, so they do not contribute.
  inv = jax.lax.rsqrt(jnp.maximum(jnp.sum(o * o, axis=1, keepdims=True), 1e-24))
  is_rot = (branch == 1).astype(jnp.float32)
  o = o * (is_rot * inv + (1.0 - is_rot))

  out_ref[...] = o[None]                                        # [1, B, 128]


def fused_regressor_head(enc_flat, y_pad, p):
  b = enc_flat.shape[0]
  out = pl.pallas_call(
      _branch_head_kernel,
      out_shape=jax.ShapeDtypeStruct((N_BRANCH, b, OUT_PAD), jnp.float32),
      grid=(N_BRANCH,),
      in_specs=[
          # shared activations (same block index every step -> fetched once)
          pl.BlockSpec(enc_flat.shape, lambda i: (0, 0, 0)),
          pl.BlockSpec(y_pad.shape, lambda i: (0, 0)),
          # branch-stacked bf16 weights, selected by pl.program_id(0)
          pl.BlockSpec((1, FEAT_PAD, 1024), lambda i: (i, 0, 0)),
          pl.BlockSpec((1, 1024, 512), lambda i: (i, 0, 0)),
          pl.BlockSpec((1, 512, 256), lambda i: (i, 0, 0)),
          pl.BlockSpec((1, 256, OUT_PAD), lambda i: (i, 0, 0)),
          # coalesced f32 biases
          pl.BlockSpec((1, 1, BIAS_W), lambda i: (i, 0, 0)),
      ],
      out_specs=pl.BlockSpec((1, b, OUT_PAD), lambda i: (i, 0, 0)),
      compiler_params=pltpu.CompilerParams(
          # v7x: each branch runs on one of the two TensorCores.
          # v6e/v5e: "parallel" is a no-op on 1-TC chips, but the 2-step grid
          # still pipelines branch-1 weight DMA under branch-0 compute.
          dimension_semantics=("parallel",),
          # per-branch weights ~2.4 MiB, double-buffered ~4.8 MiB + small
          # activations; 12 MiB stays under v5e's 16 MiB default scoped VMEM.
          vmem_limit_bytes=12 * 1024 * 1024),
  )(enc_flat, y_pad, p['w0'], p['wa'], p['wb'], p['wc'], p['bias'])
  transl = out[0, :, 0:3]
  rot = out[1, :, 0:4]
  return transl, rot


# ---------------------------------------------------------------- COTR stub (glue)
def _cotr_inner_stub(p, sbs_img, query):
  # TODO(synk): real COTR (ResNet50 + transformer) is external; deterministic stub.
  corrs = jax.nn.sigmoid(
      jnp.einsum('bkc,cd->bkd', query, p['cotr_w']) + p['cotr_b'])        # [B,K,3]
  g = jnp.mean(sbs_img, axis=(2, 3))                                      # [B,3]
  # enc_out emitted directly in channels-last flattened layout [B, Hf*Wf, C]
  # so the pooling kernel consumes it without any transpose/copy.
  enc_flat = jnp.tanh(jnp.einsum('bc,cph->bph', g, p['enc_w']))           # [B,16,312]
  return corrs, enc_flat


def cotr_forward(p, sbs_img, query):
  corrs_raw, enc_flat = _cotr_inner_stub(p, sbs_img, query)
  half = sbs_img.shape[-1] // 2
  img_rev = jnp.concatenate([sbs_img[..., half:], sbs_img[..., :half]], axis=-1)
  # PyTorch aliasing: `query_reverse = corrs_pred; query_reverse[...,0] -= 0.5`
  # mutates corrs_pred too, so the returned corrs_pred carries the -0.5 shift.
  corrs_pred = corrs_raw.at[..., 0].add(-0.5)
  cycle, _ = _cotr_inner_stub(p, img_rev, corrs_pred)
  cycle = cycle.at[..., 0].add(-0.5)
  mask = jnp.linalg.norm(cycle - query, axis=-1) < (10.0 / 640.0)
  return corrs_pred, cycle, mask, enc_flat


# ---------------------------------------------------------------- forward (glue + kernel)
def depth_calib_transformer_forward(p, rgb_input, depth_input, query_input, corr_target):
  b = rgb_input.shape[0]

  # --- side-by-side image + ImageNet normalize (feeds the stubbed COTR only) ---
  rgb_nhwc = jnp.transpose(rgb_input, (0, 2, 3, 1))
  depth_nhwc = jnp.transpose(depth_input, (0, 2, 3, 1))
  if depth_nhwc.shape[-1] == 1:
    depth_nhwc = jnp.tile(depth_nhwc, (1, 1, 1, 3))
  # two_images_side_by_side: concat along width (helper undefined in source).
  sbs = jnp.concatenate([rgb_nhwc, depth_nhwc], axis=2)
  sbs = jnp.transpose(sbs, (0, 3, 1, 2))                                  # NCHW
  mean = jnp.array([0.485, 0.456, 0.406], jnp.float32).reshape(1, 3, 1, 1)
  std = jnp.array([0.229, 0.224, 0.225], jnp.float32).reshape(1, 3, 1, 1)
  sbs = (sbs - mean) / std

  # --- in-place query/target rescaling (functional equivalent) ---
  q = jnp.stack([query_input[:, :, 0] / 2.0,
                 query_input[:, :, 1] / 2.0,
                 query_input[:, :, 2]], axis=-1)
  _ = jnp.stack([corr_target[:, :, 0] / 2.0 + 0.5,
                 corr_target[:, :, 1] / 2.0,
                 corr_target[:, :, 2]], axis=-1)  # mutated-in-place in torch; unused here

  corrs_pred, cycle, mask, enc_flat = cotr_forward(p, sbs, q)

  # --- correspondence embedding (elementwise glue, [B,K,9]) ---
  col0 = q[:, :, 0] * 2.0
  col1 = q[:, :, 1] * 2.0
  col2 = q[:, :, 2]
  col3 = (corrs_pred[:, :, 0] - 0.5) * 2.0
  col4 = corrs_pred[:, :, 1] * 2.0
  col5 = corrs_pred[:, :, 2]
  concat6 = jnp.stack([col0, col1, col2, col3, col4, col5], axis=-1)
  diff3 = jnp.stack([col0 - col3, col1 - col4, col2 - col5], axis=-1)
  corrs_emb = jnp.concatenate([concat6, diff3], axis=-1)                  # [B,K,9]
  y = corrs_emb.reshape(b, -1)                                            # [B,9K]
  y_pad = jnp.pad(y, ((0, 0), (0, Y_PAD - CORR_FEAT)))                    # [B,200]

  # --- fused Pallas head: avg-pool + concat + branch-split regressor MLP ---
  transl, rot = fused_regressor_head(enc_flat, y_pad, p)

  return transl, rot, corrs_pred, cycle, mask


# ---------------------------------------------------------------- params
def init_params(key):
  ks = jax.random.split(key, 24)

  def w(k, shape, scale=0.02, dtype=jnp.bfloat16):
    return (scale * jax.random.normal(k, shape)).astype(dtype)

  # layer-0 aggr weights, padded 456 -> 512 input rows (rows 456:512 zero):
  #   rows 0:312 -> pooled features, 312:456 -> corrs_emb.
  def pad_rows(wm):
    return jnp.zeros((FEAT_PAD, 1024), jnp.bfloat16).at[:FEAT, :].set(wm)

  w0 = jnp.stack([pad_rows(w(ks[0], (FEAT, 1024))),     # branch 0: fc0_tarsl_aggr
                  pad_rows(w(ks[1], (FEAT, 1024)))])    # branch 1: fc0_rot_aggr

  wa = jnp.stack([w(ks[2], (1024, 512)),                # fc0_trasl
                  w(ks[3], (1024, 512))])               # fc0_rot
  wb = jnp.stack([w(ks[4], (512, 256)),                 # fc1_trasl
                  w(ks[5], (512, 256))])                # fc1_rot

  # fc2 weights padded to 128 output lanes (padded cols are exactly zero —
  # load-bearing for the rot L2 norm).
  wt2 = jnp.zeros((256, OUT_PAD), jnp.bfloat16).at[:, :3].set(w(ks[6], (256, 3)))
  wr2 = jnp.zeros((256, OUT_PAD), jnp.bfloat16).at[:, :4].set(w(ks[7], (256, 4)))
  wc = jnp.stack([wt2, wr2])                            # [2, 256, 128]

  # coalesced f32 biases per branch: [aggr 1024 | fc0 512 | fc1 256 | fc2 128]
  def bias_row(k_aggr, k0, k1, k2, n_out):
    b_aggr = w(k_aggr, (1024,), 0.01, jnp.float32)
    b_fc0 = w(k0, (512,), 0.01, jnp.float32)
    b_fc1 = w(k1, (256,), 0.01, jnp.float32)
    b_fc2 = jnp.zeros((OUT_PAD,), jnp.float32).at[:n_out].set(
        w(k2, (n_out,), 0.01, jnp.float32))
    return jnp.concatenate([b_aggr, b_fc0, b_fc1, b_fc2])[None, :]        # [1,1920]

  bias = jnp.stack([bias_row(ks[8], ks[9], ks[10], ks[11], 3),            # trasl
                    bias_row(ks[12], ks[13], ks[14], ks[15], 4)])         # rot

  p = {
      # COTR stub params (f32; outside the Pallas kernel)
      'cotr_w': w(ks[16], (3, 3), 0.5, jnp.float32),
      'cotr_b': w(ks[17], (3,), 0.1, jnp.float32),
      'enc_w': w(ks[18], (3, ENC_HW * ENC_HW, HIDDEN), 0.5, jnp.float32),
      # branch-stacked regressor weights (bf16) + coalesced biases (f32)
      'w0': w0, 'wa': wa, 'wb': wb, 'wc': wc, 'bias': bias,
  }
  return p


# ---------------------------------------------------------------- main
if __name__ == "__main__":
  key = jax.random.PRNGKey(0)
  kp, k1, k2, k3, k4 = jax.random.split(key, 5)

  params = init_params(kp)
  rgb_input = jax.random.uniform(k1, (B, 3, H, W), jnp.float32)
  depth_input = jax.random.uniform(k2, (B, 1, H, W), jnp.float32)
  query_input = jax.random.uniform(k3, (B, NUM_KP, 3), jnp.float32)
  corr_target = jax.random.uniform(k4, (B, NUM_KP, 3), jnp.float32)

  fwd = jax.jit(functools.partial(depth_calib_transformer_forward, params))
  transl, rot, corrs_pred, cycle, mask = fwd(
      rgb_input, depth_input, query_input, corr_target)
  jax.block_until_ready((transl, rot, corrs_pred, cycle, mask))

  assert transl.shape == (B, 3) and rot.shape == (B, 4)
  assert corrs_pred.shape == (B, NUM_KP, 3) and cycle.shape == (B, NUM_KP, 3)
  assert mask.shape == (B, NUM_KP)
  # quaternion should be unit-norm (padded lanes of the rot branch are zero).
  assert bool(jnp.all(jnp.abs(jnp.linalg.norm(rot, axis=1) - 1.0) < 1e-3))
  print("KERNEL_OK")
</pallas_src>

<mosaic_0001>
module attributes {stable_mosaic.version = 11 : i64} {
  func.func @_branch_head_kernel(%arg0: i32, %arg1: memref<2x16x312xf32, #tpu.memory_space<vmem>>, %arg2: memref<2x200xf32, #tpu.memory_space<vmem>>, %arg3: memref<1x512x1024xbf16, #tpu.memory_space<vmem>>, %arg4: memref<1x1024x512xbf16, #tpu.memory_space<vmem>>, %arg5: memref<1x512x256xbf16, #tpu.memory_space<vmem>>, %arg6: memref<1x256x128xbf16, #tpu.memory_space<vmem>>, %arg7: memref<1x1x1920xf32, #tpu.memory_space<vmem>>, %arg8: memref<1x2x128xf32, #tpu.memory_space<vmem>>) attributes {dimension_semantics = [#tpu.dimension_semantics<parallel>], iteration_bounds = array<i64: 2>, scalar_prefetch = 0 : i64, scratch_operands = 0 : i64, tpu.core_type = #tpu.core_type<tc>, window_params = [{pipeline_mode = #tpu.pipeline_mode<synchronous>, transform_indices = @transform_0, window_bounds = array<i64: 2, 16, 312>}, {pipeline_mode = #tpu.pipeline_mode<synchronous>, transform_indices = @transform_1, window_bounds = array<i64: 2, 200>}, {transform_indices = @transform_2, window_bounds = array<i64: 1, 512, 1024>}, {transform_indices = @transform_3, window_bounds = array<i64: 1, 1024, 512>}, {transform_indices = @transform_4, window_bounds = array<i64: 1, 512, 256>}, {transform_indices = @transform_5, window_bounds = array<i64: 1, 256, 128>}, {transform_indices = @transform_6, window_bounds = array<i64: 1, 1, 1920>}, {transform_indices = @transform_7, window_bounds = array<i64: 1, 2, 128>}]} {
    %c0 = arith.constant 0 : index
    %c0_0 = arith.constant 0 : index
    %c0_1 = arith.constant 0 : index
    %0 = vector.load %arg1[%c0, %c0_0, %c0_1] : memref<2x16x312xf32, #tpu.memory_space<vmem>>, vector<2x16x312xf32>
    %cst = arith.constant dense<0.000000e+00> : vector<2x312xf32>
    %1 = vector.multi_reduction <add>, %0, %cst [1] : vector<2x16x312xf32> to vector<2x312xf32>
    %cst_2 = arith.constant 1.600000e+01 : f32
    %2 = vector.broadcast %cst_2 : f32 to vector<2x312xf32>
    %3 = arith.divf %1, %2 : vector<2x312xf32>
    %c0_3 = arith.constant 0 : index
    %c0_4 = arith.constant 0 : index
    %4 = vector.load %arg2[%c0_3, %c0_4] : memref<2x200xf32, #tpu.memory_space<vmem>>, vector<2x200xf32>
    %5 = tpu.concatenate %3, %4 in 1 : vector<2x312xf32>, vector<2x200xf32> -> vector<2x512xf32>
    %c0_5 = arith.constant 0 : index
    %c0_6 = arith.constant 0 : index
    %c0_7 = arith.constant 0 : index
    %6 = vector.load %arg7[%c0_5, %c0_6, %c0_7] : memref<1x1x1920xf32, #tpu.memory_space<vmem>>, vector<1x1x1024xf32>
    %7 = vector.shape_cast %6 : vector<1x1x1024xf32> to vector<1x1024xf32>
    %c0_8 = arith.constant 0 : index
    %c0_9 = arith.constant 0 : index
    %c1024 = arith.constant 1024 : index
    %8 = vector.load %arg7[%c0_8, %c0_9, %c1024] : memref<1x1x1920xf32, #tpu.memory_space<vmem>>, vector<1x1x512xf32>
    %9 = vector.shape_cast %8 : vector<1x1x512xf32> to vector<1x512xf32>
    %c0_10 = arith.constant 0 : index
    %c0_11 = arith.constant 0 : index
    %c1536 = arith.constant 1536 : index
    %10 = vector.load %arg7[%c0_10, %c0_11, %c1536] : memref<1x1x1920xf32, #tpu.memory_space<vmem>>, vector<1x1x256xf32>
    %11 = vector.shape_cast %10 : vector<1x1x256xf32> to vector<1x256xf32>
    %c0_12 = arith.constant 0 : index
    %c0_13 = arith.constant 0 : index
    %c1792 = arith.constant 1792 : index
    %12 = vector.load %arg7[%c0_12, %c0_13, %c1792] : memref<1x1x1920xf32, #tpu.memory_space<vmem>>, vector<1x1x128xf32>
    %13 = vector.shape_cast %12 : vector<1x1x128xf32> to vector<1x128xf32>
    %c0_14 = arith.constant 0 : index
    %c0_15 = arith.constant 0 : index
    %c0_16 = arith.constant 0 : index
    %14 = vector.load %arg3[%c0_14, %c0_15, %c0_16] : memref<1x512x1024xbf16, #tpu.memory_space<vmem>>, vector<1x512x1024xbf16>
    %15 = vector.shape_cast %14 : vector<1x512x1024xbf16> to vector<512x1024xbf16>
    %16 = arith.truncf %5 : vector<2x512xf32> to vector<2x512xbf16>
    %cst_17 = arith.constant dense<0.000000e+00> : vector<2x1024xf32>
    %17 = tpu.matmul %16, %15, %cst_17 {dimension_numbers = #tpu.dot_dimension_numbers<[1], [0], [0], [1], [0, 0, 1, 1], [], []>} : vector<2x512xbf16>, vector<512x1024xbf16>, vector<2x1024xf32> -> vector<2x1024xf32>
    %18 = vector.broadcast %7 : vector<1x1024xf32> to vector<2x1024xf32>
    %19 = arith.addf %17, %18 : vector<2x1024xf32>
    %cst_18 = arith.constant 2.000000e+01 : f32
    %20 = vector.broadcast %cst_18 : f32 to vector<2x1024xf32>
    %21 = arith.cmpf ogt, %19, %20 : vector<2x1024xf32>
    %cst_19 = arith.constant 2.000000e+01 : f32
    %22 = vector.broadcast %cst_19 : f32 to vector<2x1024xf32>
    %23 = arith.minimumf %19, %22 : vector<2x1024xf32>
    %24 = math.exp %23 : vector<2x1024xf32>
    %25 = math.log1p %24 : vector<2x1024xf32>
    %26 = arith.select %21, %19, %25 : vector<2x1024xi1>, vector<2x1024xf32>
    %27 = math.tanh %26 : vector<2x1024xf32>
    %28 = arith.mulf %19, %27 : vector<2x1024xf32>
    %c0_20 = arith.constant 0 : index
    %c0_21 = arith.constant 0 : index
    %c0_22 = arith.constant 0 : index
    %29 = vector.load %arg4[%c0_20, %c0_21, %c0_22] : memref<1x1024x512xbf16, #tpu.memory_space<vmem>>, vector<1x1024x512xbf16>
    %30 = vector.shape_cast %29 : vector<1x1024x512xbf16> to vector<1024x512xbf16>
    %31 = arith.truncf %28 : vector<2x1024xf32> to vector<2x1024xbf16>
    %cst_23 = arith.constant dense<0.000000e+00> : vector<2x512xf32>
    %32 = tpu.matmul %31, %30, %cst_23 {dimension_numbers = #tpu.dot_dimension_numbers<[1], [0], [0], [1], [0, 0, 1, 1], [], []>} : vector<2x1024xbf16>, vector<1024x512xbf16>, vector<2x512xf32> -> vector<2x512xf32>
    %33 = vector.broadcast %9 : vector<1x512xf32> to vector<2x512xf32>
    %34 = arith.addf %32, %33 : vector<2x512xf32>
    %cst_24 = arith.constant 2.000000e+01 : f32
    %35 = vector.broadcast %cst_24 : f32 to vector<2x512xf32>
    %36 = arith.cmpf ogt, %34, %35 : vector<2x512xf32>
    %cst_25 = arith.constant 2.000000e+01 : f32
    %37 = vector.broadcast %cst_25 : f32 to vector<2x512xf32>
    %38 = arith.minimumf %34, %37 : vector<2x512xf32>
    %39 = math.exp %38 : vector<2x512xf32>
    %40 = math.log1p %39 : vector<2x512xf32>
    %41 = arith.select %36, %34, %40 : vector<2x512xi1>, vector<2x512xf32>
    %42 = math.tanh %41 : vector<2x512xf32>
    %43 = arith.mulf %34, %42 : vector<2x512xf32>
    %c0_26 = arith.constant 0 : index
    %c0_27 = arith.constant 0 : index
    %c0_28 = arith.constant 0 : index
    %44 = vector.load %arg5[%c0_26, %c0_27, %c0_28] : memref<1x512x256xbf16, #tpu.memory_space<vmem>>, vector<1x512x256xbf16>
    %45 = vector.shape_cast %44 : vector<1x512x256xbf16> to vector<512x256xbf16>
    %46 = arith.truncf %43 : vector<2x512xf32> to vector<2x512xbf16>
    %cst_29 = arith.constant dense<0.000000e+00> : vector<2x256xf32>
    %47 = tpu.matmul %46, %45, %cst_29 {dimension_numbers = #tpu.dot_dimension_numbers<[1], [0], [0], [1], [0, 0, 1, 1], [], []>} : vector<2x512xbf16>, vector<512x256xbf16>, vector<2x256xf32> -> vector<2x256xf32>
    %48 = vector.broadcast %11 : vector<1x256xf32> to vector<2x256xf32>
    %49 = arith.addf %47, %48 : vector<2x256xf32>
    %cst_30 = arith.constant 2.000000e+01 : f32
    %50 = vector.broadcast %cst_30 : f32 to vector<2x256xf32>
    %51 = arith.cmpf ogt, %49, %50 : vector<2x256xf32>
    %cst_31 = arith.constant 2.000000e+01 : f32
    %52 = vector.broadcast %cst_31 : f32 to vector<2x256xf32>
    %53 = arith.minimumf %49, %52 : vector<2x256xf32>
    %54 = math.exp %53 : vector<2x256xf32>
    %55 = math.log1p %54 : vector<2x256xf32>
    %56 = arith.select %51, %49, %55 : vector<2x256xi1>, vector<2x256xf32>
    %57 = math.tanh %56 : vector<2x256xf32>
    %58 = arith.mulf %49, %57 : vector<2x256xf32>
    %c0_32 = arith.constant 0 : index
    %c0_33 = arith.constant 0 : index
    %c0_34 = arith.constant 0 : index
    %59 = vector.load %arg6[%c0_32, %c0_33, %c0_34] : memref<1x256x128xbf16, #tpu.memory_space<vmem>>, vector<1x256x128xbf16>
    %60 = vector.shape_cast %59 : vector<1x256x128xbf16> to vector<256x128xbf16>
    %61 = arith.extf %60 : vector<256x128xbf16> to vector<256x128xf32>
    %cst_35 = arith.constant dense<0.000000e+00> : vector<2x128xf32>
    %62 = tpu.matmul %58, %61, %cst_35 {dimension_numbers = #tpu.dot_dimension_numbers<[1], [0], [0], [1], [0, 0, 1, 1], [], []>} : vector<2x256xf32>, vector<256x128xf32>, vector<2x128xf32> -> vector<2x128xf32>
    %63 = vector.broadcast %13 : vector<1x128xf32> to vector<2x128xf32>
    %64 = arith.addf %62, %63 : vector<2x128xf32>
    %65 = arith.mulf %64, %64 : vector<2x128xf32>
    %cst_36 = arith.constant dense<0.000000e+00> : vector<2xf32>
    %66 = vector.multi_reduction <add>, %65, %cst_36 [1] : vector<2x128xf32> to vector<2xf32>
    %67 = vector.shape_cast %66 : vector<2xf32> to vector<2x1xf32>
    %cst_37 = arith.constant 1.000000e-24 : f32
    %68 = vector.broadcast %cst_37 : f32 to vector<2x1xf32>
    %69 = arith.maximumf %67, %68 : vector<2x1xf32>
    %70 = math.rsqrt %69 : vector<2x1xf32>
    %c1_i32 = arith.constant 1 : i32
    %71 = arith.cmpi eq, %arg0, %c1_i32 : i32
    %72 = arith.extui %71 : i1 to i32
    %73 = arith.sitofp %72 : i32 to f32
    %74 = vector.broadcast %73 : f32 to vector<2x1xf32>
    %75 = arith.mulf %74, %70 : vector<2x1xf32>
    %cst_38 = arith.constant 1.000000e+00 : f32
    %76 = arith.subf %cst_38, %73 : f32
    %77 = vector.broadcast %76 : f32 to vector<2x1xf32>
    %78 = arith.addf %75, %77 : vector<2x1xf32>
    %79 = vector.broadcast %78 : vector<2x1xf32> to vector<2x128xf32>
    %80 = arith.mulf %64, %79 : vector<2x128xf32>
    %81 = vector.shape_cast %80 : vector<2x128xf32> to vector<1x2x128xf32>
    %c0_39 = arith.constant 0 : index
    %c0_40 = arith.constant 0 : index
    %c0_41 = arith.constant 0 : index
    %82 = vector.load %arg8[%c0_39, %c0_40, %c0_41] : memref<1x2x128xf32, #tpu.memory_space<vmem>>, vector<1x2x128xf32>
    tpu.vector_store %arg8[%c0_39, %c0_40, %c0_41], %81 {strides = array<i32>} : memref<1x2x128xf32, #tpu.memory_space<vmem>>, vector<1x2x128xf32>,
    return
  }
  func.func @transform_0(%arg0: i32) -> (i32, i32, i32) {
    %c0_i32 = arith.constant 0 : i32
    %c0_i32_0 = arith.constant 0 : i32
    %c0_i32_1 = arith.constant 0 : i32
    %c0_i32_2 = arith.constant 0 : i32
    return %c0_i32, %c0_i32_0, %c0_i32_1 : i32, i32, i32
  }
  func.func @transform_1(%arg0: i32) -> (i32, i32) {
    %c0_i32 = arith.constant 0 : i32
    %c0_i32_0 = arith.constant 0 : i32
    %c0_i32_1 = arith.constant 0 : i32
    return %c0_i32, %c0_i32_0 : i32, i32
  }
  func.func @transform_2(%arg0: i32) -> (i32, i32, i32) {
    %c0_i32 = arith.constant 0 : i32
    %c0_i32_0 = arith.constant 0 : i32
    %c0_i32_1 = arith.constant 0 : i32
    return %arg0, %c0_i32, %c0_i32_0 : i32, i32, i32
  }
  func.func @transform_3(%arg0: i32) -> (i32, i32, i32) {
    %c0_i32 = arith.constant 0 : i32
    %c0_i32_0 = arith.constant 0 : i32
    %c0_i32_1 = arith.constant 0 : i32
    return %arg0, %c0_i32, %c0_i32_0 : i32, i32, i32
  }
  func.func @transform_4(%arg0: i32) -> (i32, i32, i32) {
    %c0_i32 = arith.constant 0 : i32
    %c0_i32_0 = arith.constant 0 : i32
    %c0_i32_1 = arith.constant 0 : i32
    return %arg0, %c0_i32, %c0_i32_0 : i32, i32, i32
  }
  func.func @transform_5(%arg0: i32) -> (i32, i32, i32) {
    %c0_i32 = arith.constant 0 : i32
    %c0_i32_0 = arith.constant 0 : i32
    %c0_i32_1 = arith.constant 0 : i32
    return %arg0, %c0_i32, %c0_i32_0 : i32, i32, i32
  }
  func.func @transform_6(%arg0: i32) -> (i32, i32, i32) {
    %c0_i32 = arith.constant 0 : i32
    %c0_i32_0 = arith.constant 0 : i32
    %c0_i32_1 = arith.constant 0 : i32
    return %arg0, %c0_i32, %c0_i32_0 : i32, i32, i32
  }
  func.func @transform_7(%arg0: i32) -> (i32, i32, i32) {
    %c0_i32 = arith.constant 0 : i32
    %c0_i32_0 = arith.constant 0 : i32
    %c0_i32_1 = arith.constant 0 : i32
    return %arg0, %c0_i32, %c0_i32_0 : i32, i32, i32
  }
}

</mosaic_0001>

<bundles_post_ra>
// kernel: depth_calib_transformer_forward.1
= control target key start
LH: loop header
LB: loop body
LE: loop exit
PB: predicated region body
PF: predicated region fallthrough
CT: control target
= control target key end

     0   :  { %s6651_s24 = smov 0   ;;  %s7500_s0 = inlined_call_operand.vmem [shape: f32[2,16,312], index: 0, kind: input, shape index: {}]   ;;  %s7501_s1 = inlined_call_operand.vmem [shape: f32[2,200], index: 1, kind: input, shape index: {}]   ;;  %s7502_s2 = inlined_call_operand.vmem [shape: bf16[2,512,1024], index: 2, kind: input, shape index: {}]   ;;  %s7503_s3 = inlined_call_operand.vmem [shape: bf16[2,1024,512], index: 3, kind: input, shape index: {}]   ;;  %s7504_s4 = inlined_call_operand.vmem [shape: bf16[2,512,256], index: 4, kind: input, shape index: {}]   ;;  %s7505_s5 = inlined_call_operand.vmem [shape: bf16[2,256,128], index: 5, kind: input, shape index: {}]   ;;  %s7506_s6 = inlined_call_operand.vmem [shape: f32[2,1,1920], index: 6, kind: input, shape index: {}]   ;;  %s7507_s7 = inlined_call_operand.vmem [shape: f32[2,2,128], index: 7, kind: output, shape index: {}]  }
   0x1 LB: > { %s6657_s25 = sadd.s32 4294967295, %s6608_s24   ;;  %p5224_p0 = scmp.ge.s32.totalorder %s6608_s24, 1  ;;  %s6608_s24 = sphi %s6651_s24, %s17_s24  }
   0x2   : > { %p276_p1 = scmp.lt.s32.totalorder %s6608_s24, 3 }
   0x4   : > { %p277_p2 = pnand %p5224_p0, %p276_p1 }
   0x5   : > { %v5234_v0 = vld.sshfl [vmem:[%s7501_s1] sm:$0x33 pattern:$0x76325410] (!%p277_p2)  ;;  %p326_p3 = scmp.lt.s32.totalorder (!%p277_p2), %s6657_s25, 1  ;;  %v355_v2 = vld [vmem:[%s7500_s0 + $0x8] sm:$0xff] (!%p277_p2) }
   0x6   : > { %280 = sbr.rel (%p277_p2) target bundleno = 1574 (0x626), region = 48  ;;  %v442_v1 = vcombine.high (!%p277_p2), %v5234_v0, %v5234_v0  ;;  %v358_v3 = vld [vmem:[%s7500_s0 + $0x20] sm:$0xff] (!%p277_p2)  ;;  %v361_v4 = vld [vmem:[%s7500_s0 + $0x38] sm:$0xff] (!%p277_p2)  ;;  %v364_v5 = vld [vmem:[%s7500_s0 + $0x50] sm:$0xff] (!%p277_p2)  ;;  %s6610_s15 = smov (!%p277_p2), 56   ;;  %vm427_vm0 = vcmask (!%p277_p2), 1041409  }
   0x7   : > { %v373_v6 = vadd.f32 (!%p277_p2), %v358_v3, %v355_v2  ;;  %v397_v8 = vadd.f32 (!%p277_p2), %v364_v5, %v361_v4  ;;  %vm380_vm1 = vcmask (!%p277_p2), 457728   ;;  %p5109_p4 = scmp.eq.s32.totalorder (!%p277_p2), %s6657_s25, 1 }
   0x8   : > { %v6030_v7 = vpack.i.bf16 (!%p277_p2), %v442_v1, %v5234_v0 }
   0x9   : > { %v374_v9 = vrot.slane (!%p277_p2), %v373_v6, 4  ;;  %v398_v10 = vrot.slane (!%p277_p2), %v397_v8, 4 }
   0xa   : > { %6031 = vrot.lane.b32.xlu0 (!%p277_p2), %v6030_v7, %s6610_s15 }
   0xb   : > { %v375_v14 = vadd.f32 (!%p277_p2), %v374_v9, %v373_v6  ;;  %v399_v18 = vadd.f32 (!%p277_p2), %v398_v10, %v397_v8 }
   0xd   : > { %s6675_s11 = scalar_select %p326_p3, %s6657_s25, 1  ;;  %v376_v22 = vrot.slane %v375_v14, 2  ;;  %v400_v23 = vrot.slane %v399_v18, 2 }
   0xe   : > { %s5110_s9 = scalar_select %p5109_p4, 1, 0 }
   0xf   : > { %s5814_s14 = sshll.u32 %s6675_s11, 11  ;;  %v377_v26 = vadd.f32 %v376_v22, %v375_v14  ;;  %v401_v27 = vadd.f32 %v400_v23, %v399_v18  ;;  %v357_v14 = vld [vmem:[%s7500_s0 + $0x18] sm:$0xff]  ;;  %s6020_s19 = smul.u32 15, %s6675_s11 }
  0x10   : > { %s6686_s18 = scalar_lea.vmem %s7502_s2, %s5814_s14  ;;  %s6761_s8 = scalar_lea.vmem %s7503_s3, %s5814_s14 }
  0x11   : > { %v455_v11 = vld [vmem:[%s6686_s18] sm:$0xff]  ;;  %v378_v30 = vrot.slane %v377_v26, 1  ;;  %v402_v31 = vrot.slane %v401_v27, 1  ;;  %s5816_s22 = sshll.u32 %s6675_s11, 9  ;;  %s5817_s28 = sshll.u32 %s6675_s11, 7 }
  0x12   : > { %v459_v12 = vld [vmem:[%s6686_s18 + $0x20] sm:$0xff]  ;;  %s7220_s27 = scalar_lea.vmem %s7504_s4, %s5816_s22  ;;  %s5111_s10 = scvt.s32.f32 %s5110_s9 }
  0x13   : > { %v463_v13 = vld [vmem:[%s6686_s18 + $0x40] sm:$0xff]  ;;  %v5236_v15 = vcombine.high %v455_v11, %v459_v12  ;;  %v5235_v16 = vcombine.low %v455_v11, %v459_v12  ;;  %v379_v36 = vadd.f32 %v378_v30, %v377_v26  ;;  %v403_v37 = vadd.f32 %v402_v31, %v401_v27  ;;  %s5233_s13 = sshll.u32 %s6675_s11, 1 }
  0x14   : > { %v467_v17 = vld [vmem:[%s6686_s18 + $0x60] sm:$0xff]  ;;  %s5114_s12 = ssub.f32 1.0, %s5111_s10  ;;  %s353_s16 = scalar_lea.vmem %s7507_s7, %s5233_s13 }
  0x15   : > { %v5244_v19 = vcombine.high %v463_v13, %v467_v17  ;;  %v471_v20 = vld [vmem:[%s6686_s18 + $0x80] sm:$0xff]  ;;  %2036 = vmatprep.subr.bf16.mxu1 %v5236_v15  ;;  %v5243_v24 = vcombine.low %v463_v13, %v467_v17  ;;  %v415_v44 = vmul.f32 0.0625, %v379_v36  ;;  %v418_v45 = vmul.f32 0.0625, %v403_v37  ;;  %v360_v15 = vld [vmem:[%s7500_s0 + $0x30] sm:$0xff] }
  0x16   : > { %v475_v21 = vld [vmem:[%s6686_s18 + $0xa0] sm:$0xff]  ;;  %2037 = vmatpush1.bf16.msra.mxu1 %v5235_v16  ;;  %v363_v16 = vld [vmem:[%s7500_s0 + $0x48] sm:$0xff] }
  0x17   : > { %2038 = vmatprep.subr.bf16.mxu1 %v5244_v19  ;;  %v5252_v25 = vcombine.high %v471_v20, %v475_v21  ;;  %v479_v28 = vld [vmem:[%s6686_s18 + $0xc0] sm:$0xff]  ;;  %v5251_v32 = vcombine.low %v471_v20, %v475_v21  ;;  %v429_v55 = vsel %vm427_vm0, %v418_v45, %v415_v44 }
  0x18   : > { %v483_v29 = vld [vmem:[%s6686_s18 + $0xe0] sm:$0xff]  ;;  %v6707_v56 = vpack.c.bf16 %v429_v55, %v429_v55 }
  0x19   : > { %v5260_v33 = vcombine.high %v479_v28, %v483_v29  ;;  %v583_v34 = vld [vmem:[%s6686_s18 + $0x400] sm:$0xff]  ;;  %v5259_v46 = vcombine.low %v479_v28, %v483_v29 }
  0x1a   : > { %2039 = vmatpush1.bf16.msra.mxu1 %v5243_v24  ;;  %v587_v35 = vld [vmem:[%s6686_s18 + $0x420] sm:$0xff]  ;;  %2068 = vmatprep.mubr.bf16.mxu1 %v6707_v56 }
  0x1b   : > { %2040 = vmatprep.subr.bf16.mxu1 %v5252_v25  ;;  %v487_v38 = vld [vmem:[%s6686_s18 + $0x100] sm:$0xff]  ;;  %v5364_v40 = vcombine.high %v583_v34, %v587_v35  ;;  %v5363_v41 = vcombine.low %v583_v34, %v587_v35  ;;  %v390_v25 = vadd.f32 %v363_v16, %v360_v15 }
  0x1c   : > { %v491_v39 = vld [vmem:[%s6686_s18 + $0x120] sm:$0xff] }
  0x1d   : > { %v591_v42 = vld [vmem:[%s6686_s18 + $0x440] sm:$0xff]  ;;  %2077 = vmatprep.subr.bf16.mxu0 %v5364_v40  ;;  %v5268_v50 = vcombine.high %v487_v38, %v491_v39  ;;  %v5267_v59 = vcombine.low %v487_v38, %v491_v39  ;;  %v391_v35 = vrot.slane %v390_v25, 4 }
  0x1e   : > { %v595_v43 = vld [vmem:[%s6686_s18 + $0x460] sm:$0xff]  ;;  %2041 = vmatpush1.bf16.msra.mxu1 %v5251_v32  ;;  %2078 = vmatpush1.bf16.msra.mxu0 %v5363_v41 }
  0x1f   : > { %v5372_v47 = vcombine.high %v591_v42, %v595_v43  ;;  %v599_v48 = vld [vmem:[%s6686_s18 + $0x480] sm:$0xff]  ;;  %2042 = vmatprep.subr.bf16.mxu1 %v5260_v33  ;;  %v5371_v51 = vcombine.low %v591_v42, %v595_v43  ;;  %v392_v45 = vadd.f32 %v391_v35, %v390_v25  ;;  %v460_v35 = vld [vmem:[%s6686_s18 + $0x28] sm:$0xff] }
  0x20   : > { %v603_v49 = vld [vmem:[%s6686_s18 + $0x4a0] sm:$0xff] }
  0x21   : > { %v495_v52 = vld [vmem:[%s6686_s18 + $0x140] sm:$0xff]  ;;  %2079 = vmatprep.subr.bf16.mxu0 %v5372_v47  ;;  %v5380_v54 = vcombine.high %v599_v48, %v603_v49  ;;  %v5379_v61 = vcombine.low %v599_v48, %v603_v49  ;;  %v393_v55 = vrot.slane %v392_v45, 2 }
  0x22   : > { %v499_v53 = vld [vmem:[%s6686_s18 + $0x160] sm:$0xff]  ;;  %2043 = vmatpush1.bf16.msra.mxu1 %v5259_v46  ;;  %2080 = vmatpush1.bf16.msra.mxu0 %v5371_v51 }
  0x23   : > { %v607_v57 = vld [vmem:[%s6686_s18 + $0x4c0] sm:$0xff]  ;;  %2044 = vmatprep.subr.bf16.mxu1 %v5268_v50  ;;  %v5276_v60 = vcombine.high %v495_v52, %v499_v53  ;;  %2081 = vmatprep.subr.bf16.mxu0 %v5380_v54  ;;  %v5275_v3 = vcombine.low %v495_v52, %v499_v53 }
  0x24   : > { %v611_v58 = vld [vmem:[%s6686_s18 + $0x4e0] sm:$0xff] }
  0x25   : > { %v503_v62 = vld [vmem:[%s6686_s18 + $0x180] sm:$0xff]  ;;  %v5388_v0 = vcombine.high %v607_v57, %v611_v58  ;;  %v5387_v5 = vcombine.low %v607_v57, %v611_v58 }
  0x26   : > { %v507_v63 = vld [vmem:[%s6686_s18 + $0x1a0] sm:$0xff]  ;;  %2045 = vmatpush1.bf16.msra.mxu1 %v5267_v59  ;;  %2082 = vmatpush1.bf16.msra.mxu0 %v5379_v61 }
  0x27   : > { %v615_v1 = vld [vmem:[%s6686_s18 + $0x500] sm:$0xff]  ;;  %2046 = vmatprep.subr.bf16.mxu1 %v5276_v60  ;;  %v5284_v4 = vcombine.high %v503_v62, %v507_v63  ;;  %2083 = vmatprep.subr.bf16.mxu0 %v5388_v0  ;;  %v5283_v11 = vcombine.low %v503_v62, %v507_v63 }
  0x28   : > { %v619_v2 = vld [vmem:[%s6686_s18 + $0x520] sm:$0xff] }
  0x29   : > { %v511_v6 = vld [vmem:[%s6686_s18 + $0x1c0] sm:$0xff]  ;;  %v5396_v8 = vcombine.high %v615_v1, %v619_v2  ;;  %v5395_v17 = vcombine.low %v615_v1, %v619_v2  ;;  %v394_v2 = vadd.f32 %v393_v55, %v392_v45  ;;  %v6785_v55 = vld [vmem:[%s6686_s18 + $0x10] sm:$0xff] }
  0x2a   : > { %v515_v7 = vld [vmem:[%s6686_s18 + $0x1e0] sm:$0xff]  ;;  %2047 = vmatpush1.bf16.msra.mxu1 %v5275_v3  ;;  %2084 = vmatpush1.bf16.msra.mxu0 %v5387_v5 }
  0x2b   : > { %v623_v9 = vld [vmem:[%s6686_s18 + $0x540] sm:$0xff]  ;;  %2048 = vmatprep.subr.bf16.mxu1 %v5284_v4  ;;  %v5292_v13 = vcombine.high %v511_v6, %v515_v7  ;;  %2085 = vmatprep.subr.bf16.mxu0 %v5396_v8  ;;  %v5291_v23 = vcombine.low %v511_v6, %v515_v7 }
  0x2c   : > { %v627_v10 = vld [vmem:[%s6686_s18 + $0x560] sm:$0xff] }
  0x2d   : > { %v354_v12 = vld [vmem:[%s7500_s0] sm:$0xff]  ;;  %v5404_v20 = vcombine.high %v623_v9, %v627_v10  ;;  %v5403_v27 = vcombine.low %v623_v9, %v627_v10 }
  0x2e   : > { %v519_v18 = vld [vmem:[%s6686_s18 + $0x200] sm:$0xff]  ;;  %2049 = vmatpush1.bf16.msra.mxu1 %v5283_v11  ;;  %v366_v24 = vadd.f32 %v357_v14, %v354_v12  ;;  %2086 = vmatpush1.bf16.msra.mxu0 %v5395_v17  ;;  %v395_v12 = vrot.slane %v394_v2, 1 }
  0x2f   : > { %v523_v19 = vld [vmem:[%s6686_s18 + $0x220] sm:$0xff]  ;;  %2050 = vmatprep.subr.bf16.mxu1 %v5292_v13  ;;  %2087 = vmatprep.subr.bf16.mxu0 %v5404_v20 }
  0x30   : > { %v631_v21 = vld [vmem:[%s6686_s18 + $0x580] sm:$0xff]  ;;  %v5300_v26 = vcombine.high %v519_v18, %v523_v19  ;;  %v5299_v33 = vcombine.low %v519_v18, %v523_v19  ;;  %v367_v34 = vrot.slane %v366_v24, 4 }
  0x31   : > { %v635_v22 = vld [vmem:[%s6686_s18 + $0x5a0] sm:$0xff] }
  0x32   : > { %v527_v28 = vld [vmem:[%s6686_s18 + $0x240] sm:$0xff]  ;;  %v5412_v30 = vcombine.high %v631_v21, %v635_v22  ;;  %2051 = vmatpush1.bf16.msra.mxu1 %v5291_v23  ;;  %2088 = vmatpush1.bf16.msra.mxu0 %v5403_v27  ;;  %v5411_v37 = vcombine.low %v631_v21, %v635_v22  ;;  %v368_v44 = vadd.f32 %v367_v34, %v366_v24  ;;  %v456_v34 = vld [vmem:[%s6686_s18 + $0x8] sm:$0xff] }
  0x33   : > { %v531_v29 = vld [vmem:[%s6686_s18 + $0x260] sm:$0xff]  ;;  %2052 = vmatprep.subr.bf16.mxu1 %v5300_v26  ;;  %v396_v22 = vadd.f32 %v395_v12, %v394_v2  ;;  %v356_v2 = vld [vmem:[%s7500_s0 + $0x10] sm:$0xff] }
  0x34   : > { %v639_v31 = vld [vmem:[%s6686_s18 + $0x5c0] sm:$0xff]  ;;  %v5308_v36 = vcombine.high %v527_v28, %v531_v29  ;;  %2089 = vmatprep.subr.bf16.mxu0 %v5412_v30  ;;  %v5307_v43 = vcombine.low %v527_v28, %v531_v29  ;;  %v369_v54 = vrot.slane %v368_v44, 2  ;;  %v381_v12 = vsel %vm380_vm1, %v356_v2, 0.0 }
  0x35   : > { %v643_v32 = vld [vmem:[%s6686_s18 + $0x5e0] sm:$0xff] }
  0x36   : > { %v535_v38 = vld [vmem:[%s6686_s18 + $0x280] sm:$0xff]  ;;  %v5420_v40 = vcombine.high %v639_v31, %v643_v32  ;;  %2053 = vmatpush1.bf16.msra.mxu1 %v5299_v33  ;;  %2090 = vmatpush1.bf16.msra.mxu0 %v5411_v37  ;;  %v5419_v47 = vcombine.low %v639_v31, %v643_v32  ;;  %v370_v1 = vadd.f32 %v369_v54, %v368_v44  ;;  %v417_v32 = vmul.f32 0.0625, %v396_v22  ;;  %v468_v44 = vld [vmem:[%s6686_s18 + $0x68] sm:$0xff] }
  0x37   : > { %v539_v39 = vld [vmem:[%s6686_s18 + $0x2a0] sm:$0xff]  ;;  %2054 = vmatprep.subr.bf16.mxu1 %v5308_v36  ;;  %v508_v22 = vld [vmem:[%s6686_s18 + $0x1a8] sm:$0xff] }
  0x38   : > { %v647_v41 = vld [vmem:[%s6686_s18 + $0x600] sm:$0xff]  ;;  %v5316_v46 = vcombine.high %v535_v38, %v539_v39  ;;  %2091 = vmatprep.subr.bf16.mxu0 %v5420_v40  ;;  %v5315_v53 = vcombine.low %v535_v38, %v539_v39  ;;  %v371_v11 = vrot.slane %v370_v1, 1 }
  0x39   : > { %v651_v42 = vld [vmem:[%s6686_s18 + $0x620] sm:$0xff] }
  0x3a   : > { %v543_v48 = vld [vmem:[%s6686_s18 + $0x2c0] sm:$0xff]  ;;  %v5428_v50 = vcombine.high %v647_v41, %v651_v42  ;;  %2055 = vmatpush1.bf16.msra.mxu1 %v5307_v43  ;;  %2092 = vmatpush1.bf16.msra.mxu0 %v5419_v47  ;;  %v5427_v58 = vcombine.low %v647_v41, %v651_v42  ;;  %v372_v21 = vadd.f32 %v371_v11, %v370_v1  ;;  %v464_v43 = vld [vmem:[%s6686_s18 + $0x48] sm:$0xff] }
  0x3b   : > { %v547_v49 = vld [vmem:[%s6686_s18 + $0x2e0] sm:$0xff]  ;;  %2056 = vmatprep.subr.bf16.mxu1 %v5316_v46  ;;  %v5238_v42 = vcombine.high %v456_v34, %v460_v35  ;;  %v496_v11 = vld [vmem:[%s6686_s18 + $0x148] sm:$0xff] }
  0x3c   : > { %v655_v51 = vld [vmem:[%s6686_s18 + $0x640] sm:$0xff]  ;;  %v5324_v57 = vcombine.high %v543_v48, %v547_v49  ;;  %2093 = vmatprep.subr.bf16.mxu0 %v5428_v50  ;;  %v5323_v0 = vcombine.low %v543_v48, %v547_v49  ;;  %v414_v31 = vmul.f32 0.0625, %v372_v21  ;;  %v5237_v50 = vcombine.low %v456_v34, %v460_v35  ;;  %v524_v34 = vld [vmem:[%s6686_s18 + $0x228] sm:$0xff] }
  0x3d   : > { %v659_v52 = vld [vmem:[%s6686_s18 + $0x660] sm:$0xff] }
  0x3e   : > { %v551_v59 = vld [vmem:[%s6686_s18 + $0x300] sm:$0xff]  ;;  %v5436_v61 = vcombine.high %v655_v51, %v659_v52  ;;  %2057 = vmatpush1.bf16.msra.mxu1 %v5315_v53  ;;  %2094 = vmatpush1.bf16.msra.mxu0 %v5427_v58  ;;  %v5435_v4 = vcombine.low %v655_v51, %v659_v52  ;;  %v428_v41 = vsel %vm427_vm0, %v417_v32, %v414_v31  ;;  %v472_v52 = vld [vmem:[%s6686_s18 + $0x88] sm:$0xff]  ;;  %v6788_v58 = vld [vmem:[%s6686_s18 + $0x30] sm:$0xff] }
  0x3f   : > { %v555_v60 = vld [vmem:[%s6686_s18 + $0x320] sm:$0xff]  ;;  %2058 = vmatprep.subr.bf16.mxu1 %v5324_v57  ;;  %v6780_v49 = vpack.c.bf16 %v428_v41, %v428_v41  ;;  %v5246_v51 = vcombine.high %v464_v43, %v468_v44  ;;  %v476_v53 = vld [vmem:[%s6686_s18 + $0xa8] sm:$0xff] }
  0x40   : > { %v663_v62 = vld [vmem:[%s6686_s18 + $0x680] sm:$0xff]  ;;  %v5332_v3 = vcombine.high %v551_v59, %v555_v60  ;;  %2095 = vmatprep.subr.bf16.mxu0 %v5436_v61  ;;  %v5331_v10 = vcombine.low %v551_v59, %v555_v60  ;;  %v5245_v59 = vcombine.low %v464_v43, %v468_v44  ;;  %v5254_v60 = vcombine.high %v472_v52, %v476_v53  ;;  %v480_v61 = vld [vmem:[%s6686_s18 + $0xc8] sm:$0xff] }
  0x41   : > { %v667_v63 = vld [vmem:[%s6686_s18 + $0x6a0] sm:$0xff]  ;;  %v5253_v1 = vcombine.low %v472_v52, %v476_v53  ;;  %v520_v31 = vld [vmem:[%s6686_s18 + $0x208] sm:$0xff] }
  0x42   : > { %v559_v5 = vld [vmem:[%s6686_s18 + $0x340] sm:$0xff]  ;;  %v5444_v7 = vcombine.high %v663_v62, %v667_v63  ;;  %2059 = vmatpush1.bf16.msra.mxu1 %v5323_v0  ;;  %2096 = vmatpush1.bf16.msra.mxu0 %v5435_v4  ;;  %v5443_v14 = vcombine.low %v663_v62, %v667_v63  ;;  %v484_v63 = vld [vmem:[%s6686_s18 + $0xe8] sm:$0xff]  ;;  %v5240_v0 = vcombine.high %v6785_v55, %v6788_v58 }
  0x43   : > { %v563_v6 = vld [vmem:[%s6686_s18 + $0x360] sm:$0xff]  ;;  %2060 = vmatprep.subr.bf16.mxu1 %v5332_v3  ;;  %v5262_v3 = vcombine.high %v480_v61, %v484_v63  ;;  %v488_v4 = vld [vmem:[%s6686_s18 + $0x108] sm:$0xff]  ;;  %v5301_v41 = vcombine.low %v520_v31, %v524_v34 }
  0x44   : > { %v671_v8 = vld [vmem:[%s6686_s18 + $0x6c0] sm:$0xff]  ;;  %v5340_v13 = vcombine.high %v559_v5, %v563_v6  ;;  %2097 = vmatprep.subr.bf16.mxu0 %v5444_v7  ;;  %v5339_v20 = vcombine.low %v559_v5, %v563_v6  ;;  %v359_v5 = vld [vmem:[%s7500_s0 + $0x28] sm:$0xff]  ;;  %v365_v7 = vld [vmem:[%s7500_s0 + $0x58] sm:$0xff] }
  0x45   : > { %v675_v9 = vld [vmem:[%s6686_s18 + $0x6e0] sm:$0xff]  ;;  %v536_v43 = vld [vmem:[%s6686_s18 + $0x288] sm:$0xff] }
  0x46   : > { %v567_v15 = vld [vmem:[%s6686_s18 + $0x380] sm:$0xff]  ;;  %v5452_v17 = vcombine.high %v671_v8, %v675_v9  ;;  %2061 = vmatpush1.bf16.msra.mxu1 %v5331_v10  ;;  %2098 = vmatpush1.bf16.msra.mxu0 %v5443_v14  ;;  %v5451_v26 = vcombine.low %v671_v8, %v675_v9  ;;  %v492_v8 = vld [vmem:[%s6686_s18 + $0x128] sm:$0xff]  ;;  %v5261_v9 = vcombine.low %v480_v61, %v484_v63  ;;  %v382_v14 = vsel %vm380_vm1, %v359_v5, 0.0 }
  0x47   : > { %v571_v16 = vld [vmem:[%s6686_s18 + $0x3a0] sm:$0xff]  ;;  %2062 = vmatprep.subr.bf16.mxu1 %v5340_v13  ;;  %v5270_v10 = vcombine.high %v488_v4, %v492_v8  ;;  %v500_v13 = vld [vmem:[%s6686_s18 + $0x168] sm:$0xff] }
  0x48   : > { %v679_v18 = vld [vmem:[%s6686_s18 + $0x700] sm:$0xff]  ;;  %v5348_v23 = vcombine.high %v567_v15, %v571_v16  ;;  %2099 = vmatprep.subr.bf16.mxu0 %v5452_v17  ;;  %v5347_v30 = vcombine.low %v567_v15, %v571_v16  ;;  %v405_v16 = vsel %vm380_vm1, %v365_v7, 0.0  ;;  %v5269_v17 = vcombine.low %v488_v4, %v492_v8  ;;  %v548_v53 = vld [vmem:[%s6686_s18 + $0x2e8] sm:$0xff] }
  0x49   : > { %v683_v19 = vld [vmem:[%s6686_s18 + $0x720] sm:$0xff]  ;;  %v552_v61 = vld [vmem:[%s6686_s18 + $0x308] sm:$0xff] }
  0x4a   : > { %v575_v24 = vld [vmem:[%s6686_s18 + $0x3c0] sm:$0xff]  ;;  %v5460_v28 = vcombine.high %v679_v18, %v683_v19  ;;  %2063 = vmatpush1.bf16.msra.mxu1 %v5339_v20  ;;  %2100 = vmatpush1.bf16.msra.mxu0 %v5451_v26  ;;  %v5459_v36 = vcombine.low %v679_v18, %v683_v19  ;;  %v5278_v18 = vcombine.high %v496_v11, %v500_v13  ;;  %v504_v19 = vld [vmem:[%s6686_s18 + $0x188] sm:$0xff] }
  0x4b   : > { %v579_v25 = vld [vmem:[%s6686_s18 + $0x3e0] sm:$0xff]  ;;  %2064 = vmatprep.subr.bf16.mxu1 %v5348_v23  ;;  %v383_v20 = vadd.f32 %v382_v14, %v381_v12  ;;  %v5277_v23 = vcombine.low %v496_v11, %v500_v13  ;;  %v564_v4 = vld [vmem:[%s6686_s18 + $0x368] sm:$0xff]  ;;  %v465_v11 = vld [vmem:[%s6686_s18 + $0x50] sm:$0xff] }
  0x4c   : > { %v687_v27 = vld [vmem:[%s6686_s18 + $0x740] sm:$0xff]  ;;  %v5356_v33 = vcombine.high %v575_v24, %v579_v25  ;;  %2101 = vmatprep.subr.bf16.mxu0 %v5460_v28  ;;  %v5355_v40 = vcombine.low %v575_v24, %v579_v25  ;;  %v5286_v24 = vcombine.high %v504_v19, %v508_v22  ;;  %v512_v25 = vld [vmem:[%s6686_s18 + $0x1c8] sm:$0xff]  ;;  %v469_v14 = vld [vmem:[%s6686_s18 + $0x70] sm:$0xff] }
  0x4d   : > { %v691_v29 = vld [vmem:[%s6686_s18 + $0x760] sm:$0xff]  ;;  %v384_v26 = vrot.slane %v383_v20, 4  ;;  %v516_v28 = vld [vmem:[%s6686_s18 + $0x1e8] sm:$0xff] }
  0x4e   : > { %v695_v37 = vld [vmem:[%s6686_s18 + $0x780] sm:$0xff]  ;;  %v5468_v38 = vcombine.high %v687_v27, %v691_v29  ;;  %2065 = vmatpush1.bf16.msra.mxu1 %v5347_v30  ;;  %2102 = vmatpush1.bf16.msra.mxu0 %v5459_v36  ;;  %v5467_v45 = vcombine.low %v687_v27, %v691_v29  ;;  %v5285_v29 = vcombine.low %v504_v19, %v508_v22  ;;  %v580_v19 = vld [vmem:[%s6686_s18 + $0x3e8] sm:$0xff] }
  0x4f   : > { %v699_v39 = vld [vmem:[%s6686_s18 + $0x7a0] sm:$0xff]  ;;  %2066 = vmatprep.subr.bf16.mxu1 %v5356_v33  ;;  %v5294_v30 = vcombine.high %v512_v25, %v516_v28  ;;  %v385_v32 = vadd.f32 %v384_v26, %v383_v20  ;;  %v5293_v35 = vcombine.low %v512_v25, %v516_v28  ;;  %v5302_v36 = vcombine.high %v520_v31, %v524_v34  ;;  %v477_v25 = vld [vmem:[%s6686_s18 + $0xb0] sm:$0xff]  ;;  %v584_v28 = vld [vmem:[%s6686_s18 + $0x408] sm:$0xff] }
  0x50   : > { %v703_v46 = vld [vmem:[%s6686_s18 + $0x7c0] sm:$0xff]  ;;  %2103 = vmatprep.subr.bf16.mxu0 %v5468_v38  ;;  %v5476_v47 = vcombine.high %v695_v37, %v699_v39  ;;  %v5475_v54 = vcombine.low %v695_v37, %v699_v39  ;;  %v528_v37 = vld [vmem:[%s6686_s18 + $0x248] sm:$0xff]  ;;  %v5239_v22 = vcombine.low %v6785_v55, %v6788_v58  ;;  %v5248_v26 = vcombine.high %v465_v11, %v469_v14  ;;  %v481_v58 = vld [vmem:[%s6686_s18 + $0xd0] sm:$0xff] }
  0x51   : > { %v707_v48 = vld [vmem:[%s6686_s18 + $0x7e0] sm:$0xff]  ;;  %v386_v38 = vrot.slane %v385_v32, 2  ;;  %v485_v31 = vld [vmem:[%s6686_s18 + $0xf0] sm:$0xff]  ;;  %v592_v34 = vld [vmem:[%s6686_s18 + $0x448] sm:$0xff] }
  0x52   : > { %2067 = vmatpush1.bf16.msra.mxu1 %v5355_v40  ;;  %2104 = vmatpush1.bf16.msra.mxu0 %v5467_v45  ;;  %v5484_v57 = vcombine.high %v703_v46, %v707_v48  ;;  %v5483_v62 = vcombine.low %v703_v46, %v707_v48  ;;  %v362_v6 = vld [vmem:[%s7500_s0 + $0x40] sm:$0xff]  ;;  %v532_v40 = vld [vmem:[%s6686_s18 + $0x268] sm:$0xff] }
  0x53   : > { %2118 = vmatprep.subr.bf16.mxu1 %v5238_v42  ;;  %2105 = vmatprep.subr.bf16.mxu0 %v5476_v47  ;;  %v404_v15 = vsel %vm380_vm1, %v362_v6, 0.0  ;;  %v5310_v42 = vcombine.high %v528_v37, %v532_v40  ;;  %v387_v44 = vadd.f32 %v386_v38, %v385_v32  ;;  %v540_v46 = vld [vmem:[%s6686_s18 + $0x2a8] sm:$0xff]  ;;  %v5309_v47 = vcombine.low %v528_v37, %v532_v40  ;;  %v489_v38 = vld [vmem:[%s6686_s18 + $0x110] sm:$0xff] }
  0x54   : > { %v406_v21 = vadd.f32 %v405_v16, %v404_v15  ;;  %v5318_v48 = vcombine.high %v536_v43, %v540_v46  ;;  %v5264_v40 = vcombine.high %v481_v58, %v485_v31 }
  0x55   : > { %2069 = vmatmul.mubr.bf16.vlgmr.msra.gmra.mrb[0].mxu1 %v6780_v49 }
  0x56   : > { %2119 = vmatpush1.bf16.msra.mxu1 %v5237_v50  ;;  %2150 = vmatprep.mubr.bf16.mxu1 %v6707_v56  ;;  %v407_v27 = vrot.slane %v406_v21, 4  ;;  %v544_v50 = vld [vmem:[%s6686_s18 + $0x2c8] sm:$0xff] }
  0x57   : > { %2120 = vmatprep.subr.bf16.mxu1 %v5246_v51  ;;  %2106 = vmatpush1.bf16.msra.mxu0 %v5475_v54  ;;  %v388_v51 = vrot.slane %v387_v44, 1  ;;  %v5317_v54 = vcombine.low %v536_v43, %v540_v46  ;;  %v5325_v63 = vcombine.low %v544_v50, %v548_v53  ;;  %v604_v43 = vld [vmem:[%s6686_s18 + $0x4a8] sm:$0xff]  ;;  %v497_v46 = vld [vmem:[%s6686_s18 + $0x150] sm:$0xff] }
  0x58   : > { %2107 = vmatprep.subr.bf16.mxu0 %v5484_v57  ;;  %v408_v33 = vadd.f32 %v407_v27, %v406_v21  ;;  %v5326_v57 = vcombine.high %v544_v50, %v548_v53 }
  0x5a   : > { %2121 = vmatpush1.bf16.msra.mxu1 %v5245_v59  ;;  %v409_v39 = vrot.slane %v408_v33, 2  ;;  %v389_v59 = vadd.f32 %v388_v51, %v387_v44  ;;  %v5263_v44 = vcombine.low %v481_v58, %v485_v31  ;;  %v608_v51 = vld [vmem:[%s6686_s18 + $0x4c8] sm:$0xff] }
  0x5b   : > { %2122 = vmatprep.subr.bf16.mxu1 %v5254_v60  ;;  %2108 = vmatpush1.bf16.msra.mxu0 %v5483_v62  ;;  %v556_v62 = vld [vmem:[%s6686_s18 + $0x328] sm:$0xff] }
  0x5c   : > { %2200 = vmatprep.subr.bf16.mxu0 %v5240_v0  ;;  %v410_v45 = vadd.f32 %v409_v39, %v408_v33  ;;  %v416_v0 = vmul.f32 0.0625, %v389_v59  ;;  %v5334_v2 = vcombine.high %v552_v61, %v556_v62  ;;  %v5333_v5 = vcombine.low %v552_v61, %v556_v62  ;;  %v493_v39 = vld [vmem:[%s6686_s18 + $0x130] sm:$0xff]  ;;  %v616_v62 = vld [vmem:[%s6686_s18 + $0x508] sm:$0xff] }
  0x5d   : > { %v5271_v53 = vcombine.low %v489_v38, %v493_v39  ;;  %v509_v59 = vld [vmem:[%s6686_s18 + $0x1b0] sm:$0xff]  ;;  %v648_v58 = vld [vmem:[%s6686_s18 + $0x608] sm:$0xff] }
  0x5e   : > { %2123 = vmatpush1.bf16.msra.mxu1 %v5253_v1  ;;  %v411_v52 = vrot.slane %v410_v45, 1  ;;  %v652_v31 = vld [vmem:[%s6686_s18 + $0x628] sm:$0xff] }
  0x5f   : > { %2124 = vmatprep.subr.bf16.mxu1 %v5262_v3  ;;  %v560_v3 = vld [vmem:[%s6686_s18 + $0x348] sm:$0xff] }
  0x60   : > { %v412_v60 = vadd.f32 %v411_v52, %v410_v45  ;;  %v5342_v8 = vcombine.high %v560_v3, %v564_v4  ;;  %v612_v52 = vld [vmem:[%s6686_s18 + $0x4e8] sm:$0xff] }
  0x62   : > { %2125 = vmatpush1.bf16.msra.mxu1 %v5261_v9  ;;  %v419_v1 = vmul.f32 0.0625, %v412_v60  ;;  %v568_v9 = vld [vmem:[%s6686_s18 + $0x388] sm:$0xff] }
  0x63   : > { %2126 = vmatprep.subr.bf16.mxu1 %v5270_v10  ;;  %v572_v10 = vld [vmem:[%s6686_s18 + $0x3a8] sm:$0xff] }
  0x64   : > { %v430_v7 = vsel %vm427_vm0, %v419_v1, %v416_v0  ;;  %v5349_v27 = vcombine.low %v568_v9, %v572_v10  ;;  %v5390_v1 = vcombine.high %v608_v51, %v612_v52 }
  0x66   : > { %2127 = vmatpush1.bf16.msra.mxu1 %v5269_v17  ;;  %v5341_v17 = vcombine.low %v560_v3, %v564_v4  ;;  %v517_v3 = vld [vmem:[%s6686_s18 + $0x1f0] sm:$0xff] }
  0x67   : > { %2128 = vmatprep.subr.bf16.mxu1 %v5278_v18  ;;  %v576_v18 = vld [vmem:[%s6686_s18 + $0x3c8] sm:$0xff] }
  0x68   : > { %v5358_v55 = vcombine.high %v576_v18, %v580_v19  ;;  %v5357_v33 = vcombine.low %v576_v18, %v580_v19  ;;  %v529_v18 = vld [vmem:[%s6686_s18 + $0x250] sm:$0xff] }
  0x69   : > { %v533_v19 = vld [vmem:[%s6686_s18 + $0x270] sm:$0xff] }
  0x6a   : > { %2129 = vmatpush1.bf16.msra.mxu1 %v5277_v23  ;;  %v5350_v23 = vcombine.high %v568_v9, %v572_v10  ;;  %v521_v10 = vld [vmem:[%s6686_s18 + $0x210] sm:$0xff] }
  0x6b   : > { %2130 = vmatprep.subr.bf16.mxu1 %v5286_v24  ;;  %v473_v24 = vld [vmem:[%s6686_s18 + $0x90] sm:$0xff] }
  0x6c   : > { %v5256_v32 = vcombine.high %v473_v24, %v477_v25 }
  0x6e   : > { %2131 = vmatpush1.bf16.msra.mxu1 %v5285_v29  ;;  %v588_v29 = vld [vmem:[%s6686_s18 + $0x428] sm:$0xff] }
  0x6f   : > { %2132 = vmatprep.subr.bf16.mxu1 %v5294_v30  ;;  %v5247_v30 = vcombine.low %v465_v11, %v469_v14  ;;  %v5366_v37 = vcombine.high %v584_v28, %v588_v29  ;;  %v525_v11 = vld [vmem:[%s6686_s18 + $0x230] sm:$0xff]  ;;  %v632_v14 = vld [vmem:[%s6686_s18 + $0x588] sm:$0xff] }
  0x72   : > { %2133 = vmatpush1.bf16.msra.mxu1 %v5293_v35  ;;  %v596_v35 = vld [vmem:[%s6686_s18 + $0x468] sm:$0xff] }
  0x73   : > { %2134 = vmatprep.subr.bf16.mxu1 %v5302_v36  ;;  %v5255_v36 = vcombine.low %v473_v24, %v477_v25  ;;  %v5374_v45 = vcombine.high %v592_v34, %v596_v35  ;;  %v5373_v50 = vcombine.low %v592_v34, %v596_v35  ;;  %v640_v24 = vld [vmem:[%s6686_s18 + $0x5c8] sm:$0xff]  ;;  %v5303_v25 = vcombine.low %v521_v10, %v525_v11  ;;  %v545_v34 = vld [vmem:[%s6686_s18 + $0x2d0] sm:$0xff] }
  0x74   : > { %v549_v35 = vld [vmem:[%s6686_s18 + $0x2f0] sm:$0xff] }
  0x76   : > { %2135 = vmatpush1.bf16.msra.mxu1 %v5301_v41  ;;  %v5365_v41 = vcombine.low %v584_v28, %v588_v29  ;;  %v537_v28 = vld [vmem:[%s6686_s18 + $0x290] sm:$0xff]  ;;  %v5312_v29 = vcombine.high %v529_v18, %v533_v19 }
  0x77   : > { %2136 = vmatprep.subr.bf16.mxu1 %v5310_v42  ;;  %v600_v42 = vld [vmem:[%s6686_s18 + $0x488] sm:$0xff] }
  0x78   : > { %v5381_v61 = vcombine.low %v600_v42, %v604_v43 }
  0x7a   : > { %2137 = vmatpush1.bf16.msra.mxu1 %v5309_v47  ;;  %v501_v47 = vld [vmem:[%s6686_s18 + $0x170] sm:$0xff] }
  0x7b   : > { %2138 = vmatprep.subr.bf16.mxu1 %v5318_v48  ;;  %v5272_v48 = vcombine.high %v489_v38, %v493_v39  ;;  %v5280_v60 = vcombine.high %v497_v46, %v501_v47  ;;  %v5279_v0 = vcombine.low %v497_v46, %v501_v47  ;;  %v656_v38 = vld [vmem:[%s6686_s18 + $0x648] sm:$0xff] }
  0x7c   : > { %v6032_v6 = vpop.permute.xlu0 %6031  ;;  %v660_v39 = vld [vmem:[%s6686_s18 + $0x668] sm:$0xff] }
  0x7d   : > { %v6034_v12 = vunpack.i.h.bf16 %v6032_v6  ;;  %v6033_v13 = vunpack.i.l.bf16 %v6032_v6  ;;  %v624_v6 = vld [vmem:[%s6686_s18 + $0x548] sm:$0xff] }
  0x7e   : > { %2139 = vmatpush1.bf16.msra.mxu1 %v5317_v54  ;;  %v5382_v54 = vcombine.high %v600_v42, %v604_v43  ;;  %v553_v42 = vld [vmem:[%s6686_s18 + $0x310] sm:$0xff]  ;;  %v664_v46 = vld [vmem:[%s6686_s18 + $0x688] sm:$0xff] }
  0x7f   : > { %2140 = vmatprep.subr.bf16.mxu1 %v5326_v57  ;;  %v447_v15 = vsel %vm380_vm1, %v6033_v13, %v6034_v12  ;;  %v450_v16 = vsel %vm380_vm1, %v430_v7, %v6033_v13  ;;  %v505_v57 = vld [vmem:[%s6686_s18 + $0x190] sm:$0xff]  ;;  %v628_v7 = vld [vmem:[%s6686_s18 + $0x568] sm:$0xff] }
  0x80   : > { %v6841_v20 = vpack.c.bf16 %v450_v16, %v450_v16  ;;  %v6843_v21 = vpack.c.bf16 %v447_v15, %v447_v15  ;;  %v5288_v4 = vcombine.high %v505_v57, %v509_v59  ;;  %v636_v15 = vld [vmem:[%s6686_s18 + $0x5a8] sm:$0xff]  ;;  %v557_v43 = vld [vmem:[%s6686_s18 + $0x330] sm:$0xff] }
  0x81   : > { %v668_v47 = vld [vmem:[%s6686_s18 + $0x6a8] sm:$0xff] }
  0x82   : > { %2141 = vmatpush1.bf16.msra.mxu1 %v5325_v63  ;;  %2109 = vmatprep.mubr.bf16.mxu0 %v6843_v21  ;;  %v620_v63 = vld [vmem:[%s6686_s18 + $0x528] sm:$0xff] }
  0x83   : > { %2142 = vmatprep.subr.bf16.mxu1 %v5334_v2  ;;  %2110 = vmatmul.mubr.bf16.vlgmr.msra.gmra.mrb[0].mxu0 %v6841_v20  ;;  %v513_v2 = vld [vmem:[%s6686_s18 + $0x1d0] sm:$0xff]  ;;  %v5398_v9 = vcombine.high %v616_v62, %v620_v63  ;;  %v5397_v13 = vcombine.low %v616_v62, %v620_v63 }
  0x84   : > { %2201 = vmatpush1.bf16.msra.mxu0 %v5239_v22  ;;  %2232 = vmatprep.mubr.bf16.mxu0 %v6707_v56  ;;  %v5296_v12 = vcombine.high %v513_v2, %v517_v3  ;;  %v5295_v16 = vcombine.low %v513_v2, %v517_v3  ;;  %v5304_v22 = vcombine.high %v521_v10, %v525_v11  ;;  %v569_v63 = vld [vmem:[%s6686_s18 + $0x390] sm:$0xff] }
  0x85   : > { %2202 = vmatprep.subr.bf16.mxu0 %v5248_v26  ;;  %v5414_v26 = vcombine.high %v632_v14, %v636_v15 }
  0x86   : > { %2143 = vmatpush1.bf16.msra.mxu1 %v5333_v5  ;;  %v5389_v5 = vcombine.low %v608_v51, %v612_v52  ;;  %v561_v51 = vld [vmem:[%s6686_s18 + $0x350] sm:$0xff] }
  0x87   : > { %2144 = vmatprep.subr.bf16.mxu1 %v5342_v8  ;;  %v5287_v8 = vcombine.low %v505_v57, %v509_v59  ;;  %v565_v52 = vld [vmem:[%s6686_s18 + $0x370] sm:$0xff]  ;;  %v672_v57 = vld [vmem:[%s6686_s18 + $0x6c8] sm:$0xff] }
  0x88   : > { %2203 = vmatpush1.bf16.msra.mxu0 %v5247_v30  ;;  %v541_v30 = vld [vmem:[%s6686_s18 + $0x2b0] sm:$0xff]  ;;  %v676_v59 = vld [vmem:[%s6686_s18 + $0x6e8] sm:$0xff]  ;;  %v5344_v62 = vcombine.high %v561_v51, %v565_v52  ;;  %v5343_v2 = vcombine.low %v561_v51, %v565_v52 }
  0x89   : > { %2204 = vmatprep.subr.bf16.mxu0 %v5256_v32  ;;  %v5311_v32 = vcombine.low %v529_v18, %v533_v19  ;;  %v5454_v3 = vcombine.high %v672_v57, %v676_v59 }
  0x8a   : > { %2145 = vmatpush1.bf16.msra.mxu1 %v5341_v17  ;;  %v5406_v17 = vcombine.high %v624_v6, %v628_v7 }
  0x8b   : > { %2146 = vmatprep.subr.bf16.mxu1 %v5350_v23  ;;  %v5405_v23 = vcombine.low %v624_v6, %v628_v7  ;;  %v684_v6 = vld [vmem:[%s6686_s18 + $0x728] sm:$0xff]  ;;  %v577_v7 = vld [vmem:[%s6686_s18 + $0x3d0] sm:$0xff] }
  0x8c   : > { %2205 = vmatpush1.bf16.msra.mxu0 %v5255_v36  ;;  %v5320_v36 = vcombine.high %v537_v28, %v541_v30 }
  0x8d   : > { %2206 = vmatprep.subr.bf16.mxu0 %v5264_v40  ;;  %v5319_v40 = vcombine.low %v537_v28, %v541_v30 }
  0x8e   : > { %2147 = vmatpush1.bf16.msra.mxu1 %v5349_v27  ;;  %v644_v27 = vld [vmem:[%s6686_s18 + $0x5e8] sm:$0xff] }
  0x8f   : > { %2148 = vmatprep.subr.bf16.mxu1 %v5358_v55  ;;  %v5413_v55 = vcombine.low %v632_v14, %v636_v15  ;;  %v692_v14 = vld [vmem:[%s6686_s18 + $0x768] sm:$0xff]  ;;  %v585_v15 = vld [vmem:[%s6686_s18 + $0x410] sm:$0xff] }
  0x90   : > { %2207 = vmatpush1.bf16.msra.mxu0 %v5263_v44  ;;  %v5328_v44 = vcombine.high %v545_v34, %v549_v35 }
  0x91   : > { %2208 = vmatprep.subr.bf16.mxu0 %v5272_v48  ;;  %v5327_v48 = vcombine.low %v545_v34, %v549_v35 }
  0x92   : > { %2149 = vmatpush1.bf16.msra.mxu1 %v5357_v33  ;;  %v5422_v33 = vcombine.high %v640_v24, %v644_v27 }
  0x93   : > { %2159 = vmatprep.subr.bf16.mxu1 %v5366_v37  ;;  %v5421_v37 = vcombine.low %v640_v24, %v644_v27  ;;  %v700_v24 = vld [vmem:[%s6686_s18 + $0x7a8] sm:$0xff] }
  0x94   : > { %2209 = vmatpush1.bf16.msra.mxu0 %v5271_v53  ;;  %v5336_v53 = vcombine.high %v553_v42, %v557_v43 }
  0x95   : > { %2151 = vmatmul.mubr.bf16.vlgmr.msra.gmra.mrb[4].mxu1 %v6780_v49  ;;  %2210 = vmatprep.subr.bf16.mxu0 %v5280_v60  ;;  %v5335_v60 = vcombine.low %v553_v42, %v557_v43 }
  0x96   : > { %2160 = vmatpush1.bf16.msra.mxu1 %v5365_v41  ;;  %2191 = vmatprep.mubr.bf16.mxu1 %v6843_v21  ;;  %v5430_v41 = vcombine.high %v648_v58, %v652_v31 }
  0x97   : > { %2161 = vmatprep.subr.bf16.mxu1 %v5374_v45  ;;  %v5429_v45 = vcombine.low %v648_v58, %v652_v31  ;;  %v708_v58 = vld [vmem:[%s6686_s18 + $0x7e8] sm:$0xff]  ;;  %v601_v31 = vld [vmem:[%s6686_s18 + $0x490] sm:$0xff] }
  0x98   : > { %2211 = vmatpush1.bf16.msra.mxu0 %v5279_v0  ;;  %v573_v0 = vld [vmem:[%s6686_s18 + $0x3b0] sm:$0xff] }
  0x99   : > { %2212 = vmatprep.subr.bf16.mxu0 %v5288_v4  ;;  %v5352_v4 = vcombine.high %v569_v63, %v573_v0  ;;  %v5351_v10 = vcombine.low %v569_v63, %v573_v0 }
  0x9a   : > { %2162 = vmatpush1.bf16.msra.mxu1 %v5373_v50  ;;  %v5438_v50 = vcombine.high %v656_v38, %v660_v39 }
  0x9b   : > { %2163 = vmatprep.subr.bf16.mxu1 %v5382_v54  ;;  %v5437_v54 = vcombine.low %v656_v38, %v660_v39  ;;  %v462_v38 = vld [vmem:[%s6686_s18 + $0x38] sm:$0xff]  ;;  %v609_v39 = vld [vmem:[%s6686_s18 + $0x4d0] sm:$0xff] }
  0x9c   : > { %2213 = vmatpush1.bf16.msra.mxu0 %v5287_v8  ;;  %v581_v8 = vld [vmem:[%s6686_s18 + $0x3f0] sm:$0xff] }
  0x9d   : > { %2214 = vmatprep.subr.bf16.mxu0 %v5296_v12  ;;  %v5360_v12 = vcombine.high %v577_v7, %v581_v8  ;;  %v5359_v18 = vcombine.low %v577_v7, %v581_v8  ;;  %v490_v8 = vld [vmem:[%s6686_s18 + $0x118] sm:$0xff] }
  0x9e   : > { %2164 = vmatpush1.bf16.msra.mxu1 %v5381_v61  ;;  %v5446_v61 = vcombine.high %v664_v46, %v668_v47 }
  0x9f   : > { %2165 = vmatprep.subr.bf16.mxu1 %v5390_v1  ;;  %v5445_v1 = vcombine.low %v664_v46, %v668_v47  ;;  %v470_v46 = vld [vmem:[%s6686_s18 + $0x78] sm:$0xff]  ;;  %v617_v47 = vld [vmem:[%s6686_s18 + $0x510] sm:$0xff] }
  0xa0   : > { %2215 = vmatpush1.bf16.msra.mxu0 %v5295_v16  ;;  %v589_v16 = vld [vmem:[%s6686_s18 + $0x430] sm:$0xff] }
  0xa1   : > { %2216 = vmatprep.subr.bf16.mxu0 %v5304_v22  ;;  %v5368_v22 = vcombine.high %v585_v15, %v589_v16  ;;  %v5367_v28 = vcombine.low %v585_v15, %v589_v16  ;;  %v498_v16 = vld [vmem:[%s6686_s18 + $0x158] sm:$0xff] }
  0xa2   : > { %2166 = vmatpush1.bf16.msra.mxu1 %v5389_v5  ;;  %v680_v5 = vld [vmem:[%s6686_s18 + $0x708] sm:$0xff] }
  0xa3   : > { %2167 = vmatprep.subr.bf16.mxu1 %v5398_v9  ;;  %v5453_v9 = vcombine.low %v672_v57, %v676_v59  ;;  %v5462_v11 = vcombine.high %v680_v5, %v684_v6  ;;  %v478_v57 = vld [vmem:[%s6686_s18 + $0xb8] sm:$0xff]  ;;  %v625_v59 = vld [vmem:[%s6686_s18 + $0x550] sm:$0xff] }
  0xa4   : > { %2217 = vmatpush1.bf16.msra.mxu0 %v5303_v25  ;;  %v593_v25 = vld [vmem:[%s6686_s18 + $0x450] sm:$0xff] }
  0xa5   : > { %2218 = vmatprep.subr.bf16.mxu0 %v5312_v29 }
  0xa6   : > { %2168 = vmatpush1.bf16.msra.mxu1 %v5397_v13  ;;  %v688_v13 = vld [vmem:[%s6686_s18 + $0x748] sm:$0xff] }
  0xa7   : > { %2169 = vmatprep.subr.bf16.mxu1 %v5406_v17  ;;  %v5461_v17 = vcombine.low %v680_v5, %v684_v6  ;;  %v5470_v19 = vcombine.high %v688_v13, %v692_v14  ;;  %v5469_v27 = vcombine.low %v688_v13, %v692_v14 }
  0xa8   : > { %2219 = vmatpush1.bf16.msra.mxu0 %v5311_v32  ;;  %v605_v32 = vld [vmem:[%s6686_s18 + $0x4b0] sm:$0xff] }
  0xa9   : > { %2220 = vmatprep.subr.bf16.mxu0 %v5320_v36  ;;  %v5384_v36 = vcombine.high %v601_v31, %v605_v32  ;;  %v5383_v42 = vcombine.low %v601_v31, %v605_v32  ;;  %v514_v32 = vld [vmem:[%s6686_s18 + $0x1d8] sm:$0xff] }
  0xaa   : > { %2170 = vmatpush1.bf16.msra.mxu1 %v5405_v23  ;;  %v696_v23 = vld [vmem:[%s6686_s18 + $0x788] sm:$0xff] }
  0xab   : > { %2171 = vmatprep.subr.bf16.mxu1 %v5414_v26  ;;  %v597_v26 = vld [vmem:[%s6686_s18 + $0x470] sm:$0xff]  ;;  %v5478_v29 = vcombine.high %v696_v23, %v700_v24 }
  0xac   : > { %2221 = vmatpush1.bf16.msra.mxu0 %v5319_v40  ;;  %v5376_v30 = vcombine.high %v593_v25, %v597_v26  ;;  %v5375_v34 = vcombine.low %v593_v25, %v597_v26  ;;  %v613_v40 = vld [vmem:[%s6686_s18 + $0x4f0] sm:$0xff]  ;;  %v506_v26 = vld [vmem:[%s6686_s18 + $0x198] sm:$0xff] }
  0xad   : > { %2222 = vmatprep.subr.bf16.mxu0 %v5328_v44  ;;  %v5392_v44 = vcombine.high %v609_v39, %v613_v40  ;;  %v5391_v51 = vcombine.low %v609_v39, %v613_v40  ;;  %v522_v40 = vld [vmem:[%s6686_s18 + $0x218] sm:$0xff] }
  0xae   : > { %2172 = vmatpush1.bf16.msra.mxu1 %v5413_v55  ;;  %v704_v55 = vld [vmem:[%s6686_s18 + $0x7c8] sm:$0xff] }
  0xaf   : > { %2173 = vmatprep.subr.bf16.mxu1 %v5422_v33  ;;  %v5477_v33 = vcombine.low %v696_v23, %v700_v24  ;;  %v5486_v35 = vcombine.high %v704_v55, %v708_v58 }
  0xb0   : > { %2223 = vmatpush1.bf16.msra.mxu0 %v5327_v48  ;;  %v621_v48 = vld [vmem:[%s6686_s18 + $0x530] sm:$0xff] }
  0xb1   : > { %2224 = vmatprep.subr.bf16.mxu0 %v5336_v53  ;;  %v5400_v53 = vcombine.high %v617_v47, %v621_v48 }
  0xb2   : > { %2174 = vmatpush1.bf16.msra.mxu1 %v5421_v37  ;;  %v458_v37 = vld [vmem:[%s6686_s18 + $0x18] sm:$0xff] }
  0xb3   : > { %2175 = vmatprep.subr.bf16.mxu1 %v5430_v41  ;;  %v5485_v41 = vcombine.low %v704_v55, %v708_v58  ;;  %v5242_v43 = vcombine.high %v458_v37, %v462_v38 }
  0xb4   : > { %2225 = vmatpush1.bf16.msra.mxu0 %v5335_v60  ;;  %v629_v60 = vld [vmem:[%s6686_s18 + $0x570] sm:$0xff] }
  0xb5   : > { %2226 = vmatprep.subr.bf16.mxu0 %v5344_v62  ;;  %v5399_v62 = vcombine.low %v617_v47, %v621_v48  ;;  %v5408_v0 = vcombine.high %v625_v59, %v629_v60  ;;  %v5407_v6 = vcombine.low %v625_v59, %v629_v60  ;;  %v530_v48 = vld [vmem:[%s6686_s18 + $0x258] sm:$0xff] }
  0xb6   : > { %2176 = vmatpush1.bf16.msra.mxu1 %v5429_v45  ;;  %v466_v45 = vld [vmem:[%s6686_s18 + $0x58] sm:$0xff] }
  0xb7   : > { %2177 = vmatprep.subr.bf16.mxu1 %v5438_v50  ;;  %v5241_v50 = vcombine.low %v458_v37, %v462_v38  ;;  %v5250_v52 = vcombine.high %v466_v45, %v470_v46  ;;  %v538_v60 = vld [vmem:[%s6686_s18 + $0x298] sm:$0xff] }
  0xb8   : > { %2227 = vmatpush1.bf16.msra.mxu0 %v5343_v2  ;;  %v486_v2 = vld [vmem:[%s6686_s18 + $0xf8] sm:$0xff] }
  0xb9   : > { %2228 = vmatprep.subr.bf16.mxu0 %v5352_v4  ;;  %v637_v4 = vld [vmem:[%s6686_s18 + $0x5b0] sm:$0xff] }
  0xba   : > { %2178 = vmatpush1.bf16.msra.mxu1 %v5437_v54  ;;  %v474_v54 = vld [vmem:[%s6686_s18 + $0x98] sm:$0xff] }
  0xbb   : > { %2179 = vmatprep.subr.bf16.mxu1 %v5446_v61  ;;  %v5249_v61 = vcombine.low %v466_v45, %v470_v46  ;;  %v5258_v63 = vcombine.high %v474_v54, %v478_v57  ;;  %v5257_v5 = vcombine.low %v474_v54, %v478_v57 }
  0xbc   : > { %2229 = vmatpush1.bf16.msra.mxu0 %v5351_v10  ;;  %v641_v10 = vld [vmem:[%s6686_s18 + $0x5d0] sm:$0xff] }
  0xbd   : > { %2230 = vmatprep.subr.bf16.mxu0 %v5360_v12 }
  0xbe   : > { %2180 = vmatpush1.bf16.msra.mxu1 %v5445_v1  ;;  %v482_v1 = vld [vmem:[%s6686_s18 + $0xd8] sm:$0xff] }
  0xbf   : > { %2181 = vmatprep.subr.bf16.mxu1 %v5454_v3  ;;  %v633_v3 = vld [vmem:[%s6686_s18 + $0x590] sm:$0xff]  ;;  %v5265_v12 = vcombine.low %v482_v1, %v486_v2 }
  0xc0   : > { %2231 = vmatpush1.bf16.msra.mxu0 %v5359_v18  ;;  %v5416_v7 = vcombine.high %v633_v3, %v637_v4  ;;  %v5415_v13 = vcombine.low %v633_v3, %v637_v4  ;;  %v649_v18 = vld [vmem:[%s6686_s18 + $0x610] sm:$0xff]  ;;  %v546_v4 = vld [vmem:[%s6686_s18 + $0x2d8] sm:$0xff] }
  0xc1   : > { %2241 = vmatprep.subr.bf16.mxu0 %v5368_v22 }
  0xc2   : > { %2182 = vmatpush1.bf16.msra.mxu1 %v5453_v9  ;;  %v494_v9 = vld [vmem:[%s6686_s18 + $0x138] sm:$0xff] }
  0xc3   : > { %2183 = vmatprep.subr.bf16.mxu1 %v5462_v11  ;;  %2233 = vmatmul.mubr.bf16.vlgmr.msra.gmra.mrb[4].mxu0 %v6780_v49  ;;  %v645_v11 = vld [vmem:[%s6686_s18 + $0x5f0] sm:$0xff]  ;;  %v5274_v14 = vcombine.high %v490_v8, %v494_v9  ;;  %v5273_v22 = vcombine.low %v490_v8, %v494_v9 }
  0xc4   : > { %2242 = vmatpush1.bf16.msra.mxu0 %v5367_v28  ;;  %2273 = vmatprep.mubr.bf16.mxu0 %v6843_v21  ;;  %v5424_v15 = vcombine.high %v641_v10, %v645_v11  ;;  %v5423_v23 = vcombine.low %v641_v10, %v645_v11  ;;  %v657_v28 = vld [vmem:[%s6686_s18 + $0x650] sm:$0xff]  ;;  %v554_v11 = vld [vmem:[%s6686_s18 + $0x318] sm:$0xff] }
  0xc5   : > { %2243 = vmatprep.subr.bf16.mxu0 %v5376_v30 }
  0xc6   : > { %2184 = vmatpush1.bf16.msra.mxu1 %v5461_v17  ;;  %v502_v17 = vld [vmem:[%s6686_s18 + $0x178] sm:$0xff] }
  0xc7   : > { %2185 = vmatprep.subr.bf16.mxu1 %v5470_v19  ;;  %v653_v19 = vld [vmem:[%s6686_s18 + $0x630] sm:$0xff]  ;;  %v5282_v24 = vcombine.high %v498_v16, %v502_v17  ;;  %v5281_v30 = vcombine.low %v498_v16, %v502_v17 }
  0xc8   : > { %2244 = vmatpush1.bf16.msra.mxu0 %v5375_v34  ;;  %v5432_v25 = vcombine.high %v649_v18, %v653_v19  ;;  %v5431_v55 = vcombine.low %v649_v18, %v653_v19  ;;  %v665_v34 = vld [vmem:[%s6686_s18 + $0x690] sm:$0xff]  ;;  %v562_v19 = vld [vmem:[%s6686_s18 + $0x358] sm:$0xff] }
  0xc9   : > { %2245 = vmatprep.subr.bf16.mxu0 %v5384_v36 }
  0xca   : > { %2186 = vmatpush1.bf16.msra.mxu1 %v5469_v27  ;;  %v510_v27 = vld [vmem:[%s6686_s18 + $0x1b8] sm:$0xff] }
  0xcb   : > { %2187 = vmatprep.subr.bf16.mxu1 %v5478_v29  ;;  %v661_v29 = vld [vmem:[%s6686_s18 + $0x670] sm:$0xff]  ;;  %v5290_v58 = vcombine.high %v506_v26, %v510_v27  ;;  %v5289_v36 = vcombine.low %v506_v26, %v510_v27  ;;  %v570_v26 = vld [vmem:[%s6686_s18 + $0x398] sm:$0xff] }
  0xcc   : > { %2246 = vmatpush1.bf16.msra.mxu0 %v5383_v42  ;;  %v5440_v31 = vcombine.high %v657_v28, %v661_v29  ;;  %v5439_v37 = vcombine.low %v657_v28, %v661_v29  ;;  %v673_v42 = vld [vmem:[%s6686_s18 + $0x6d0] sm:$0xff]  ;;  %v574_v27 = vld [vmem:[%s6686_s18 + $0x3b8] sm:$0xff] }
  0xcd   : > { %2247 = vmatprep.subr.bf16.mxu0 %v5392_v44  ;;  %v6037_v28 = vld [vmem:[%s6761_s8 + $0x4] ss:$16 sps:$4 sm:$0xff]  }
  0xce   : > { %2188 = vmatpush1.bf16.msra.mxu1 %v5477_v33  ;;  %v518_v33 = vld [vmem:[%s6686_s18 + $0x1f8] sm:$0xff] }
  0xcf   : > { %2189 = vmatprep.subr.bf16.mxu1 %v5486_v35  ;;  %v669_v35 = vld [vmem:[%s6686_s18 + $0x6b0] sm:$0xff]  ;;  %v5298_v38 = vcombine.high %v514_v32, %v518_v33  ;;  %v5297_v44 = vcombine.low %v514_v32, %v518_v33  ;;  %v5353_v33 = vcombine.low %v570_v26, %v574_v27 }
  0xd0   : > { %2248 = vmatpush1.bf16.msra.mxu0 %v5391_v51  ;;  %v5448_v39 = vcombine.high %v665_v34, %v669_v35  ;;  %v5447_v45 = vcombine.low %v665_v34, %v669_v35  ;;  %v681_v51 = vld [vmem:[%s6686_s18 + $0x710] sm:$0xff] }
  0xd1   : > { %2249 = vmatprep.subr.bf16.mxu0 %v5400_v53  ;;  %v6040_v32 = vld [vmem:[%s6761_s8 + $0x24] ss:$16 sps:$4 sm:$0xff]   ;;  %v6038_v35 = vld [vmem:[%s6761_s8 + $0x20] ss:$16 sps:$4 sm:$0xff]  }
  0xd2   : > { %2190 = vmatpush1.bf16.msra.mxu1 %v5485_v41  ;;  %v526_v41 = vld [vmem:[%s6686_s18 + $0x238] sm:$0xff] }
  0xd3   : > { %2282 = vmatprep.subr.bf16.mxu1 %v5242_v43  ;;  %v677_v43 = vld [vmem:[%s6686_s18 + $0x6f0] sm:$0xff]  ;;  %v5306_v46 = vcombine.high %v522_v40, %v526_v41  ;;  %v5305_v53 = vcombine.low %v522_v40, %v526_v41 }
  0xd4   : > { %2250 = vmatpush1.bf16.msra.mxu0 %v5399_v62  ;;  %v5456_v47 = vcombine.high %v673_v42, %v677_v43  ;;  %v5455_v54 = vcombine.low %v673_v42, %v677_v43  ;;  %v689_v62 = vld [vmem:[%s6686_s18 + $0x750] sm:$0xff]  ;;  %v594_v42 = vld [vmem:[%s6686_s18 + $0x458] sm:$0xff] }
  0xd5   : > { %2192 = vmatmul.mubr.bf16.vlgmr.msra.gmra.mrb[4].mxu1 %v6841_v20  ;;  %2251 = vmatprep.subr.bf16.mxu0 %v5408_v0  ;;  %v6044_v41 = vld [vmem:[%s6761_s8 + $0x40] ss:$16 sps:$4 sm:$0xff]   ;;  %v598_v43 = vld [vmem:[%s6686_s18 + $0x478] sm:$0xff] }
  0xd6   : > { %2283 = vmatpush1.bf16.msra.mxu1 %v5241_v50  ;;  %2314 = vmatprep.mubr.bf16.mxu1 %v6707_v56  ;;  %v5266_v56 = vcombine.high %v482_v1, %v486_v2  ;;  %v534_v50 = vld [vmem:[%s6686_s18 + $0x278] sm:$0xff] }
  0xd7   : > { %2284 = vmatprep.subr.bf16.mxu1 %v5250_v52  ;;  %v685_v52 = vld [vmem:[%s6686_s18 + $0x730] sm:$0xff]  ;;  %v5314_v57 = vcombine.high %v530_v48, %v534_v50  ;;  %v5313_v0 = vcombine.low %v530_v48, %v534_v50  ;;  %v602_v48 = vld [vmem:[%s6686_s18 + $0x498] sm:$0xff] }
  0xd8   : > { %2252 = vmatpush1.bf16.msra.mxu0 %v5407_v6  ;;  %v5464_v59 = vcombine.high %v681_v51, %v685_v52  ;;  %v5463_v1 = vcombine.low %v681_v51, %v685_v52  ;;  %v697_v6 = vld [vmem:[%s6686_s18 + $0x790] sm:$0xff]  ;;  %v606_v50 = vld [vmem:[%s6686_s18 + $0x4b8] sm:$0xff]  ;;  %v5377_v52 = vcombine.low %v594_v42, %v598_v43 }
  0xd9   : > { %2253 = vmatprep.subr.bf16.mxu0 %v5416_v7  ;;  %v6058_v51 = vld [vmem:[%s6761_s8 + $0x84] ss:$16 sps:$4 sm:$0xff]  }
  0xda   : > { %2285 = vmatpush1.bf16.msra.mxu1 %v5249_v61  ;;  %v542_v61 = vld [vmem:[%s6686_s18 + $0x2b8] sm:$0xff] }
  0xdb   : > { %2286 = vmatprep.subr.bf16.mxu1 %v5258_v63  ;;  %v693_v63 = vld [vmem:[%s6686_s18 + $0x770] sm:$0xff]  ;;  %v5322_v2 = vcombine.high %v538_v60, %v542_v61  ;;  %v5321_v7 = vcombine.low %v538_v60, %v542_v61 }
  0xdc   : > { %2254 = vmatpush1.bf16.msra.mxu0 %v5415_v13  ;;  %v5472_v3 = vcombine.high %v689_v62, %v693_v63  ;;  %v5471_v8 = vcombine.low %v689_v62, %v693_v63  ;;  %v705_v13 = vld [vmem:[%s6686_s18 + $0x7d0] sm:$0xff]  ;;  %v618_v62 = vld [vmem:[%s6686_s18 + $0x518] sm:$0xff] }
  0xdd   : > { %2255 = vmatprep.subr.bf16.mxu0 %v5424_v15  ;;  %v6064_v60 = vld [vmem:[%s6761_s8 + $0xa4] ss:$16 sps:$4 sm:$0xff]   ;;  %v622_v63 = vld [vmem:[%s6686_s18 + $0x538] sm:$0xff] }
  0xde   : > { %2287 = vmatpush1.bf16.msra.mxu1 %v5257_v5  ;;  %v550_v5 = vld [vmem:[%s6686_s18 + $0x2f8] sm:$0xff] }
  0xdf   : > { %2288 = vmatprep.subr.bf16.mxu1 %v5266_v56  ;;  %v701_v56 = vld [vmem:[%s6686_s18 + $0x7b0] sm:$0xff]  ;;  %v5330_v9 = vcombine.high %v546_v4, %v550_v5  ;;  %v5329_v15 = vcombine.low %v546_v4, %v550_v5  ;;  %v626_v4 = vld [vmem:[%s6686_s18 + $0x558] sm:$0xff] }
  0xe0   : > { %2256 = vmatpush1.bf16.msra.mxu0 %v5423_v23  ;;  %v5480_v10 = vcombine.high %v697_v6, %v701_v56  ;;  %v5479_v16 = vcombine.low %v697_v6, %v701_v56  ;;  %v630_v5 = vld [vmem:[%s6686_s18 + $0x578] sm:$0xff]  ;;  %v6076_v6 = vld [vmem:[%s6761_s8 + $0xe4] ss:$16 sps:$4 sm:$0xff]   ;;  %v5401_v56 = vcombine.low %v618_v62, %v622_v63 }
  0xe1   : > { %2257 = vmatprep.subr.bf16.mxu0 %v5432_v25 }
  0xe2   : > { %2289 = vmatpush1.bf16.msra.mxu1 %v5265_v12  ;;  %v558_v12 = vld [vmem:[%s6686_s18 + $0x338] sm:$0xff] }
  0xe3   : > { %2290 = vmatprep.subr.bf16.mxu1 %v5274_v14  ;;  %v709_v14 = vld [vmem:[%s6686_s18 + $0x7f0] sm:$0xff]  ;;  %v5338_v17 = vcombine.high %v554_v11, %v558_v12  ;;  %v5337_v23 = vcombine.low %v554_v11, %v558_v12  ;;  %v5409_v12 = vcombine.low %v626_v4, %v630_v5 }
  0xe4   : > { %2258 = vmatpush1.bf16.msra.mxu0 %v5431_v55  ;;  %v5488_v18 = vcombine.high %v705_v13, %v709_v14  ;;  %v6035_v55 = vld [vmem:[%s6761_s8] ss:$16 sps:$4 sm:$0xff]   ;;  %v6082_v11 = vld [vmem:[%s6761_s8 + $0x104] ss:$16 sps:$4 sm:$0xff]  }
  0xe5   : > { %2259 = vmatprep.subr.bf16.mxu0 %v5440_v31  ;;  %v582_v31 = vld [vmem:[%s6686_s18 + $0x3f8] sm:$0xff] }
  0xe6   : > { %2291 = vmatpush1.bf16.msra.mxu1 %v5273_v22  ;;  %v566_v22 = vld [vmem:[%s6686_s18 + $0x378] sm:$0xff] }
  0xe7   : > { %2292 = vmatprep.subr.bf16.mxu1 %v5282_v24  ;;  %v5487_v24 = vcombine.low %v705_v13, %v709_v14  ;;  %v5346_v25 = vcombine.high %v562_v19, %v566_v22  ;;  %v5345_v29 = vcombine.low %v562_v19, %v566_v22  ;;  %v6080_v14 = vld [vmem:[%s6761_s8 + $0x100] ss:$16 sps:$4 sm:$0xff]  }
  0xe8   : > { %2260 = vmatpush1.bf16.msra.mxu0 %v5439_v37  ;;  %v590_v37 = vld [vmem:[%s6686_s18 + $0x438] sm:$0xff] }
  0xe9   : > { %2261 = vmatprep.subr.bf16.mxu0 %v5448_v39 }
  0xea   : > { %2293 = vmatpush1.bf16.msra.mxu1 %v5281_v30  ;;  %v5354_v30 = vcombine.high %v570_v26, %v574_v27  ;;  %v6086_v26 = vld [vmem:[%s6761_s8 + $0x120] ss:$16 sps:$4 sm:$0xff]   ;;  %v650_v27 = vld [vmem:[%s6686_s18 + $0x618] sm:$0xff] }
  0xeb   : > { %2294 = vmatprep.subr.bf16.mxu1 %v5290_v58  ;;  %v578_v58 = vld [vmem:[%s6686_s18 + $0x3d8] sm:$0xff] }
  0xec   : > { %2262 = vmatpush1.bf16.msra.mxu0 %v5447_v45  ;;  %v5362_v34 = vcombine.high %v578_v58, %v582_v31  ;;  %v5361_v39 = vcombine.low %v578_v58, %v582_v31  ;;  %v6092_v58 = vld [vmem:[%s6761_s8 + $0x140] ss:$16 sps:$4 sm:$0xff]   ;;  %v658_v31 = vld [vmem:[%s6686_s18 + $0x658] sm:$0xff] }
  0xed   : > { %2263 = vmatprep.subr.bf16.mxu0 %v5456_v47  ;;  %v6050_v47 = vld [vmem:[%s6761_s8 + $0x60] ss:$16 sps:$4 sm:$0xff]  }
  0xee   : > { %2295 = vmatpush1.bf16.msra.mxu1 %v5289_v36  ;;  %v586_v36 = vld [vmem:[%s6686_s18 + $0x418] sm:$0xff] }
  0xef   : > { %2296 = vmatprep.subr.bf16.mxu1 %v5298_v38  ;;  %v6046_v38 = vld [vmem:[%s6761_s8 + $0x44] ss:$16 sps:$4 sm:$0xff]   ;;  %v5370_v40 = vcombine.high %v586_v36, %v590_v37  ;;  %v5369_v45 = vcombine.low %v586_v36, %v590_v37  ;;  %v6098_v36 = vld [vmem:[%s6761_s8 + $0x160] ss:$16 sps:$4 sm:$0xff]   ;;  %v666_v37 = vld [vmem:[%s6686_s18 + $0x698] sm:$0xff] }
  0xf0   : > { %2264 = vmatpush1.bf16.msra.mxu0 %v5455_v54  ;;  %v6056_v54 = vld [vmem:[%s6761_s8 + $0x80] ss:$16 sps:$4 sm:$0xff]  }
  0xf1   : > { %2265 = vmatprep.subr.bf16.mxu0 %v5464_v59  ;;  %v614_v59 = vld [vmem:[%s6686_s18 + $0x4f8] sm:$0xff] }
  0xf2   : > { %2297 = vmatpush1.bf16.msra.mxu1 %v5297_v44  ;;  %v6052_v44 = vld [vmem:[%s6761_s8 + $0x64] ss:$16 sps:$4 sm:$0xff]  }
  0xf3   : > { %2298 = vmatprep.subr.bf16.mxu1 %v5306_v46  ;;  %v5378_v46 = vcombine.high %v594_v42, %v598_v43  ;;  %v6104_v42 = vld [vmem:[%s6761_s8 + $0x180] ss:$16 sps:$4 sm:$0xff]   ;;  %v674_v43 = vld [vmem:[%s6686_s18 + $0x6d8] sm:$0xff] }
  0xf4   : > { %2266 = vmatpush1.bf16.msra.mxu0 %v5463_v1 }
  0xf5   : > { %2267 = vmatprep.subr.bf16.mxu0 %v5472_v3  ;;  %v6068_v3 = vld [vmem:[%s6761_s8 + $0xc0] ss:$16 sps:$4 sm:$0xff]  }
  0xf6   : > { %2299 = vmatpush1.bf16.msra.mxu1 %v5305_v53  ;;  %v5386_v53 = vcombine.high %v602_v48, %v606_v50 }
  0xf7   : > { %2300 = vmatprep.subr.bf16.mxu1 %v5314_v57  ;;  %v610_v57 = vld [vmem:[%s6686_s18 + $0x4d8] sm:$0xff] }
  0xf8   : > { %2268 = vmatpush1.bf16.msra.mxu0 %v5471_v8  ;;  %v5394_v61 = vcombine.high %v610_v57, %v614_v59  ;;  %v5393_v1 = vcombine.low %v610_v57, %v614_v59  ;;  %v6074_v8 = vld [vmem:[%s6761_s8 + $0xe0] ss:$16 sps:$4 sm:$0xff]   ;;  %v690_v59 = vld [vmem:[%s6686_s18 + $0x758] sm:$0xff] }
  0xf9   : > { %2269 = vmatprep.subr.bf16.mxu0 %v5480_v10  ;;  %v638_v10 = vld [vmem:[%s6686_s18 + $0x5b8] sm:$0xff]  ;;  %v6116_v57 = vld [vmem:[%s6761_s8 + $0x1c0] ss:$16 sps:$4 sm:$0xff]  }
  0xfa   : > { %2301 = vmatpush1.bf16.msra.mxu1 %v5313_v0  ;;  %v6070_v0 = vld [vmem:[%s6761_s8 + $0xc4] ss:$16 sps:$4 sm:$0xff]  }
  0xfb   : > { %2302 = vmatprep.subr.bf16.mxu1 %v5322_v2  ;;  %v5402_v2 = vcombine.high %v618_v62, %v622_v63  ;;  %v6122_v62 = vld [vmem:[%s6761_s8 + $0x1e0] ss:$16 sps:$4 sm:$0xff]   ;;  %v698_v63 = vld [vmem:[%s6686_s18 + $0x798] sm:$0xff] }
  0xfc   : > { %2270 = vmatpush1.bf16.msra.mxu0 %v5479_v16  ;;  %v642_v16 = vld [vmem:[%s6686_s18 + $0x5d8] sm:$0xff] }
  0xfd   : > { %2271 = vmatprep.subr.bf16.mxu0 %v5488_v18  ;;  %v6088_v18 = vld [vmem:[%s6761_s8 + $0x124] ss:$16 sps:$4 sm:$0xff]  }
  0xfe   : > { %2303 = vmatpush1.bf16.msra.mxu1 %v5321_v7  ;;  %v5410_v7 = vcombine.high %v626_v4, %v630_v5  ;;  %v706_v4 = vld [vmem:[%s6686_s18 + $0x7d8] sm:$0xff] }
  0xff   : > { %2304 = vmatprep.subr.bf16.mxu1 %v5330_v9  ;;  %v634_v9 = vld [vmem:[%s6686_s18 + $0x598] sm:$0xff] }
 0x100   : > { %2272 = vmatpush1.bf16.msra.mxu0 %v5487_v24  ;;  %v5418_v13 = vcombine.high %v634_v9, %v638_v10  ;;  %v710_v5 = vld [vmem:[%s6686_s18 + $0x7f8] sm:$0xff] }
 0x101   : > { %4057 = vmatprep.subr.bf16.mxu0 %v6037_v28  ;;  %v654_v28 = vld [vmem:[%s6686_s18 + $0x638] sm:$0xff] }
 0x102   : > { %2305 = vmatpush1.bf16.msra.mxu1 %v5329_v15 }
 0x103   : > { %2306 = vmatprep.subr.bf16.mxu1 %v5338_v17  ;;  %2274 = vmatmul.mubr.bf16.vlgmr.msra.gmra.mrb[4].mxu0 %v6841_v20  ;;  %v646_v17 = vld [vmem:[%s6686_s18 + $0x5f8] sm:$0xff] }
 0x104   : > { %4058 = vmatpush1.bf16.msra.mxu0 %v6035_v55  ;;  %v5434_v55 = vcombine.high %v650_v27, %v654_v28 }
 0x105   : > { %4059 = vmatprep.subr.bf16.mxu0 %v6040_v32  ;;  %v662_v32 = vld [vmem:[%s6686_s18 + $0x678] sm:$0xff] }
 0x106   : > { %2307 = vmatpush1.bf16.msra.mxu1 %v5337_v23  ;;  %v5417_v23 = vcombine.low %v634_v9, %v638_v10  ;;  %v6043_v9 = vld [vmem:[%s6761_s8 + $0xc] ss:$16 sps:$4 sm:$0xff]  }
 0x107   : > { %2308 = vmatprep.subr.bf16.mxu1 %v5346_v25  ;;  %v5426_v25 = vcombine.high %v642_v16, %v646_v17 }
 0x108   : > { %4060 = vmatpush1.bf16.msra.mxu0 %v6038_v35  ;;  %v5442_v35 = vcombine.high %v658_v31, %v662_v32 }
 0x109   : > { %4061 = vmatprep.subr.bf16.mxu0 %v6046_v38  ;;  %v670_v38 = vld [vmem:[%s6686_s18 + $0x6b8] sm:$0xff] }
 0x10a   : > { %2309 = vmatpush1.bf16.msra.mxu1 %v5345_v29  ;;  %v6094_v29 = vld [vmem:[%s6761_s8 + $0x144] ss:$16 sps:$4 sm:$0xff]  }
 0x10b   : > { %2310 = vmatprep.subr.bf16.mxu1 %v5354_v30  ;;  %v5425_v30 = vcombine.low %v642_v16, %v646_v17  ;;  %v6047_v17 = vld [vmem:[%s6761_s8 + $0x28] ss:$16 sps:$4 sm:$0xff]  }
 0x10c   : > { %4062 = vmatpush1.bf16.msra.mxu0 %v6044_v41  ;;  %v5450_v41 = vcombine.high %v666_v37, %v670_v38 }
 0x10d   : > { %4063 = vmatprep.subr.bf16.mxu0 %v6052_v44  ;;  %v678_v44 = vld [vmem:[%s6686_s18 + $0x6f8] sm:$0xff] }
 0x10e   : > { %2311 = vmatpush1.bf16.msra.mxu1 %v5353_v33  ;;  %v6100_v33 = vld [vmem:[%s6761_s8 + $0x164] ss:$16 sps:$4 sm:$0xff]  }
 0x10f   : > { %2312 = vmatprep.subr.bf16.mxu1 %v5362_v34  ;;  %v5433_v34 = vcombine.low %v650_v27, %v654_v28 }
 0x110   : > { %4064 = vmatpush1.bf16.msra.mxu0 %v6050_v47  ;;  %v5458_v47 = vcombine.high %v674_v43, %v678_v44 }
 0x111   : > { %4065 = vmatprep.subr.bf16.mxu0 %v6058_v51  ;;  %v686_v51 = vld [vmem:[%s6686_s18 + $0x738] sm:$0xff] }
 0x112   : > { %2313 = vmatpush1.bf16.msra.mxu1 %v5361_v39  ;;  %v6106_v39 = vld [vmem:[%s6761_s8 + $0x184] ss:$16 sps:$4 sm:$0xff]  }
 0x113   : > { %2323 = vmatprep.subr.bf16.mxu1 %v5370_v40  ;;  %v5441_v40 = vcombine.low %v658_v31, %v662_v32 }
 0x114   : > { %4066 = vmatpush1.bf16.msra.mxu0 %v6056_v54 }
 0x115   : > { %2315 = vmatmul.mubr.bf16.vlgmr.msra.gmra.mrb[8].mxu1 %v6780_v49  ;;  %v5385_v49 = vcombine.low %v602_v48, %v606_v50  ;;  %4067 = vmatprep.subr.bf16.mxu0 %v6064_v60  ;;  %v6110_v48 = vld [vmem:[%s6761_s8 + $0x1a0] ss:$16 sps:$4 sm:$0xff]   ;;  %v682_v50 = vld [vmem:[%s6686_s18 + $0x718] sm:$0xff] }
 0x116   : > { %2324 = vmatpush1.bf16.msra.mxu1 %v5369_v45  ;;  %2355 = vmatprep.mubr.bf16.mxu1 %v6843_v21  ;;  %v6062_v21 = vld [vmem:[%s6761_s8 + $0xa0] ss:$16 sps:$4 sm:$0xff]   ;;  %v6112_v45 = vld [vmem:[%s6761_s8 + $0x1a4] ss:$16 sps:$4 sm:$0xff]   ;;  %v5466_v54 = vcombine.high %v682_v50, %v686_v51  ;;  %v694_v60 = vld [vmem:[%s6686_s18 + $0x778] sm:$0xff] }
 0x117   : > { %2325 = vmatprep.subr.bf16.mxu1 %v5378_v46  ;;  %v5449_v46 = vcombine.low %v666_v37, %v670_v38  ;;  %v6071_v37 = vld [vmem:[%s6761_s8 + $0xa8] ss:$16 sps:$4 sm:$0xff]   ;;  %v6079_v38 = vld [vmem:[%s6761_s8 + $0xcc] ss:$16 sps:$4 sm:$0xff]  }
 0x118   : > { %4068 = vmatpush1.bf16.msra.mxu0 %v6062_v21  ;;  %v5474_v21 = vcombine.high %v690_v59, %v694_v60 }
 0x119   : > { %4069 = vmatprep.subr.bf16.mxu0 %v6070_v0  ;;  %v702_v0 = vld [vmem:[%s6686_s18 + $0x7b8] sm:$0xff]  ;;  %s7059_s18 = scalar_lea.vmem %s7506_s6, %s6020_s19 }
 0x11a   : > { %2326 = vmatpush1.bf16.msra.mxu1 %v5377_v52  ;;  %v6118_v52 = vld [vmem:[%s6761_s8 + $0x1c4] ss:$16 sps:$4 sm:$0xff]  }
 0x11b   : > { %2327 = vmatprep.subr.bf16.mxu1 %v5386_v53  ;;  %v5457_v53 = vcombine.low %v674_v43, %v678_v44 }
 0x11c   : > { %4070 = vmatpush1.bf16.msra.mxu0 %v6068_v3  ;;  %v5482_v3 = vcombine.high %v698_v63, %v702_v0 }
 0x11d   : > { %4071 = vmatprep.subr.bf16.mxu0 %v6076_v6  ;;  %v5481_v6 = vcombine.low %v698_v63, %v702_v0 }
 0x11e   : > { %2328 = vmatpush1.bf16.msra.mxu1 %v5385_v49  ;;  %v6124_v49 = vld [vmem:[%s6761_s8 + $0x1e4] ss:$16 sps:$4 sm:$0xff]  }
 0x11f   : > { %2329 = vmatprep.subr.bf16.mxu1 %v5394_v61  ;;  %v5465_v61 = vcombine.low %v682_v50, %v686_v51 }
 0x120   : > { %4072 = vmatpush1.bf16.msra.mxu0 %v6074_v8  ;;  %v5489_v8 = vcombine.low %v706_v4, %v710_v5 }
 0x121   : > { %4073 = vmatprep.subr.bf16.mxu0 %v6082_v11  ;;  %v6041_v11 = vld [vmem:[%s6761_s8 + $0x8] ss:$16 sps:$4 sm:$0xff]  }
 0x122   : > { %2330 = vmatpush1.bf16.msra.mxu1 %v5393_v1  ;;  %v6133_v1 = vld [vmem:[%s6761_s8 + $0x204] ss:$16 sps:$4 sm:$0xff]  }
 0x123   : > { %2331 = vmatprep.subr.bf16.mxu1 %v5402_v2  ;;  %v5473_v2 = vcombine.low %v690_v59, %v694_v60 }
 0x124   : > { %4074 = vmatpush1.bf16.msra.mxu0 %v6080_v14  ;;  %v7067_v14 = vld [vmem:[%s7059_s18] sm:$0xff] }
 0x125   : > { %4075 = vmatprep.subr.bf16.mxu0 %v6088_v18  ;;  %v6055_v18 = vld [vmem:[%s6761_s8 + $0x4c] ss:$16 sps:$4 sm:$0xff]  }
 0x126   : > { %2332 = vmatpush1.bf16.msra.mxu1 %v5401_v56  ;;  %v5490_v56 = vcombine.high %v706_v4, %v710_v5  ;;  %v6107_v4 = vld [vmem:[%s6761_s8 + $0x168] ss:$16 sps:$4 sm:$0xff]  }
 0x127   : > { %2333 = vmatprep.subr.bf16.mxu1 %v5410_v7  ;;  %v716_v7 = vlaneseq }
 0x128   : > { %v7015_v15 = vpop.f32.mrb[0].mxu1  ;;  %4076 = vmatpush1.bf16.msra.mxu0 %v6086_v26 }
 0x129   : > { %v7020_v19 = vpop.f32.mrb[1].mxu1  ;;  %4077 = vmatprep.subr.bf16.mxu0 %v6094_v29  ;;  %v7054_v10 = vshrl.u32 %v716_v7, 7 }
 0x12a   : > { %v2074_v22 = vpop.f32.mrb[2].mxu1  ;;  %2334 = vmatpush1.bf16.msra.mxu1 %v5409_v12  ;;  %v6049_v12 = vld [vmem:[%s6761_s8 + $0x2c] ss:$16 sps:$4 sm:$0xff]  }
 0x12b   : > { %v2075_v24 = vpop.f32.mrb[3].mxu1  ;;  %2335 = vmatprep.subr.bf16.mxu1 %v5418_v13  ;;  %v7064_v13 = vsub.s32 0, %v7054_v10  ;;  %v7070_v16 = vsub.s32 1, %v7054_v10 }
 0x12c   : > { %4078 = vmatpush1.bf16.msra.mxu0 %v6092_v58  ;;  %v6053_v24 = vld [vmem:[%s6761_s8 + $0x48] ss:$16 sps:$4 sm:$0xff]   ;;  %v6067_v58 = vld [vmem:[%s6761_s8 + $0x8c] ss:$16 sps:$4 sm:$0xff]  }
 0x12d   : > { %4079 = vmatprep.subr.bf16.mxu0 %v6100_v33  ;;  %v719_v22 = vrot.slane %v7067_v14, %v7064_v13 }
 0x12e   : > { %2336 = vmatpush1.bf16.msra.mxu1 %v5417_v23  ;;  %v723_v23 = vrot.slane %v7067_v14, %v7070_v16 }
 0x12f   : > { %2337 = vmatprep.subr.bf16.mxu1 %v5426_v25  ;;  %v6061_v25 = vld [vmem:[%s6761_s8 + $0x6c] ss:$16 sps:$4 sm:$0xff]   ;;  %v2071_v26 = vadd.f32 %v7015_v15, %v719_v22 }
 0x130   : > { %4080 = vmatpush1.bf16.msra.mxu0 %v6098_v36  ;;  %v6073_v36 = vld [vmem:[%s6761_s8 + $0xac] ss:$16 sps:$4 sm:$0xff]  }
 0x131   : > { %4081 = vmatprep.subr.bf16.mxu0 %v6106_v39  ;;  %v6077_v39 = vld [vmem:[%s6761_s8 + $0xc8] ss:$16 sps:$4 sm:$0xff]  }
 0x132   : > { %2338 = vmatpush1.bf16.msra.mxu1 %v5425_v30  ;;  %v6059_v30 = vld [vmem:[%s6761_s8 + $0x68] ss:$16 sps:$4 sm:$0xff]  }
 0x133   : > { %2339 = vmatprep.subr.bf16.mxu1 %v5434_v55 }
 0x134   : > { %4082 = vmatpush1.bf16.msra.mxu0 %v6104_v42  ;;  %v6083_v42 = vld [vmem:[%s6761_s8 + $0xe8] ss:$16 sps:$4 sm:$0xff]  }
 0x135   : > { %4083 = vmatprep.subr.bf16.mxu0 %v6112_v45  ;;  %v6091_v45 = vld [vmem:[%s6761_s8 + $0x10c] ss:$16 sps:$4 sm:$0xff]  }
 0x136   : > { %2340 = vmatpush1.bf16.msra.mxu1 %v5433_v34  ;;  %v6065_v34 = vld [vmem:[%s6761_s8 + $0x88] ss:$16 sps:$4 sm:$0xff]  }
 0x137   : > { %2341 = vmatprep.subr.bf16.mxu1 %v5442_v35 }
 0x138   : > { %4084 = vmatpush1.bf16.msra.mxu0 %v6110_v48  ;;  %v6097_v48 = vld [vmem:[%s6761_s8 + $0x12c] ss:$16 sps:$4 sm:$0xff]  }
 0x139   : > { %4085 = vmatprep.subr.bf16.mxu0 %v6118_v52  ;;  %v6095_v52 = vld [vmem:[%s6761_s8 + $0x128] ss:$16 sps:$4 sm:$0xff]  }
 0x13a   : > { %2342 = vmatpush1.bf16.msra.mxu1 %v5441_v40  ;;  %v6085_v40 = vld [vmem:[%s6761_s8 + $0xec] ss:$16 sps:$4 sm:$0xff]  }
 0x13b   : > { %2343 = vmatprep.subr.bf16.mxu1 %v5450_v41 }
 0x13c   : > { %4086 = vmatpush1.bf16.msra.mxu0 %v6116_v57 }
 0x13d   : > { %4087 = vmatprep.subr.bf16.mxu0 %v6124_v49  ;;  %v6101_v49 = vld [vmem:[%s6761_s8 + $0x148] ss:$16 sps:$4 sm:$0xff]  }
 0x13e   : > { %2344 = vmatpush1.bf16.msra.mxu1 %v5449_v46 }
 0x13f   : > { %2345 = vmatprep.subr.bf16.mxu1 %v5458_v47  ;;  %v6089_v47 = vld [vmem:[%s6761_s8 + $0x108] ss:$16 sps:$4 sm:$0xff]  }
 0x140   : > { %4088 = vmatpush1.bf16.msra.mxu0 %v6122_v62 }
 0x141   : > { %4098 = vmatprep.subr.bf16.mxu0 %v6133_v1 }
 0x142   : > { %2346 = vmatpush1.bf16.msra.mxu1 %v5457_v53  ;;  %v6103_v53 = vld [vmem:[%s6761_s8 + $0x14c] ss:$16 sps:$4 sm:$0xff]  }
 0x143   : > { %2347 = vmatprep.subr.bf16.mxu1 %v5466_v54 }
 0x146   : > { %2348 = vmatpush1.bf16.msra.mxu1 %v5465_v61 }
 0x147   : > { %2349 = vmatprep.subr.bf16.mxu1 %v5474_v21  ;;  %v6109_v21 = vld [vmem:[%s6761_s8 + $0x16c] ss:$16 sps:$4 sm:$0xff]  }
 0x14a   : > { %2350 = vmatpush1.bf16.msra.mxu1 %v5473_v2 }
 0x14b   : > { %2351 = vmatprep.subr.bf16.mxu1 %v5482_v3 }
 0x14e   : > { %2352 = vmatpush1.bf16.msra.mxu1 %v5481_v6 }
 0x14f   : > { %2353 = vmatprep.subr.bf16.mxu1 %v5490_v56  ;;  %v6115_v56 = vld [vmem:[%s6761_s8 + $0x18c] ss:$16 sps:$4 sm:$0xff]  }
 0x152   : > { %2354 = vmatpush1.bf16.msra.mxu1 %v5489_v8  ;;  %v6113_v8 = vld [vmem:[%s6761_s8 + $0x188] ss:$16 sps:$4 sm:$0xff]  }
 0x153   : > { %4221 = vmatprep.subr.bf16.mxu1 %v6043_v9  ;;  %v6121_v9 = vld [vmem:[%s6761_s8 + $0x1ac] ss:$16 sps:$4 sm:$0xff]  }
 0x155   : > { %2356 = vmatmul.mubr.bf16.vlgmr.msra.gmra.mrb[8].mxu1 %v6841_v20  ;;  %v2073_v20 = vadd.f32 %v7020_v19, %v723_v23 }
 0x156   : > { %4222 = vmatpush1.bf16.msra.mxu1 %v6041_v11  ;;  %v2111_v27 = vpop.f32.mrb[0].mxu0  ;;  %v6119_v11 = vld [vmem:[%s6761_s8 + $0x1a8] ss:$16 sps:$4 sm:$0xff]  }
 0x157   : > { %4223 = vmatprep.subr.bf16.mxu1 %v6049_v12  ;;  %v7083_v28 = vadd.f32 %v2111_v27, %v2071_v26  ;;  %v2113_v29 = vpop.f32.mrb[1].mxu0  ;;  %v6127_v12 = vld [vmem:[%s6761_s8 + $0x1cc] ss:$16 sps:$4 sm:$0xff]   ;;  %v6131_v27 = vld [vmem:[%s6761_s8 + $0x200] ss:$16 sps:$4 sm:$0xff]  }
 0x158   : > { %v7086_v55 = vadd.f32 %v2113_v29, %v2073_v20  ;;  %v2115_v31 = vpop.f32.mrb[2].mxu0  ;;  %v6128_v20 = vld [vmem:[%s6761_s8 + $0x1e8] ss:$16 sps:$4 sm:$0xff]  }
 0x159   : > { %v2372_v32 = vmin.f32 %v7083_v28, 20.0  ;;  %v2116_v15 = vpop.f32.mrb[3].mxu0  ;;  %vm2364_vm3 = vcmp.gt.f32.partialorder %v7083_v28, 20.0  ;;  %v6142_v31 = vld [vmem:[%s6761_s8 + $0x22c] ss:$16 sps:$4 sm:$0xff]  }
 0x15a   : > { %4224 = vmatpush1.bf16.msra.mxu1 %v6047_v17  ;;  %v2373_v19 = vmin.f32 %v7086_v55, 20.0  ;;  %vm2365_vm5 = vcmp.gt.f32.partialorder %v7086_v55, 20.0  ;;  %v6140_v15 = vld [vmem:[%s6761_s8 + $0x228] ss:$16 sps:$4 sm:$0xff]  }
 0x15b   : > { %4225 = vmatprep.subr.bf16.mxu1 %v6055_v18  ;;  %v2380_v33 = vmul.f32 1.442695, %v2372_v32  ;;  %v6125_v18 = vld [vmem:[%s6761_s8 + $0x1c8] ss:$16 sps:$4 sm:$0xff]   ;;  %v6145_v32 = vld [vmem:[%s6761_s8 + $0x244] ss:$16 sps:$4 sm:$0xff]  }
 0x15c   : > { %v2382_v35 = vmul.f32 1.442695, %v2373_v19  ;;  %v6143_v19 = vld [vmem:[%s6761_s8 + $0x240] ss:$16 sps:$4 sm:$0xff]  }
 0x15d   : > { %6515 = vpow2.f32 %v2380_v33  ;;  %v6148_v33 = vld [vmem:[%s6761_s8 + $0x24c] ss:$16 sps:$4 sm:$0xff]  }
 0x15e   : > { %4226 = vmatpush1.bf16.msra.mxu1 %v6053_v24  ;;  %6517 = vpow2.f32 %v2382_v35  ;;  %v6130_v24 = vld [vmem:[%s6761_s8 + $0x1ec] ss:$16 sps:$4 sm:$0xff]   ;;  %v6146_v35 = vld [vmem:[%s6761_s8 + $0x248] ss:$16 sps:$4 sm:$0xff]  }
 0x15f   : > { %4227 = vmatprep.subr.bf16.mxu1 %v6061_v25 }
 0x162   : > { %4228 = vmatpush1.bf16.msra.mxu1 %v6059_v30  ;;  %v6136_v30 = vld [vmem:[%s6761_s8 + $0x20c] ss:$16 sps:$4 sm:$0xff]  }
 0x163   : > { %4229 = vmatprep.subr.bf16.mxu1 %v6067_v58  ;;  %v6139_v58 = vld [vmem:[%s6761_s8 + $0x224] ss:$16 sps:$4 sm:$0xff]  }
 0x166   : > { %4230 = vmatpush1.bf16.msra.mxu1 %v6065_v34  ;;  %v6151_v34 = vld [vmem:[%s6761_s8 + $0x264] ss:$16 sps:$4 sm:$0xff]  }
 0x167   : > { %4231 = vmatprep.subr.bf16.mxu1 %v6073_v36  ;;  %v6516_v41 = vpop.eup %6515  ;;  %v6149_v36 = vld [vmem:[%s6761_s8 + $0x260] ss:$16 sps:$4 sm:$0xff]  }
 0x168   : > { %v6518_v43 = vpop.eup %6517  ;;  %v2396_v44 = vadd.f32 1.0, %v6516_v41  ;;  %v2399_v50 = vmul.f32 -0.5, %v6516_v41  ;;  %v2402_v57 = vand.u32 2147483647, %v6516_v41 }
 0x169   : > { %v2405_v46 = vadd.f32 1.0, %v6518_v43  ;;  %v2408_v51 = vmul.f32 -0.5, %v6518_v43  ;;  %v2411_v60 = vand.u32 2147483647, %v6518_v43 }
 0x16a   : > { %4232 = vmatpush1.bf16.msra.mxu1 %v6071_v37  ;;  %6519 = vlog2.f32 %v2396_v44  ;;  %v2400_v54 = vadd.f32 1.0, %v2399_v50  ;;  %vm2403_vm2 = vcmp.lt.f32.partialorder %v2402_v57, 0.0004427343  ;;  %v6154_v37 = vld [vmem:[%s6761_s8 + $0x26c] ss:$16 sps:$4 sm:$0xff]   ;;  %v730_v44 = vsub.s32 3, %v7054_v10 }
 0x16b   : > { %4233 = vmatprep.subr.bf16.mxu1 %v6079_v38  ;;  %6521 = vlog2.f32 %v2405_v46  ;;  %v2409_v59 = vadd.f32 1.0, %v2408_v51  ;;  %vm2412_vm4 = vcmp.lt.f32.partialorder %v2411_v60, 0.0004427343  ;;  %v6157_v38 = vld [vmem:[%s6761_s8 + $0x284] ss:$16 sps:$4 sm:$0xff]  }
 0x16c   : > { %v2401_v0 = vmul.f32 %v6516_v41, %v2400_v54  ;;  %v6160_v41 = vld [vmem:[%s6761_s8 + $0x28c] ss:$16 sps:$4 sm:$0xff]   ;;  %v6161_v46 = vld [vmem:[%s6761_s8 + $0x2a0] ss:$16 sps:$4 sm:$0xff]   ;;  %v731_v51 = vrot.slane %v7067_v14, %v730_v44  ;;  %v6175_v57 = vld [vmem:[%s6761_s8 + $0x2e4] ss:$16 sps:$4 sm:$0xff]  }
 0x16d   : > { %v2410_v2 = vmul.f32 %v6518_v43, %v2409_v59  ;;  %v726_v43 = vsub.s32 2, %v7054_v10  ;;  %v6172_v54 = vld [vmem:[%s6761_s8 + $0x2cc] ss:$16 sps:$4 sm:$0xff]  }
 0x16e   : > { %4234 = vmatpush1.bf16.msra.mxu1 %v6077_v39  ;;  %v6152_v39 = vld [vmem:[%s6761_s8 + $0x268] ss:$16 sps:$4 sm:$0xff]  }
 0x16f   : > { %4235 = vmatprep.subr.bf16.mxu1 %v6085_v40  ;;  %v6155_v40 = vld [vmem:[%s6761_s8 + $0x280] ss:$16 sps:$4 sm:$0xff]   ;;  %v727_v50 = vrot.slane %v7067_v14, %v726_v43 }
 0x172   : > { %4236 = vmatpush1.bf16.msra.mxu1 %v6083_v42  ;;  %v6163_v42 = vld [vmem:[%s6761_s8 + $0x2a4] ss:$16 sps:$4 sm:$0xff]  }
 0x173   : > { %4237 = vmatprep.subr.bf16.mxu1 %v6091_v45  ;;  %v6158_v45 = vld [vmem:[%s6761_s8 + $0x288] ss:$16 sps:$4 sm:$0xff]  }
 0x174   : > { %v6520_v61 = vpop.eup %6519 }
 0x175   : > { %v6522_v62 = vpop.eup %6521  ;;  %v2398_v63 = vmul.f32 0.6931472, %v6520_v61 }
 0x176   : > { %4238 = vmatpush1.bf16.msra.mxu1 %v6089_v47  ;;  %v2407_v1 = vmul.f32 0.6931472, %v6522_v62  ;;  %v6166_v47 = vld [vmem:[%s6761_s8 + $0x2ac] ss:$16 sps:$4 sm:$0xff]   ;;  %v6170_v62 = vld [vmem:[%s6761_s8 + $0x2c8] ss:$16 sps:$4 sm:$0xff]  }
 0x177   : > { %4239 = vmatprep.subr.bf16.mxu1 %v6097_v48  ;;  %v2404_v3 = vsel %vm2403_vm2, %v2401_v0, %v2398_v63  ;;  %v6169_v48 = vld [vmem:[%s6761_s8 + $0x2c4] ss:$16 sps:$4 sm:$0xff]   ;;  %v6173_v63 = vld [vmem:[%s6761_s8 + $0x2e0] ss:$16 sps:$4 sm:$0xff]  }
 0x178   : > { %v2468_v5 = vsel %vm2364_vm3, %v7083_v28, %v2404_v3  ;;  %v2413_v6 = vsel %vm2412_vm4, %v2410_v2, %v2407_v1  ;;  %v6178_v2 = vld [vmem:[%s6761_s8 + $0x2ec] ss:$16 sps:$4 sm:$0xff]   ;;  %v6181_v3 = vld [vmem:[%s6761_s8 + $0x304] ss:$16 sps:$4 sm:$0xff]  }
 0x179   : > { %6523 = vtanh.f32 %v2468_v5  ;;  %v2469_v7 = vsel %vm2365_vm5, %v7086_v55, %v2413_v6 }
 0x17a   : > { %4240 = vmatpush1.bf16.msra.mxu1 %v6095_v52  ;;  %6525 = vtanh.f32 %v2469_v7  ;;  %v6164_v52 = vld [vmem:[%s6761_s8 + $0x2a8] ss:$16 sps:$4 sm:$0xff]   ;;  %v6179_v7 = vld [vmem:[%s6761_s8 + $0x300] ss:$16 sps:$4 sm:$0xff]  }
 0x17b   : > { %4241 = vmatprep.subr.bf16.mxu1 %v6103_v53  ;;  %v6167_v53 = vld [vmem:[%s6761_s8 + $0x2c0] ss:$16 sps:$4 sm:$0xff]  }
 0x17e   : > { %4242 = vmatpush1.bf16.msra.mxu1 %v6101_v49 }
 0x17f   : > { %4243 = vmatprep.subr.bf16.mxu1 %v6109_v21 }
 0x182   : > { %4244 = vmatpush1.bf16.msra.mxu1 %v6107_v4 }
 0x183   : > { %4245 = vmatprep.subr.bf16.mxu1 %v6115_v56  ;;  %v6524_v17 = vpop.eup %6523  ;;  %v6176_v56 = vld [vmem:[%s6761_s8 + $0x2e8] ss:$16 sps:$4 sm:$0xff]  }
 0x184   : > { %v6526_v22 = vpop.eup %6525  ;;  %v2484_v23 = vmul.f32 %v6524_v17, %v7083_v28  ;;  %v6134_v28 = vld [vmem:[%s6761_s8 + $0x208] ss:$16 sps:$4 sm:$0xff]   ;;  %v6190_v17 = vld [vmem:[%s6761_s8 + $0x32c] ss:$16 sps:$4 sm:$0xff]  }
 0x185   : > { %v2485_v25 = vmul.f32 %v6526_v22, %v7086_v55  ;;  %v6137_v55 = vld [vmem:[%s6761_s8 + $0x220] ss:$16 sps:$4 sm:$0xff]   ;;  %v6188_v22 = vld [vmem:[%s6761_s8 + $0x328] ss:$16 sps:$4 sm:$0xff]  }
 0x186   : > { %4246 = vmatpush1.bf16.msra.mxu1 %v6113_v8  ;;  %v2748_v29 = vpack.c.bf16 %v2484_v23, %v2484_v23  ;;  %v6184_v8 = vld [vmem:[%s6761_s8 + $0x30c] ss:$16 sps:$4 sm:$0xff]   ;;  %v6191_v23 = vld [vmem:[%s6761_s8 + $0x340] ss:$16 sps:$4 sm:$0xff]  }
 0x187   : > { %4247 = vmatprep.subr.bf16.mxu1 %v6121_v9  ;;  %v2749_v26 = vpack.c.bf16 %v2485_v25, %v2485_v25  ;;  %v6187_v9 = vld [vmem:[%s6761_s8 + $0x324] ss:$16 sps:$4 sm:$0xff]  }
 0x188   : > { %v6199_v25 = vld [vmem:[%s6761_s8 + $0x364] ss:$16 sps:$4 sm:$0xff]  }
 0x189   : > { %4089 = vmatprep.mubr.bf16.mxu0 %v2749_v26  ;;  %4253 = vmatprep.mubr.bf16.mxu1 %v2749_v26 }
 0x18a   : > { %4248 = vmatpush1.bf16.msra.mxu1 %v6119_v11  ;;  %4090 = vmatmul.mubr.bf16.vlgmr.msra.gmra.mrb[8].mxu0 %v2748_v29  ;;  %v6182_v11 = vld [vmem:[%s6761_s8 + $0x308] ss:$16 sps:$4 sm:$0xff]  }
 0x18b   : > { %4249 = vmatprep.subr.bf16.mxu1 %v6127_v12  ;;  %4099 = vmatpush1.bf16.msra.mxu0 %v6131_v27  ;;  %v6185_v12 = vld [vmem:[%s6761_s8 + $0x320] ss:$16 sps:$4 sm:$0xff]  }
 0x18c   : > { %4100 = vmatprep.subr.bf16.mxu0 %v6139_v58 }
 0x18e   : > { %4250 = vmatpush1.bf16.msra.mxu1 %v6125_v18  ;;  %v6193_v18 = vld [vmem:[%s6761_s8 + $0x344] ss:$16 sps:$4 sm:$0xff]  }
 0x18f   : > { %4251 = vmatprep.subr.bf16.mxu1 %v6130_v24  ;;  %4101 = vmatpush1.bf16.msra.mxu0 %v6137_v55  ;;  %v6196_v24 = vld [vmem:[%s6761_s8 + $0x34c] ss:$16 sps:$4 sm:$0xff]   ;;  %v6205_v55 = vld [vmem:[%s6761_s8 + $0x384] ss:$16 sps:$4 sm:$0xff]  }
 0x190   : > { %4102 = vmatprep.subr.bf16.mxu0 %v6145_v32  ;;  %v6203_v32 = vld [vmem:[%s6761_s8 + $0x380] ss:$16 sps:$4 sm:$0xff]  }
 0x192   : > { %4252 = vmatpush1.bf16.msra.mxu1 %v6128_v20 }
 0x193   : > { %4262 = vmatprep.subr.bf16.mxu1 %v6136_v30  ;;  %4103 = vmatpush1.bf16.msra.mxu0 %v6143_v19  ;;  %v6197_v30 = vld [vmem:[%s6761_s8 + $0x360] ss:$16 sps:$4 sm:$0xff]   ;;  %v6208_v19 = vld [vmem:[%s6761_s8 + $0x38c] ss:$16 sps:$4 sm:$0xff]  }
 0x194   : > { %4104 = vmatprep.subr.bf16.mxu0 %v6151_v34 }
 0x195   : > { %4254 = vmatmul.mubr.bf16.vlgmr.msra.gmra.mrb[12].mxu1 %v2748_v29  ;;  %v6194_v29 = vld [vmem:[%s6761_s8 + $0x348] ss:$16 sps:$4 sm:$0xff]  }
 0x196   : > { %4263 = vmatpush1.bf16.msra.mxu1 %v6134_v28  ;;  %v6202_v28 = vld [vmem:[%s6761_s8 + $0x36c] ss:$16 sps:$4 sm:$0xff]  }
 0x197   : > { %4264 = vmatprep.subr.bf16.mxu1 %v6142_v31  ;;  %4105 = vmatpush1.bf16.msra.mxu0 %v6149_v36  ;;  %v6200_v31 = vld [vmem:[%s6761_s8 + $0x368] ss:$16 sps:$4 sm:$0xff]   ;;  %v6209_v36 = vld [vmem:[%s6761_s8 + $0x3a0] ss:$16 sps:$4 sm:$0xff]  }
 0x198   : > { %4106 = vmatprep.subr.bf16.mxu0 %v6157_v38  ;;  %v6214_v38 = vld [vmem:[%s6761_s8 + $0x3ac] ss:$16 sps:$4 sm:$0xff]  }
 0x19a   : > { %4265 = vmatpush1.bf16.msra.mxu1 %v6140_v15 }
 0x19b   : > { %4266 = vmatprep.subr.bf16.mxu1 %v6148_v33  ;;  %4107 = vmatpush1.bf16.msra.mxu0 %v6155_v40  ;;  %v6211_v33 = vld [vmem:[%s6761_s8 + $0x3a4] ss:$16 sps:$4 sm:$0xff]  }
 0x19c   : > { %4108 = vmatprep.subr.bf16.mxu0 %v6163_v42 }
 0x19e   : > { %4267 = vmatpush1.bf16.msra.mxu1 %v6146_v35  ;;  %v6206_v35 = vld [vmem:[%s6761_s8 + $0x388] ss:$16 sps:$4 sm:$0xff]  }
 0x19f   : > { %4268 = vmatprep.subr.bf16.mxu1 %v6154_v37  ;;  %4109 = vmatpush1.bf16.msra.mxu0 %v6161_v46  ;;  %v6212_v46 = vld [vmem:[%s6761_s8 + $0x3a8] ss:$16 sps:$4 sm:$0xff]  }
 0x1a0   : > { %4110 = vmatprep.subr.bf16.mxu0 %v6169_v48 }
 0x1a2   : > { %4269 = vmatpush1.bf16.msra.mxu1 %v6152_v39  ;;  %v6217_v39 = vld [vmem:[%s6761_s8 + $0x3c4] ss:$16 sps:$4 sm:$0xff]  }
 0x1a3   : > { %4270 = vmatprep.subr.bf16.mxu1 %v6160_v41  ;;  %4111 = vmatpush1.bf16.msra.mxu0 %v6167_v53  ;;  %v6223_v53 = vld [vmem:[%s6761_s8 + $0x3e4] ss:$16 sps:$4 sm:$0xff]  }
 0x1a4   : > { %4112 = vmatprep.subr.bf16.mxu0 %v6175_v57 }
 0x1a6   : > { %4271 = vmatpush1.bf16.msra.mxu1 %v6158_v45 }
 0x1a7   : > { %4272 = vmatprep.subr.bf16.mxu1 %v6166_v47  ;;  %4113 = vmatpush1.bf16.msra.mxu0 %v6173_v63  ;;  %v6215_v47 = vld [vmem:[%s6761_s8 + $0x3c0] ss:$16 sps:$4 sm:$0xff]  }
 0x1a8   : > { %v2193_v59 = vpop.f32.mrb[4].mxu1  ;;  %4114 = vmatprep.subr.bf16.mxu0 %v6181_v3  ;;  %v6221_v63 = vld [vmem:[%s6761_s8 + $0x3e0] ss:$16 sps:$4 sm:$0xff]   ;;  %v6224_v3 = vld [vmem:[%s6761_s8 + $0x3e8] ss:$16 sps:$4 sm:$0xff]  }
 0x1a9   : > { %v7155_v60 = vadd.f32 %v2193_v59, %v727_v50  ;;  %v2195_v49 = vpop.f32.mrb[5].mxu1 }
 0x1aa   : > { %v7157_v61 = vadd.f32 %v2195_v49, %v731_v51  ;;  %v2197_v21 = vpop.f32.mrb[6].mxu1  ;;  %4273 = vmatpush1.bf16.msra.mxu1 %v6164_v52  ;;  %v6220_v52 = vld [vmem:[%s6761_s8 + $0x3cc] ss:$16 sps:$4 sm:$0xff]  }
 0x1ab   : > { %v2374_v0 = vmin.f32 %v7155_v60, 20.0  ;;  %v2198_v1 = vpop.f32.mrb[7].mxu1  ;;  %4274 = vmatprep.subr.bf16.mxu1 %v6172_v54  ;;  %4115 = vmatpush1.bf16.msra.mxu0 %v6179_v7  ;;  %vm2366_vm7 = vcmp.gt.f32.partialorder %v7155_v60, 20.0 }
 0x1ac   : > { %v2375_v4 = vmin.f32 %v7157_v61, 20.0  ;;  %4116 = vmatprep.subr.bf16.mxu0 %v6187_v9  ;;  %vm2367_vm9 = vcmp.gt.f32.partialorder %v7157_v61, 20.0  ;;  %v6226_v1 = vld [vmem:[%s6761_s8 + $0x3ec] ss:$16 sps:$4 sm:$0xff]   ;;  %v738_v9 = vsub.s32 5, %v7054_v10 }
 0x1ad   : > { %v2384_v5 = vmul.f32 1.442695, %v2374_v0 }
 0x1ae   : > { %v2386_v6 = vmul.f32 1.442695, %v2375_v4  ;;  %4275 = vmatpush1.bf16.msra.mxu1 %v6170_v62  ;;  %v6218_v62 = vld [vmem:[%s6761_s8 + $0x3c8] ss:$16 sps:$4 sm:$0xff]   ;;  %v6232_v4 = vld [vmem:[%s6761_s8 + $0x40c] ss:$16 sps:$4 sm:$0xff]  }
 0x1af   : > { %6527 = vpow2.f32 %v2384_v5  ;;  %4276 = vmatprep.subr.bf16.mxu1 %v6178_v2  ;;  %4117 = vmatpush1.bf16.msra.mxu0 %v6185_v12  ;;  %v6229_v2 = vld [vmem:[%s6761_s8 + $0x404] ss:$16 sps:$4 sm:$0xff]   ;;  %v6227_v12 = vld [vmem:[%s6761_s8 + $0x400] ss:$16 sps:$4 sm:$0xff]  }
 0x1b0   : > { %6529 = vpow2.f32 %v2386_v6  ;;  %4118 = vmatprep.subr.bf16.mxu0 %v6193_v18 }
 0x1b2   : > { %4277 = vmatpush1.bf16.msra.mxu1 %v6176_v56  ;;  %v734_v56 = vsub.s32 4, %v7054_v10 }
 0x1b3   : > { %4278 = vmatprep.subr.bf16.mxu1 %v6184_v8  ;;  %4119 = vmatpush1.bf16.msra.mxu0 %v6191_v23  ;;  %v6235_v23 = vld [vmem:[%s6761_s8 + $0x424] ss:$16 sps:$4 sm:$0xff]  }
 0x1b4   : > { %4120 = vmatprep.subr.bf16.mxu0 %v6199_v25  ;;  %v735_v18 = vrot.slane %v7067_v14, %v734_v56 }
 0x1b6   : > { %4279 = vmatpush1.bf16.msra.mxu1 %v6182_v11 }
 0x1b7   : > { %4280 = vmatprep.subr.bf16.mxu1 %v6190_v17  ;;  %4121 = vmatpush1.bf16.msra.mxu0 %v6197_v30  ;;  %v6230_v17 = vld [vmem:[%s6761_s8 + $0x408] ss:$16 sps:$4 sm:$0xff]  }
 0x1b8   : > { %4122 = vmatprep.subr.bf16.mxu0 %v6205_v55 }
 0x1b9   : > { %v6528_v26 = vpop.eup %6527 }
 0x1ba   : > { %v6530_v20 = vpop.eup %6529  ;;  %v2414_v27 = vadd.f32 1.0, %v6528_v26  ;;  %4281 = vmatpush1.bf16.msra.mxu1 %v6188_v22  ;;  %v2417_v15 = vmul.f32 -0.5, %v6528_v26  ;;  %v2420_v40 = vand.u32 2147483647, %v6528_v26 }
 0x1bb   : > { %v2423_v58 = vadd.f32 1.0, %v6530_v20  ;;  %4282 = vmatprep.subr.bf16.mxu1 %v6196_v24  ;;  %v2426_v34 = vmul.f32 -0.5, %v6530_v20  ;;  %4123 = vmatpush1.bf16.msra.mxu0 %v6203_v32  ;;  %v2429_v42 = vand.u32 2147483647, %v6530_v20  ;;  %v6238_v24 = vld [vmem:[%s6761_s8 + $0x42c] ss:$16 sps:$4 sm:$0xff]  }
 0x1bc   : > { %6531 = vlog2.f32 %v2414_v27  ;;  %v2418_v37 = vadd.f32 1.0, %v2417_v15  ;;  %4124 = vmatprep.subr.bf16.mxu0 %v6211_v33  ;;  %vm2421_vm6 = vcmp.lt.f32.partialorder %v2420_v40, 0.0004427343  ;;  %v6242_v15 = vld [vmem:[%s6761_s8 + $0x448] ss:$16 sps:$4 sm:$0xff]  }
 0x1bd   : > { %6533 = vlog2.f32 %v2423_v58  ;;  %v2427_v41 = vadd.f32 1.0, %v2426_v34  ;;  %vm2430_vm8 = vcmp.lt.f32.partialorder %v2429_v42, 0.0004427343  ;;  %v6247_v33 = vld [vmem:[%s6761_s8 + $0x464] ss:$16 sps:$4 sm:$0xff]  }
 0x1be   : > { %4283 = vmatpush1.bf16.msra.mxu1 %v6194_v29  ;;  %v2419_v51 = vmul.f32 %v6528_v26, %v2418_v37  ;;  %v6236_v26 = vld [vmem:[%s6761_s8 + $0x428] ss:$16 sps:$4 sm:$0xff]   ;;  %v6250_v34 = vld [vmem:[%s6761_s8 + $0x46c] ss:$16 sps:$4 sm:$0xff]   ;;  %v6251_v40 = vld [vmem:[%s6761_s8 + $0x480] ss:$16 sps:$4 sm:$0xff]  }
 0x1bf   : > { %4284 = vmatprep.subr.bf16.mxu1 %v6202_v28  ;;  %4125 = vmatpush1.bf16.msra.mxu0 %v6209_v36  ;;  %v2428_v57 = vmul.f32 %v6530_v20, %v2427_v41  ;;  %v6241_v20 = vld [vmem:[%s6761_s8 + $0x444] ss:$16 sps:$4 sm:$0xff]   ;;  %v6245_v36 = vld [vmem:[%s6761_s8 + $0x460] ss:$16 sps:$4 sm:$0xff]   ;;  %v6248_v37 = vld [vmem:[%s6761_s8 + $0x468] ss:$16 sps:$4 sm:$0xff]  }
 0x1c0   : > { %4126 = vmatprep.subr.bf16.mxu0 %v6217_v39  ;;  %v6256_v39 = vld [vmem:[%s6761_s8 + $0x48c] ss:$16 sps:$4 sm:$0xff]   ;;  %v6254_v41 = vld [vmem:[%s6761_s8 + $0x488] ss:$16 sps:$4 sm:$0xff]   ;;  %v6259_v42 = vld [vmem:[%s6761_s8 + $0x4a4] ss:$16 sps:$4 sm:$0xff]  }
 0x1c2   : > { %4285 = vmatpush1.bf16.msra.mxu1 %v6200_v31  ;;  %v6239_v31 = vld [vmem:[%s6761_s8 + $0x440] ss:$16 sps:$4 sm:$0xff]  }
 0x1c3   : > { %4286 = vmatprep.subr.bf16.mxu1 %v6208_v19  ;;  %4127 = vmatpush1.bf16.msra.mxu0 %v6215_v47  ;;  %v6260_v47 = vld [vmem:[%s6761_s8 + $0x4a8] ss:$16 sps:$4 sm:$0xff]  }
 0x1c4   : > { %4128 = vmatprep.subr.bf16.mxu0 %v6223_v53 }
 0x1c6   : > { %v6532_v45 = vpop.eup %6531  ;;  %4287 = vmatpush1.bf16.msra.mxu1 %v6206_v35 }
 0x1c7   : > { %v6534_v48 = vpop.eup %6533  ;;  %v2416_v50 = vmul.f32 0.6931472, %v6532_v45  ;;  %4288 = vmatprep.subr.bf16.mxu1 %v6214_v38  ;;  %4129 = vmatpush1.bf16.msra.mxu0 %v6221_v63  ;;  %v6253_v38 = vld [vmem:[%s6761_s8 + $0x484] ss:$16 sps:$4 sm:$0xff]   ;;  %v6262_v45 = vld [vmem:[%s6761_s8 + $0x4ac] ss:$16 sps:$4 sm:$0xff]  }
 0x1c8   : > { %v2425_v54 = vmul.f32 0.6931472, %v6534_v48  ;;  %4139 = vmatprep.subr.bf16.mxu0 %v6229_v2  ;;  %v6265_v48 = vld [vmem:[%s6761_s8 + $0x4c4] ss:$16 sps:$4 sm:$0xff]   ;;  %v6272_v63 = vld [vmem:[%s6761_s8 + $0x4e8] ss:$16 sps:$4 sm:$0xff]  }
 0x1c9   : > { %v2422_v59 = vsel %vm2421_vm6, %v2419_v51, %v2416_v50  ;;  %v6268_v50 = vld [vmem:[%s6761_s8 + $0x4cc] ss:$16 sps:$4 sm:$0xff]  }
 0x1ca   : > { %v2470_v49 = vsel %vm2366_vm7, %v7155_v60, %v2422_v59  ;;  %v2431_v21 = vsel %vm2430_vm8, %v2428_v57, %v2425_v54  ;;  %4289 = vmatpush1.bf16.msra.mxu1 %v6212_v46  ;;  %v6257_v46 = vld [vmem:[%s6761_s8 + $0x4a0] ss:$16 sps:$4 sm:$0xff]   ;;  %v6266_v57 = vld [vmem:[%s6761_s8 + $0x4c8] ss:$16 sps:$4 sm:$0xff]  }
 0x1cb   : > { %6535 = vtanh.f32 %v2470_v49  ;;  %v2471_v0 = vsel %vm2367_vm9, %v7157_v61, %v2431_v21  ;;  %4290 = vmatprep.subr.bf16.mxu1 %v6220_v52  ;;  %v6263_v54 = vld [vmem:[%s6761_s8 + $0x4c0] ss:$16 sps:$4 sm:$0xff]   ;;  %v6271_v49 = vld [vmem:[%s6761_s8 + $0x4e4] ss:$16 sps:$4 sm:$0xff]   ;;  %v6274_v21 = vld [vmem:[%s6761_s8 + $0x4ec] ss:$16 sps:$4 sm:$0xff]  }
 0x1cc   : > { %6537 = vtanh.f32 %v2471_v0  ;;  %v6277_v0 = vld [vmem:[%s6761_s8 + $0x504] ss:$16 sps:$4 sm:$0xff]  }
 0x1ce   : > { %4291 = vmatpush1.bf16.msra.mxu1 %v6218_v62  ;;  %v6269_v62 = vld [vmem:[%s6761_s8 + $0x4e0] ss:$16 sps:$4 sm:$0xff]  }
 0x1cf   : > { %4292 = vmatprep.subr.bf16.mxu1 %v6226_v1  ;;  %v6280_v1 = vld [vmem:[%s6761_s8 + $0x50c] ss:$16 sps:$4 sm:$0xff]  }
 0x1d2   : > { %4293 = vmatpush1.bf16.msra.mxu1 %v6224_v3 }
 0x1d3   : > { %4303 = vmatprep.subr.bf16.mxu1 %v6232_v4 }
 0x1d5   : > { %v6536_v5 = vpop.eup %6535 }
 0x1d6   : > { %v6538_v6 = vpop.eup %6537  ;;  %v2486_v7 = vmul.f32 %v6536_v5, %v7155_v60  ;;  %v739_v60 = vrot.slane %v7067_v14, %v738_v9  ;;  %v2275_v25 = vpop.f32.mrb[4].mxu0  ;;  %v6244_v14 = vld [vmem:[%s6761_s8 + $0x44c] ss:$16 sps:$4 sm:$0xff]   ;;  %v6275_v5 = vld [vmem:[%s6761_s8 + $0x500] ss:$16 sps:$4 sm:$0xff]  }
 0x1d7   : > { %v2487_v8 = vmul.f32 %v6538_v6, %v7157_v61  ;;  %v6233_v61 = vld [vmem:[%s6761_s8 + $0x420] ss:$16 sps:$4 sm:$0xff]   ;;  %v7222_v27 = vadd.f32 %v2275_v25, %v735_v18  ;;  %v2277_v29 = vpop.f32.mrb[5].mxu0  ;;  %v6278_v6 = vld [vmem:[%s6761_s8 + $0x508] ss:$16 sps:$4 sm:$0xff]  }
 0x1d8   : > { %v2750_v22 = vpack.c.bf16 %v2486_v7, %v2486_v7  ;;  %v7225_v30 = vadd.f32 %v2277_v29, %v739_v60  ;;  %v2279_v58 = vpop.f32.mrb[6].mxu0  ;;  %v6283_v7 = vld [vmem:[%s6761_s8 + $0x524] ss:$16 sps:$4 sm:$0xff]  }
 0x1d9   : > { %v2751_v11 = vpack.c.bf16 %v2487_v8, %v2487_v8  ;;  %v2376_v28 = vmin.f32 %v7222_v27, 20.0  ;;  %v2280_v55 = vpop.f32.mrb[7].mxu0  ;;  %v6286_v8 = vld [vmem:[%s6761_s8 + $0x52c] ss:$16 sps:$4 sm:$0xff]   ;;  %v6290_v58 = vld [vmem:[%s6761_s8 + $0x548] ss:$16 sps:$4 sm:$0xff]  }
 0x1da   : > { %v2377_v32 = vmin.f32 %v7225_v30, 20.0  ;;  %vm2369_vm11 = vcmp.gt.f32.partialorder %v7225_v30, 20.0  ;;  %v6298_v55 = vld [vmem:[%s6761_s8 + $0x56c] ss:$16 sps:$4 sm:$0xff]   ;;  %vm2368_vm13 = vcmp.gt.f32.partialorder %v7222_v27, 20.0 }
 0x1db   : > { %4130 = vmatprep.mubr.bf16.mxu0 %v2751_v11  ;;  %4294 = vmatprep.mubr.bf16.mxu1 %v2751_v11  ;;  %v2388_v19 = vmul.f32 1.442695, %v2376_v28  ;;  %v6295_v28 = vld [vmem:[%s6761_s8 + $0x564] ss:$16 sps:$4 sm:$0xff]  }
 0x1dc   : > { %4131 = vmatmul.mubr.bf16.vlgmr.msra.gmra.mrb[8].mxu0 %v2750_v22  ;;  %4295 = vmatmul.mubr.bf16.vlgmr.msra.gmra.mrb[12].mxu1 %v2750_v22  ;;  %v2390_v35 = vmul.f32 1.442695, %v2377_v32  ;;  %v6293_v32 = vld [vmem:[%s6761_s8 + $0x560] ss:$16 sps:$4 sm:$0xff]  }
 0x1dd   : > { %4140 = vmatpush1.bf16.msra.mxu0 %v6227_v12  ;;  %4304 = vmatpush1.bf16.msra.mxu1 %v6230_v17  ;;  %6539 = vpow2.f32 %v2388_v19  ;;  %v6281_v12 = vld [vmem:[%s6761_s8 + $0x520] ss:$16 sps:$4 sm:$0xff]   ;;  %v6284_v17 = vld [vmem:[%s6761_s8 + $0x528] ss:$16 sps:$4 sm:$0xff]  }
 0x1de   : > { %4141 = vmatprep.subr.bf16.mxu0 %v6235_v23  ;;  %4305 = vmatprep.subr.bf16.mxu1 %v6238_v24  ;;  %6541 = vpow2.f32 %v2390_v35  ;;  %v6289_v24 = vld [vmem:[%s6761_s8 + $0x544] ss:$16 sps:$4 sm:$0xff]   ;;  %v6299_v35 = vld [vmem:[%s6761_s8 + $0x580] ss:$16 sps:$4 sm:$0xff]  }
 0x1e1   : > { %4142 = vmatpush1.bf16.msra.mxu0 %v6233_v61  ;;  %4306 = vmatpush1.bf16.msra.mxu1 %v6236_v26  ;;  %v6292_v61 = vld [vmem:[%s6761_s8 + $0x54c] ss:$16 sps:$4 sm:$0xff]  }
 0x1e2   : > { %4143 = vmatprep.subr.bf16.mxu0 %v6241_v20  ;;  %4307 = vmatprep.subr.bf16.mxu1 %v6244_v14  ;;  %v6287_v14 = vld [vmem:[%s6761_s8 + $0x540] ss:$16 sps:$4 sm:$0xff]  }
 0x1e5   : > { %4144 = vmatpush1.bf16.msra.mxu0 %v6239_v31  ;;  %4308 = vmatpush1.bf16.msra.mxu1 %v6242_v15  ;;  %v6296_v15 = vld [vmem:[%s6761_s8 + $0x568] ss:$16 sps:$4 sm:$0xff]  }
 0x1e6   : > { %4145 = vmatprep.subr.bf16.mxu0 %v6247_v33  ;;  %4309 = vmatprep.subr.bf16.mxu1 %v6250_v34  ;;  %v6301_v33 = vld [vmem:[%s6761_s8 + $0x584] ss:$16 sps:$4 sm:$0xff]   ;;  %v6304_v34 = vld [vmem:[%s6761_s8 + $0x58c] ss:$16 sps:$4 sm:$0xff]  }
 0x1e7   : > { %v6540_v51 = vpop.eup %6539 }
 0x1e8   : > { %v6542_v52 = vpop.eup %6541  ;;  %v2432_v53 = vadd.f32 1.0, %v6540_v51  ;;  %v2435_v3 = vmul.f32 -0.5, %v6540_v51  ;;  %v2438_v60 = vand.u32 2147483647, %v6540_v51 }
 0x1e9   : > { %4146 = vmatpush1.bf16.msra.mxu0 %v6245_v36  ;;  %4310 = vmatpush1.bf16.msra.mxu1 %v6248_v37  ;;  %v2441_v59 = vadd.f32 1.0, %v6542_v52  ;;  %v2444_v2 = vmul.f32 -0.5, %v6542_v52  ;;  %v2447_v56 = vand.u32 2147483647, %v6542_v52  ;;  %v6302_v36 = vld [vmem:[%s6761_s8 + $0x588] ss:$16 sps:$4 sm:$0xff]  }
 0x1ea   : > { %4147 = vmatprep.subr.bf16.mxu0 %v6253_v38  ;;  %4311 = vmatprep.subr.bf16.mxu1 %v6256_v39  ;;  %6543 = vlog2.f32 %v2432_v53  ;;  %v2436_v18 = vadd.f32 1.0, %v2435_v3  ;;  %vm2439_vm12 = vcmp.lt.f32.partialorder %v2438_v60, 0.0004427343  ;;  %v6307_v37 = vld [vmem:[%s6761_s8 + $0x5a4] ss:$16 sps:$4 sm:$0xff]  }
 0x1eb   : > { %6545 = vlog2.f32 %v2441_v59  ;;  %v2445_v4 = vadd.f32 1.0, %v2444_v2  ;;  %vm2448_vm10 = vcmp.lt.f32.partialorder %v2447_v56, 0.0004427343  ;;  %v6310_v38 = vld [vmem:[%s6761_s8 + $0x5ac] ss:$16 sps:$4 sm:$0xff]   ;;  %v742_v56 = vsub.s32 6, %v7054_v10 }
 0x1ec   : > { %v2437_v29 = vmul.f32 %v6540_v51, %v2436_v18  ;;  %v6322_v51 = vld [vmem:[%s6761_s8 + $0x5ec] ss:$16 sps:$4 sm:$0xff]   ;;  %v6317_v53 = vld [vmem:[%s6761_s8 + $0x5e0] ss:$16 sps:$4 sm:$0xff]   ;;  %v6325_v59 = vld [vmem:[%s6761_s8 + $0x604] ss:$16 sps:$4 sm:$0xff]  }
 0x1ed   : > { %4148 = vmatpush1.bf16.msra.mxu0 %v6251_v40  ;;  %4312 = vmatpush1.bf16.msra.mxu1 %v6254_v41  ;;  %v2446_v23 = vmul.f32 %v6542_v52, %v2445_v4  ;;  %v6305_v41 = vld [vmem:[%s6761_s8 + $0x5a0] ss:$16 sps:$4 sm:$0xff]   ;;  %v6332_v2 = vld [vmem:[%s6761_s8 + $0x628] ss:$16 sps:$4 sm:$0xff]   ;;  %v6337_v3 = vld [vmem:[%s6761_s8 + $0x644] ss:$16 sps:$4 sm:$0xff]  }
 0x1ee   : > { %4149 = vmatprep.subr.bf16.mxu0 %v6259_v42  ;;  %4313 = vmatprep.subr.bf16.mxu1 %v6262_v45  ;;  %v6308_v42 = vld [vmem:[%s6761_s8 + $0x5a8] ss:$16 sps:$4 sm:$0xff]   ;;  %v6340_v4 = vld [vmem:[%s6761_s8 + $0x64c] ss:$16 sps:$4 sm:$0xff]  }
 0x1ef   : > { %v6344_v18 = vld [vmem:[%s6761_s8 + $0x668] ss:$16 sps:$4 sm:$0xff]  }
 0x1f1   : > { %4150 = vmatpush1.bf16.msra.mxu0 %v6257_v46  ;;  %4314 = vmatpush1.bf16.msra.mxu1 %v6260_v47  ;;  %v6313_v46 = vld [vmem:[%s6761_s8 + $0x5c4] ss:$16 sps:$4 sm:$0xff]   ;;  %v6316_v47 = vld [vmem:[%s6761_s8 + $0x5cc] ss:$16 sps:$4 sm:$0xff]  }
 0x1f2   : > { %4151 = vmatprep.subr.bf16.mxu0 %v6265_v48  ;;  %4315 = vmatprep.subr.bf16.mxu1 %v6268_v50  ;;  %v6314_v48 = vld [vmem:[%s6761_s8 + $0x5c8] ss:$16 sps:$4 sm:$0xff]   ;;  %v6319_v50 = vld [vmem:[%s6761_s8 + $0x5e4] ss:$16 sps:$4 sm:$0xff]  }
 0x1f4   : > { %v6544_v9 = vpop.eup %6543 }
 0x1f5   : > { %4152 = vmatpush1.bf16.msra.mxu0 %v6263_v54  ;;  %4316 = vmatpush1.bf16.msra.mxu1 %v6266_v57  ;;  %v6546_v11 = vpop.eup %6545  ;;  %v2434_v25 = vmul.f32 0.6931472, %v6544_v9  ;;  %v6320_v54 = vld [vmem:[%s6761_s8 + $0x5e8] ss:$16 sps:$4 sm:$0xff]   ;;  %v746_v9 = vsub.s32 7, %v7054_v10 }
 0x1f6   : > { %4153 = vmatprep.subr.bf16.mxu0 %v6271_v49  ;;  %4317 = vmatprep.subr.bf16.mxu1 %v6274_v21  ;;  %v2443_v22 = vmul.f32 0.6931472, %v6546_v11  ;;  %v6328_v49 = vld [vmem:[%s6761_s8 + $0x60c] ss:$16 sps:$4 sm:$0xff]   ;;  %v6323_v21 = vld [vmem:[%s6761_s8 + $0x600] ss:$16 sps:$4 sm:$0xff]  }
 0x1f7   : > { %v2440_v31 = vsel %vm2439_vm12, %v2437_v29, %v2434_v25  ;;  %v6601_v11 = vld [vmem:[%s7059_s18] sm:$0xff] }
 0x1f8   : > { %v2449_v26 = vsel %vm2448_vm10, %v2446_v23, %v2443_v22  ;;  %v2472_v19 = vsel %vm2368_vm13, %v7222_v27, %v2440_v31  ;;  %v747_v22 = vrot.slane %v6601_v11, %v746_v9  ;;  %v6349_v23 = vld [vmem:[%s6761_s8 + $0x684] ss:$16 sps:$4 sm:$0xff]  }
 0x1f9   : > { %4154 = vmatpush1.bf16.msra.mxu0 %v6269_v62  ;;  %4318 = vmatpush1.bf16.msra.mxu1 %v6272_v63  ;;  %v2473_v20 = vsel %vm2369_vm11, %v7225_v30, %v2449_v26  ;;  %v6326_v62 = vld [vmem:[%s6761_s8 + $0x608] ss:$16 sps:$4 sm:$0xff]   ;;  %v6347_v26 = vld [vmem:[%s6761_s8 + $0x680] ss:$16 sps:$4 sm:$0xff]   ;;  %v6397_v9 = vld [vmem:[%s6761_s8 + $0x784] ss:$16 sps:$4 sm:$0xff]  }
 0x1fa   : > { %4155 = vmatprep.subr.bf16.mxu0 %v6277_v0  ;;  %4319 = vmatprep.subr.bf16.mxu1 %v6280_v1  ;;  %6547 = vtanh.f32 %v2473_v20  ;;  %v6331_v0 = vld [vmem:[%s6761_s8 + $0x624] ss:$16 sps:$4 sm:$0xff]   ;;  %v6334_v1 = vld [vmem:[%s6761_s8 + $0x62c] ss:$16 sps:$4 sm:$0xff]   ;;  %v6350_v20 = vld [vmem:[%s6761_s8 + $0x688] ss:$16 sps:$4 sm:$0xff]  }
 0x1fb   : > { %6549 = vtanh.f32 %v2472_v19  ;;  %v6353_v19 = vld [vmem:[%s6761_s8 + $0x6a0] ss:$16 sps:$4 sm:$0xff]  }
 0x1fd   : > { %4156 = vmatpush1.bf16.msra.mxu0 %v6275_v5  ;;  %4320 = vmatpush1.bf16.msra.mxu1 %v6278_v6  ;;  %v6335_v5 = vld [vmem:[%s6761_s8 + $0x640] ss:$16 sps:$4 sm:$0xff]   ;;  %v6338_v6 = vld [vmem:[%s6761_s8 + $0x648] ss:$16 sps:$4 sm:$0xff]  }
 0x1fe   : > { %4157 = vmatprep.subr.bf16.mxu0 %v6283_v7  ;;  %4321 = vmatprep.subr.bf16.mxu1 %v6286_v8  ;;  %v6343_v7 = vld [vmem:[%s6761_s8 + $0x664] ss:$16 sps:$4 sm:$0xff]   ;;  %v6346_v8 = vld [vmem:[%s6761_s8 + $0x66c] ss:$16 sps:$4 sm:$0xff]  }
 0x201   : > { %4158 = vmatpush1.bf16.msra.mxu0 %v6281_v12  ;;  %4322 = vmatpush1.bf16.msra.mxu1 %v6284_v17  ;;  %v743_v12 = vrot.slane %v6601_v11, %v742_v56  ;;  %v6341_v17 = vld [vmem:[%s6761_s8 + $0x660] ss:$16 sps:$4 sm:$0xff]   ;;  %v6400_v11 = vld [vmem:[%s6761_s8 + $0x78c] ss:$16 sps:$4 sm:$0xff]  }
 0x202   : > { %4159 = vmatprep.subr.bf16.mxu0 %v6289_v24  ;;  %4323 = vmatprep.subr.bf16.mxu1 %v6292_v61  ;;  %v6352_v24 = vld [vmem:[%s6761_s8 + $0x68c] ss:$16 sps:$4 sm:$0xff]   ;;  %v6389_v56 = vld [vmem:[%s6761_s8 + $0x760] ss:$16 sps:$4 sm:$0xff]  }
 0x204   : > { %v6548_v39 = vpop.eup %6547 }
 0x205   : > { %4160 = vmatpush1.bf16.msra.mxu0 %v6287_v14  ;;  %4324 = vmatpush1.bf16.msra.mxu1 %v6290_v58  ;;  %v2489_v40 = vmul.f32 %v6548_v39, %v7225_v30  ;;  %v6311_v30 = vld [vmem:[%s6761_s8 + $0x5c0] ss:$16 sps:$4 sm:$0xff]   ;;  %v6550_v52 = vpop.eup %6549  ;;  %v6355_v58 = vld [vmem:[%s6761_s8 + $0x6a4] ss:$16 sps:$4 sm:$0xff]  }
 0x206   : > { %4161 = vmatprep.subr.bf16.mxu0 %v6295_v28  ;;  %4325 = vmatprep.subr.bf16.mxu1 %v6298_v55  ;;  %v2488_v57 = vmul.f32 %v6550_v52, %v7222_v27  ;;  %v6329_v27 = vld [vmem:[%s6761_s8 + $0x620] ss:$16 sps:$4 sm:$0xff]   ;;  %v6358_v28 = vld [vmem:[%s6761_s8 + $0x6ac] ss:$16 sps:$4 sm:$0xff]   ;;  %v6367_v39 = vld [vmem:[%s6761_s8 + $0x6e4] ss:$16 sps:$4 sm:$0xff]  }
 0x207   : > { %v2753_v45 = vpack.c.bf16 %v2489_v40, %v2489_v40  ;;  %v6370_v40 = vld [vmem:[%s6761_s8 + $0x6ec] ss:$16 sps:$4 sm:$0xff]   ;;  %v6379_v52 = vld [vmem:[%s6761_s8 + $0x724] ss:$16 sps:$4 sm:$0xff]  }
 0x208   : > { %v2752_v63 = vpack.c.bf16 %v2488_v57, %v2488_v57  ;;  %v6377_v57 = vld [vmem:[%s6761_s8 + $0x720] ss:$16 sps:$4 sm:$0xff]  }
 0x209   : > { %4162 = vmatpush1.bf16.msra.mxu0 %v6293_v32  ;;  %4326 = vmatpush1.bf16.msra.mxu1 %v6296_v15 }
 0x20a   : > { %4163 = vmatprep.subr.bf16.mxu0 %v6301_v33  ;;  %4327 = vmatprep.subr.bf16.mxu1 %v6304_v34  ;;  %v6356_v33 = vld [vmem:[%s6761_s8 + $0x6a8] ss:$16 sps:$4 sm:$0xff]  }
 0x20b   : > { %4171 = vmatprep.mubr.bf16.mxu0 %v2753_v45  ;;  %4335 = vmatprep.mubr.bf16.mxu1 %v2753_v45  ;;  %v6373_v45 = vld [vmem:[%s6761_s8 + $0x704] ss:$16 sps:$4 sm:$0xff]  }
 0x20d   : > { %4164 = vmatpush1.bf16.msra.mxu0 %v6299_v35  ;;  %4328 = vmatpush1.bf16.msra.mxu1 %v6302_v36  ;;  %v6361_v35 = vld [vmem:[%s6761_s8 + $0x6c4] ss:$16 sps:$4 sm:$0xff]   ;;  %v6364_v36 = vld [vmem:[%s6761_s8 + $0x6cc] ss:$16 sps:$4 sm:$0xff]  }
 0x20e   : > { %4165 = vmatprep.subr.bf16.mxu0 %v6307_v37  ;;  %4329 = vmatprep.subr.bf16.mxu1 %v6310_v38  ;;  %v6359_v37 = vld [vmem:[%s6761_s8 + $0x6c0] ss:$16 sps:$4 sm:$0xff]   ;;  %v6362_v38 = vld [vmem:[%s6761_s8 + $0x6c8] ss:$16 sps:$4 sm:$0xff]  }
 0x211   : > { %4166 = vmatpush1.bf16.msra.mxu0 %v6305_v41  ;;  %4330 = vmatpush1.bf16.msra.mxu1 %v6308_v42  ;;  %v6365_v41 = vld [vmem:[%s6761_s8 + $0x6e0] ss:$16 sps:$4 sm:$0xff]   ;;  %v6368_v42 = vld [vmem:[%s6761_s8 + $0x6e8] ss:$16 sps:$4 sm:$0xff]  }
 0x212   : > { %4167 = vmatprep.subr.bf16.mxu0 %v6313_v46  ;;  %4331 = vmatprep.subr.bf16.mxu1 %v6316_v47  ;;  %v6376_v46 = vld [vmem:[%s6761_s8 + $0x70c] ss:$16 sps:$4 sm:$0xff]  }
 0x215   : > { %4168 = vmatpush1.bf16.msra.mxu0 %v6311_v30  ;;  %4332 = vmatpush1.bf16.msra.mxu1 %v6314_v48  ;;  %v6371_v30 = vld [vmem:[%s6761_s8 + $0x700] ss:$16 sps:$4 sm:$0xff]   ;;  %v6374_v48 = vld [vmem:[%s6761_s8 + $0x708] ss:$16 sps:$4 sm:$0xff]  }
 0x216   : > { %4169 = vmatprep.subr.bf16.mxu0 %v6319_v50  ;;  %4333 = vmatprep.subr.bf16.mxu1 %v6322_v51 }
 0x219   : > { %4170 = vmatpush1.bf16.msra.mxu0 %v6317_v53  ;;  %4334 = vmatpush1.bf16.msra.mxu1 %v6320_v54  ;;  %v6382_v53 = vld [vmem:[%s6761_s8 + $0x72c] ss:$16 sps:$4 sm:$0xff]  }
 0x21a   : > { %4180 = vmatprep.subr.bf16.mxu0 %v6325_v59  ;;  %4344 = vmatprep.subr.bf16.mxu1 %v6328_v49  ;;  %v6380_v59 = vld [vmem:[%s6761_s8 + $0x728] ss:$16 sps:$4 sm:$0xff]   ;;  %v6385_v49 = vld [vmem:[%s6761_s8 + $0x744] ss:$16 sps:$4 sm:$0xff]  }
 0x21c   : > { %4172 = vmatmul.mubr.bf16.vlgmr.msra.gmra.mrb[8].mxu0 %v2752_v63  ;;  %4336 = vmatmul.mubr.bf16.vlgmr.msra.gmra.mrb[12].mxu1 %v2752_v63 }
 0x21d   : > { %4181 = vmatpush1.bf16.msra.mxu0 %v6323_v21  ;;  %4345 = vmatpush1.bf16.msra.mxu1 %v6326_v62  ;;  %v6388_v21 = vld [vmem:[%s6761_s8 + $0x74c] ss:$16 sps:$4 sm:$0xff]  }
 0x21e   : > { %4182 = vmatprep.subr.bf16.mxu0 %v6331_v0  ;;  %4346 = vmatprep.subr.bf16.mxu1 %v6334_v1  ;;  %v6383_v0 = vld [vmem:[%s6761_s8 + $0x740] ss:$16 sps:$4 sm:$0xff]   ;;  %v6386_v1 = vld [vmem:[%s6761_s8 + $0x748] ss:$16 sps:$4 sm:$0xff]  }
 0x221   : > { %4183 = vmatpush1.bf16.msra.mxu0 %v6329_v27  ;;  %4347 = vmatpush1.bf16.msra.mxu1 %v6332_v2  ;;  %v6391_v27 = vld [vmem:[%s6761_s8 + $0x764] ss:$16 sps:$4 sm:$0xff]   ;;  %v6394_v2 = vld [vmem:[%s6761_s8 + $0x76c] ss:$16 sps:$4 sm:$0xff]  }
 0x222   : > { %4184 = vmatprep.subr.bf16.mxu0 %v6337_v3  ;;  %4348 = vmatprep.subr.bf16.mxu1 %v6340_v4 }
 0x225   : > { %4185 = vmatpush1.bf16.msra.mxu0 %v6335_v5  ;;  %4349 = vmatpush1.bf16.msra.mxu1 %v6338_v6 }
 0x226   : > { %4186 = vmatprep.subr.bf16.mxu0 %v6343_v7  ;;  %4350 = vmatprep.subr.bf16.mxu1 %v6346_v8  ;;  %v6392_v7 = vld [vmem:[%s6761_s8 + $0x768] ss:$16 sps:$4 sm:$0xff]  }
 0x228   : > { %v2357_v60 = vpop.f32.mrb[8].mxu1 }
 0x229   : > { %v7310_v61 = vadd.f32 %v2357_v60, %v743_v12  ;;  %v2359_v25 = vpop.f32.mrb[9].mxu1  ;;  %4187 = vmatpush1.bf16.msra.mxu0 %v6341_v17  ;;  %4351 = vmatpush1.bf16.msra.mxu1 %v6344_v18 }
 0x22a   : > { %v7314_v29 = vadd.f32 %v2359_v25, %v747_v22  ;;  %v2361_v14 = vpop.f32.mrb[10].mxu1  ;;  %4188 = vmatprep.subr.bf16.mxu0 %v6349_v23  ;;  %4352 = vmatprep.subr.bf16.mxu1 %v6352_v24  ;;  %v6395_v24 = vld [vmem:[%s6761_s8 + $0x780] ss:$16 sps:$4 sm:$0xff]   ;;  %v6398_v25 = vld [vmem:[%s6761_s8 + $0x788] ss:$16 sps:$4 sm:$0xff]  }
 0x22b   : > { %v2378_v55 = vmin.f32 %v7310_v61, 20.0  ;;  %v2362_v31 = vpop.f32.mrb[11].mxu1  ;;  %vm2370_vm15 = vcmp.gt.f32.partialorder %v7310_v61, 20.0  ;;  %v6403_v14 = vld [vmem:[%s6761_s8 + $0x7a4] ss:$16 sps:$4 sm:$0xff]  }
 0x22c   : > { %v2379_v32 = vmin.f32 %v7314_v29, 20.0  ;;  %vm2371_vm1 = vcmp.gt.f32.partialorder %v7314_v29, 20.0  ;;  %v6404_v31 = vld [vmem:[%s6761_s8 + $0x7a8] ss:$16 sps:$4 sm:$0xff]  }
 0x22d   : > { %v2392_v15 = vmul.f32 1.442695, %v2378_v55  ;;  %4189 = vmatpush1.bf16.msra.mxu0 %v6347_v26  ;;  %4353 = vmatpush1.bf16.msra.mxu1 %v6350_v20  ;;  %v6401_v55 = vld [vmem:[%s6761_s8 + $0x7a0] ss:$16 sps:$4 sm:$0xff]  }
 0x22e   : > { %v2394_v34 = vmul.f32 1.442695, %v2379_v32  ;;  %4190 = vmatprep.subr.bf16.mxu0 %v6355_v58  ;;  %4354 = vmatprep.subr.bf16.mxu1 %v6358_v28  ;;  %v6406_v58 = vld [vmem:[%s6761_s8 + $0x7ac] ss:$16 sps:$4 sm:$0xff]   ;;  %v6409_v32 = vld [vmem:[%s6761_s8 + $0x7c4] ss:$16 sps:$4 sm:$0xff]  }
 0x22f   : > { %6551 = vpow2.f32 %v2392_v15  ;;  %v6412_v15 = vld [vmem:[%s6761_s8 + $0x7cc] ss:$16 sps:$4 sm:$0xff]  }
 0x230   : > { %6553 = vpow2.f32 %v2394_v34  ;;  %v6415_v34 = vld [vmem:[%s6761_s8 + $0x7e4] ss:$16 sps:$4 sm:$0xff]  }
 0x231   : > { %4191 = vmatpush1.bf16.msra.mxu0 %v6353_v19  ;;  %4355 = vmatpush1.bf16.msra.mxu1 %v6356_v33  ;;  %v6407_v19 = vld [vmem:[%s6761_s8 + $0x7c0] ss:$16 sps:$4 sm:$0xff]   ;;  %v6410_v33 = vld [vmem:[%s6761_s8 + $0x7c8] ss:$16 sps:$4 sm:$0xff]  }
 0x232   : > { %4192 = vmatprep.subr.bf16.mxu0 %v6361_v35  ;;  %4356 = vmatprep.subr.bf16.mxu1 %v6364_v36  ;;  %v6418_v35 = vld [vmem:[%s6761_s8 + $0x7ec] ss:$16 sps:$4 sm:$0xff]  }
 0x235   : > { %4193 = vmatpush1.bf16.msra.mxu0 %v6359_v37  ;;  %4357 = vmatpush1.bf16.msra.mxu1 %v6362_v38  ;;  %v6413_v37 = vld [vmem:[%s6761_s8 + $0x7e0] ss:$16 sps:$4 sm:$0xff]   ;;  %v6416_v38 = vld [vmem:[%s6761_s8 + $0x7e8] ss:$16 sps:$4 sm:$0xff]   ;;  %s7470_s8 = scalar_lea.vmem %s7505_s5, %s5817_s28 }
 0x236   : > { %4194 = vmatprep.subr.bf16.mxu0 %v6367_v39  ;;  %4358 = vmatprep.subr.bf16.mxu1 %v6370_v40 }
 0x239   : > { %v6552_v47 = vpop.eup %6551  ;;  %4195 = vmatpush1.bf16.msra.mxu0 %v6365_v41  ;;  %4359 = vmatpush1.bf16.msra.mxu1 %v6368_v42  ;;  %v6421_v41 = vld [vmem:[%s7220_s27 + $0x4] ss:$8 sps:$4 sm:$0xff]  }
 0x23a   : > { %v6554_v50 = vpop.eup %6553  ;;  %v2450_v51 = vadd.f32 1.0, %v6552_v47  ;;  %4196 = vmatprep.subr.bf16.mxu0 %v6373_v45  ;;  %4360 = vmatprep.subr.bf16.mxu1 %v6376_v46  ;;  %v2453_v62 = vmul.f32 -0.5, %v6552_v47  ;;  %v2456_v4 = vand.u32 2147483647, %v6552_v47  ;;  %v6419_v46 = vld [vmem:[%s7220_s27] ss:$8 sps:$4 sm:$0xff]  }
 0x23b   : > { %v2459_v54 = vadd.f32 1.0, %v6554_v50  ;;  %v2462_v63 = vmul.f32 -0.5, %v6554_v50  ;;  %v2465_v6 = vand.u32 2147483647, %v6554_v50 }
 0x23c   : > { %6555 = vlog2.f32 %v2450_v51  ;;  %v2454_v3 = vadd.f32 1.0, %v2453_v62  ;;  %vm2457_vm14 = vcmp.lt.f32.partialorder %v2456_v4, 0.0004427343  ;;  %v6428_v51 = vld [vmem:[%s7220_s27 + $0x30] ss:$8 sps:$4 sm:$0xff]  }
 0x23d   : > { %6557 = vlog2.f32 %v2459_v54  ;;  %4197 = vmatpush1.bf16.msra.mxu0 %v6371_v30  ;;  %4361 = vmatpush1.bf16.msra.mxu1 %v6374_v48  ;;  %v2463_v5 = vadd.f32 1.0, %v2462_v63  ;;  %vm2466_vm0 = vcmp.lt.f32.partialorder %v2465_v6, 0.0004427343  ;;  %v6424_v30 = vld [vmem:[%s7220_s27 + $0x14] ss:$8 sps:$4 sm:$0xff]  }
 0x23e   : > { %4198 = vmatprep.subr.bf16.mxu0 %v6379_v52  ;;  %4362 = vmatprep.subr.bf16.mxu1 %v6382_v53  ;;  %v2455_v18 = vmul.f32 %v6552_v47, %v2454_v3  ;;  %v6425_v48 = vld [vmem:[%s7220_s27 + $0x20] ss:$8 sps:$4 sm:$0xff]   ;;  %v6433_v52 = vld [vmem:[%s7220_s27 + $0x44] ss:$8 sps:$4 sm:$0xff]   ;;  %v6436_v54 = vld [vmem:[%s7220_s27 + $0x54] ss:$8 sps:$4 sm:$0xff]  }
 0x23f   : > { %v2464_v23 = vmul.f32 %v6554_v50, %v2463_v5  ;;  %v6430_v50 = vld [vmem:[%s7220_s27 + $0x34] ss:$8 sps:$4 sm:$0xff]   ;;  %v6431_v53 = vld [vmem:[%s7220_s27 + $0x40] ss:$8 sps:$4 sm:$0xff]   ;;  %v6440_v62 = vld [vmem:[%s7220_s27 + $0x70] ss:$8 sps:$4 sm:$0xff]  }
 0x240   : > { %v6445_v63 = vld [vmem:[%s7220_s27 + $0x84] ss:$8 sps:$4 sm:$0xff]   ;;  %v6449_v3 = vld [vmem:[%s7220_s27 + $0xa0] ss:$8 sps:$4 sm:$0xff]   ;;  %v6454_v4 = vld [vmem:[%s7220_s27 + $0xb4] ss:$8 sps:$4 sm:$0xff]  }
 0x241   : > { %4199 = vmatpush1.bf16.msra.mxu0 %v6377_v57  ;;  %4363 = vmatpush1.bf16.msra.mxu1 %v6380_v59  ;;  %v6434_v57 = vld [vmem:[%s7220_s27 + $0x50] ss:$8 sps:$4 sm:$0xff]   ;;  %v6439_v59 = vld [vmem:[%s7220_s27 + $0x64] ss:$8 sps:$4 sm:$0xff]  }
 0x242   : > { %4200 = vmatprep.subr.bf16.mxu0 %v6385_v49  ;;  %4364 = vmatprep.subr.bf16.mxu1 %v6388_v21  ;;  %v6437_v49 = vld [vmem:[%s7220_s27 + $0x60] ss:$8 sps:$4 sm:$0xff]   ;;  %v6442_v21 = vld [vmem:[%s7220_s27 + $0x74] ss:$8 sps:$4 sm:$0xff]   ;;  %v6452_v5 = vld [vmem:[%s7220_s27 + $0xb0] ss:$8 sps:$4 sm:$0xff]  }
 0x243   : > { %v6457_v6 = vld [vmem:[%s7220_s27 + $0xc4] ss:$8 sps:$4 sm:$0xff]  }
 0x245   : > { %4201 = vmatpush1.bf16.msra.mxu0 %v6383_v0  ;;  %4365 = vmatpush1.bf16.msra.mxu1 %v6386_v1  ;;  %v6443_v0 = vld [vmem:[%s7220_s27 + $0x80] ss:$8 sps:$4 sm:$0xff]   ;;  %v6448_v1 = vld [vmem:[%s7220_s27 + $0x94] ss:$8 sps:$4 sm:$0xff]  }
 0x246   : > { %v6556_v8 = vpop.eup %6555  ;;  %4202 = vmatprep.subr.bf16.mxu0 %v6391_v27  ;;  %4366 = vmatprep.subr.bf16.mxu1 %v6394_v2  ;;  %v6446_v27 = vld [vmem:[%s7220_s27 + $0x90] ss:$8 sps:$4 sm:$0xff]   ;;  %v6451_v2 = vld [vmem:[%s7220_s27 + $0xa4] ss:$8 sps:$4 sm:$0xff]  }
 0x247   : > { %v6558_v12 = vpop.eup %6557  ;;  %v2452_v17 = vmul.f32 0.6931472, %v6556_v8  ;;  %v6458_v8 = vld [vmem:[%s7220_s27 + $0xd0] ss:$8 sps:$4 sm:$0xff]  }
 0x248   : > { %v2461_v22 = vmul.f32 0.6931472, %v6558_v12  ;;  %v6466_v12 = vld [vmem:[%s7220_s27 + $0xf4] ss:$8 sps:$4 sm:$0xff]  }
 0x249   : > { %v2458_v60 = vsel %vm2457_vm14, %v2455_v18, %v2452_v17  ;;  %4203 = vmatpush1.bf16.msra.mxu0 %v6389_v56  ;;  %4367 = vmatpush1.bf16.msra.mxu1 %v6392_v7  ;;  %v6455_v56 = vld [vmem:[%s7220_s27 + $0xc0] ss:$8 sps:$4 sm:$0xff]   ;;  %v6460_v7 = vld [vmem:[%s7220_s27 + $0xd4] ss:$8 sps:$4 sm:$0xff]   ;;  %v6464_v17 = vld [vmem:[%s7220_s27 + $0xf0] ss:$8 sps:$4 sm:$0xff]  }
 0x24a   : > { %v2474_v26 = vsel %vm2370_vm15, %v7310_v61, %v2458_v60  ;;  %v2467_v20 = vsel %vm2466_vm0, %v2464_v23, %v2461_v22  ;;  %4204 = vmatprep.subr.bf16.mxu0 %v6397_v9  ;;  %4368 = vmatprep.subr.bf16.mxu1 %v6400_v11  ;;  %v6463_v9 = vld [vmem:[%s7220_s27 + $0xe4] ss:$8 sps:$4 sm:$0xff]   ;;  %v6461_v11 = vld [vmem:[%s7220_s27 + $0xe0] ss:$8 sps:$4 sm:$0xff]   ;;  %vm5103_vm14 = vcmask 1041408  }
 0x24b   : > { %6559 = vtanh.f32 %v2474_v26  ;;  %v2475_v28 = vsel %vm2371_vm1, %v7314_v29, %v2467_v20  ;;  %v6469_v18 = vld [vmem:[%s7220_s27 + $0x104] ss:$8 sps:$4 sm:$0xff]   ;;  %v7402_v22 = vld [vmem:[%s7059_s18 + $0x8] sm:$0xf] }
 0x24c   : > { %6561 = vtanh.f32 %v2475_v28  ;;  %v2760_v23 = vrot.slane %v7402_v22, %v7064_v13  ;;  %v2772_v60 = vrot.slane %v7402_v22, %v730_v44 }
 0x24d   : > { %4205 = vmatpush1.bf16.msra.mxu0 %v6395_v24  ;;  %4369 = vmatpush1.bf16.msra.mxu1 %v6398_v25  ;;  %v2764_v24 = vrot.slane %v7402_v22, %v7070_v16 }
 0x24e   : > { %4206 = vmatprep.subr.bf16.mxu0 %v6403_v14  ;;  %4370 = vmatprep.subr.bf16.mxu1 %v6406_v58 }
 0x251   : > { %4207 = vmatpush1.bf16.msra.mxu0 %v6401_v55  ;;  %4371 = vmatpush1.bf16.msra.mxu1 %v6404_v31 }
 0x252   : > { %4208 = vmatprep.subr.bf16.mxu0 %v6409_v32  ;;  %4372 = vmatprep.subr.bf16.mxu1 %v6412_v15 }
 0x255   : > { %v6560_v36 = vpop.eup %6559  ;;  %4209 = vmatpush1.bf16.msra.mxu0 %v6407_v19  ;;  %4373 = vmatpush1.bf16.msra.mxu1 %v6410_v33 }
 0x256   : > { %v6562_v39 = vpop.eup %6561  ;;  %4210 = vmatprep.subr.bf16.mxu0 %v6415_v34  ;;  %4374 = vmatprep.subr.bf16.mxu1 %v6418_v35  ;;  %v2490_v40 = vmul.f32 %v6560_v36, %v7310_v61  ;;  %v6422_v61 = vld [vmem:[%s7220_s27 + $0x10] ss:$8 sps:$4 sm:$0xff]  }
 0x257   : > { %v2491_v42 = vmul.f32 %v6562_v39, %v7314_v29  ;;  %v6427_v29 = vld [vmem:[%s7220_s27 + $0x24] ss:$8 sps:$4 sm:$0xff]  }
 0x258   : > { %v2754_v47 = vpack.c.bf16 %v2490_v40, %v2490_v40 }
 0x259   : > { %4211 = vmatpush1.bf16.msra.mxu0 %v6413_v37  ;;  %4375 = vmatpush1.bf16.msra.mxu1 %v6416_v38  ;;  %v2755_v45 = vpack.c.bf16 %v2491_v42, %v2491_v42 }
 0x25a   : > { %4848 = vmatprep.subr.bf16.mxu0 %v6421_v41 }
 0x25b   : > { %4212 = vmatprep.mubr.bf16.mxu0 %v2755_v45  ;;  %4376 = vmatprep.mubr.bf16.mxu1 %v2755_v45 }
 0x25c   : > { %4213 = vmatmul.mubr.bf16.vlgmr.msra.gmra.mrb[8].mxu0 %v2754_v47  ;;  %4377 = vmatmul.mubr.bf16.vlgmr.msra.gmra.mrb[12].mxu1 %v2754_v47 }
 0x25d   : > { %4849 = vmatpush1.bf16.msra.mxu0 %v6419_v46 }
 0x25e   : > { %4850 = vmatprep.subr.bf16.mxu0 %v6424_v30 }
 0x261   : > { %4851 = vmatpush1.bf16.msra.mxu0 %v6422_v61 }
 0x262   : > { %4852 = vmatprep.subr.bf16.mxu0 %v6427_v29 }
 0x265   : > { %4853 = vmatpush1.bf16.msra.mxu0 %v6425_v48 }
 0x266   : > { %4854 = vmatprep.subr.bf16.mxu0 %v6430_v50 }
 0x269   : > { %4855 = vmatpush1.bf16.msra.mxu0 %v6428_v51 }
 0x26a   : > { %4856 = vmatprep.subr.bf16.mxu0 %v6433_v52 }
 0x26d   : > { %4857 = vmatpush1.bf16.msra.mxu0 %v6431_v53 }
 0x26e   : > { %4858 = vmatprep.subr.bf16.mxu0 %v6436_v54 }
 0x271   : > { %4859 = vmatpush1.bf16.msra.mxu0 %v6434_v57 }
 0x272   : > { %4860 = vmatprep.subr.bf16.mxu0 %v6439_v59 }
 0x275   : > { %4861 = vmatpush1.bf16.msra.mxu0 %v6437_v49 }
 0x276   : > { %4862 = vmatprep.subr.bf16.mxu0 %v6442_v21 }
 0x279   : > { %4863 = vmatpush1.bf16.msra.mxu0 %v6440_v62 }
 0x27a   : > { %4864 = vmatprep.subr.bf16.mxu0 %v6445_v63 }
 0x27d   : > { %4865 = vmatpush1.bf16.msra.mxu0 %v6443_v0 }
 0x27e   : > { %4866 = vmatprep.subr.bf16.mxu0 %v6448_v1 }
 0x281   : > { %4867 = vmatpush1.bf16.msra.mxu0 %v6446_v27 }
 0x282   : > { %4868 = vmatprep.subr.bf16.mxu0 %v6451_v2 }
 0x285   : > { %4869 = vmatpush1.bf16.msra.mxu0 %v6449_v3 }
 0x286   : > { %4870 = vmatprep.subr.bf16.mxu0 %v6454_v4 }
 0x289   : > { %4871 = vmatpush1.bf16.msra.mxu0 %v6452_v5 }
 0x28a   : > { %4872 = vmatprep.subr.bf16.mxu0 %v6457_v6  ;;  %v2768_v6 = vrot.slane %v7402_v22, %v726_v43  ;;  %v6472_v22 = vld [vmem:[%s7220_s27 + $0x114] ss:$8 sps:$4 sm:$0xff]  }
 0x28d   : > { %4873 = vmatpush1.bf16.msra.mxu0 %v6455_v56 }
 0x28e   : > { %4874 = vmatprep.subr.bf16.mxu0 %v6460_v7 }
 0x291   : > { %4875 = vmatpush1.bf16.msra.mxu0 %v6458_v8 }
 0x292   : > { %4876 = vmatprep.subr.bf16.mxu0 %v6463_v9 }
 0x295   : > { %4877 = vmatpush1.bf16.msra.mxu0 %v6461_v11 }
 0x296   : > { %4878 = vmatprep.subr.bf16.mxu0 %v6466_v12 }
 0x299   : > { %4879 = vmatpush1.bf16.msra.mxu0 %v6464_v17 }
 0x29a   : > { %4889 = vmatprep.subr.bf16.mxu0 %v6469_v18 }
 0x32f   : > { %v4214_v25 = vpop.f32.mrb[8].mxu0  ;;  %v7411_v26 = vpop.f32.mrb[12].mxu1 }
 0x330   : > { %v7413_v20 = vadd.f32 %v4214_v25, %v2760_v23  ;;  %v4216_v14 = vpop.f32.mrb[9].mxu0  ;;  %v4380_v58 = vpop.f32.mrb[13].mxu1  ;;  %v7427_v7 = vadd.f32 %v7411_v26, %v2768_v6  ;;  %v6467_v23 = vld [vmem:[%s7220_s27 + $0x100] ss:$8 sps:$4 sm:$0xff]   ;;  %v6470_v25 = vld [vmem:[%s7220_s27 + $0x110] ss:$8 sps:$4 sm:$0xff]  }
 0x331   : > { %v5975_v28 = vadd.f32 %v4216_v14, %v2764_v24  ;;  %v7415_v55 = vadd.f32 %v4380_v58, %v2772_v60  ;;  %v4218_v31 = vpop.f32.mrb[10].mxu0  ;;  %v4382_v32 = vpop.f32.mrb[14].mxu1  ;;  %v6475_v26 = vld [vmem:[%s7220_s27 + $0x124] ss:$8 sps:$4 sm:$0xff]   ;;  %v6478_v14 = vld [vmem:[%s7220_s27 + $0x134] ss:$8 sps:$4 sm:$0xff]  }
 0x332   : > { %v4389_v15 = vmin.f32 %v7413_v20, 20.0  ;;  %v4219_v19 = vpop.f32.mrb[11].mxu0  ;;  %v4383_v33 = vpop.f32.mrb[15].mxu1  ;;  %vm4385_vm3 = vcmp.gt.f32.partialorder %v7413_v20, 20.0  ;;  %v4391_v17 = vmin.f32 %v7427_v7, 20.0  ;;  %vm4387_vm9 = vcmp.gt.f32.partialorder %v7427_v7, 20.0 }
 0x333   : > { %v4390_v34 = vmin.f32 %v5975_v28, 20.0  ;;  %v4392_v35 = vmin.f32 %v7415_v55, 20.0  ;;  %vm4386_vm4 = vcmp.gt.f32.partialorder %v5975_v28, 20.0  ;;  %vm4388_vm7 = vcmp.gt.f32.partialorder %v7415_v55, 20.0  ;;  %v6476_v58 = vld [vmem:[%s7220_s27 + $0x130] ss:$8 sps:$4 sm:$0xff]  }
 0x334   : > { %v4393_v44 = vmul.f32 1.442695, %v4389_v15  ;;  %v4397_v60 = vmul.f32 1.442695, %v4391_v17  ;;  %v6484_v31 = vld [vmem:[%s7220_s27 + $0x154] ss:$8 sps:$4 sm:$0xff]  }
 0x335   : > { %v4395_v36 = vmul.f32 1.442695, %v4390_v34  ;;  %v4399_v37 = vmul.f32 1.442695, %v4392_v35  ;;  %v6482_v15 = vld [vmem:[%s7220_s27 + $0x150] ss:$8 sps:$4 sm:$0xff]  }
 0x336   : > { %6563 = vpow2.f32 %v4393_v44  ;;  %v6487_v33 = vld [vmem:[%s7220_s27 + $0x164] ss:$8 sps:$4 sm:$0xff]   ;;  %v6485_v34 = vld [vmem:[%s7220_s27 + $0x160] ss:$8 sps:$4 sm:$0xff]   ;;  %v6490_v35 = vld [vmem:[%s7220_s27 + $0x174] ss:$8 sps:$4 sm:$0xff]  }
 0x337   : > { %6565 = vpow2.f32 %v4395_v36  ;;  %v6488_v44 = vld [vmem:[%s7220_s27 + $0x170] ss:$8 sps:$4 sm:$0xff]   ;;  %v6493_v36 = vld [vmem:[%s7220_s27 + $0x184] ss:$8 sps:$4 sm:$0xff]  }
 0x338   : > { %6567 = vpow2.f32 %v4399_v37  ;;  %v5883_v6 = vld [vmem:[%s7470_s8 + $0x10] sm:$0xff]  }
 0x339   : > { %v5895_v17 = vld [vmem:[%s7470_s8 + $0x70] sm:$0xff]  }
 0x340   : > { %v6564_v38 = vpop.eup %6563 }
 0x341   : > { %v4401_v39 = vadd.f32 1.0, %v6564_v38  ;;  %v6566_v40 = vpop.eup %6565  ;;  %v4404_v46 = vmul.f32 -0.5, %v6564_v38  ;;  %v4407_v29 = vand.u32 2147483647, %v6564_v38 }
 0x342   : > { %v6568_v41 = vpop.eup %6567  ;;  %v4410_v42 = vadd.f32 1.0, %v6566_v40  ;;  %v4413_v47 = vmul.f32 -0.5, %v6566_v40  ;;  %v4416_v51 = vand.u32 2147483647, %v6566_v40 }
 0x343   : > { %6569 = vlog2.f32 %v4401_v39  ;;  %v4428_v45 = vadd.f32 1.0, %v6568_v41  ;;  %v4405_v30 = vadd.f32 1.0, %v4404_v46  ;;  %v4431_v61 = vmul.f32 -0.5, %v6568_v41  ;;  %v6496_v39 = vld [vmem:[%s7220_s27 + $0x194] ss:$8 sps:$4 sm:$0xff]  }
 0x344   : > { %6571 = vlog2.f32 %v4410_v42  ;;  %v4414_v48 = vadd.f32 1.0, %v4413_v47  ;;  %vm4408_vm2 = vcmp.lt.f32.partialorder %v4407_v29, 0.0004427343  ;;  %v4434_v59 = vand.u32 2147483647, %v6568_v41 }
 0x345   : > { %6573 = vlog2.f32 %v4428_v45  ;;  %v4406_v53 = vmul.f32 %v6564_v38, %v4405_v30  ;;  %v4432_v54 = vadd.f32 1.0, %v4431_v61  ;;  %vm4417_vm5 = vcmp.lt.f32.partialorder %v4416_v51, 0.0004427343  ;;  %v6491_v38 = vld [vmem:[%s7220_s27 + $0x180] ss:$8 sps:$4 sm:$0xff]  }
 0x346   : > { %v4415_v62 = vmul.f32 %v6566_v40, %v4414_v48  ;;  %vm4435_vm6 = vcmp.lt.f32.partialorder %v4434_v59, 0.0004427343  ;;  %v6494_v42 = vld [vmem:[%s7220_s27 + $0x190] ss:$8 sps:$4 sm:$0xff]   ;;  %v6499_v46 = vld [vmem:[%s7220_s27 + $0x1a4] ss:$8 sps:$4 sm:$0xff]  }
 0x347   : > { %v4433_v2 = vmul.f32 %v6568_v41, %v4432_v54  ;;  %v6497_v61 = vld [vmem:[%s7220_s27 + $0x1a0] ss:$8 sps:$4 sm:$0xff]   ;;  %v6502_v29 = vld [vmem:[%s7220_s27 + $0x1b4] ss:$8 sps:$4 sm:$0xff]   ;;  %v6511_v59 = vld [vmem:[%s7220_s27 + $0x1e4] ss:$8 sps:$4 sm:$0xff]  }
 0x348   : > { %v6508_v54 = vld [vmem:[%s7220_s27 + $0x1d4] ss:$8 sps:$4 sm:$0xff]  }
 0x34d   : > { %v6570_v50 = vpop.eup %6569 }
 0x34e   : > { %v4403_v52 = vmul.f32 0.6931472, %v6570_v50  ;;  %v6572_v57 = vpop.eup %6571  ;;  %v6500_v50 = vld [vmem:[%s7220_s27 + $0x1b0] ss:$8 sps:$4 sm:$0xff]  }
 0x34f   : > { %v4412_v21 = vmul.f32 0.6931472, %v6572_v57  ;;  %v6574_v63 = vpop.eup %6573  ;;  %v6506_v57 = vld [vmem:[%s7220_s27 + $0x1d0] ss:$8 sps:$4 sm:$0xff]  }
 0x350   : > { %v4409_v49 = vsel %vm4408_vm2, %v4406_v53, %v4403_v52  ;;  %v4430_v27 = vmul.f32 0.6931472, %v6574_v63  ;;  %v6505_v52 = vld [vmem:[%s7220_s27 + $0x1c4] ss:$8 sps:$4 sm:$0xff]   ;;  %v6503_v53 = vld [vmem:[%s7220_s27 + $0x1c0] ss:$8 sps:$4 sm:$0xff]  }
 0x351   : > { %v4437_v0 = vsel %vm4385_vm3, %v7413_v20, %v4409_v49  ;;  %v4418_v1 = vsel %vm4417_vm5, %v4415_v62, %v4412_v21  ;;  %v6509_v49 = vld [vmem:[%s7220_s27 + $0x1e0] ss:$8 sps:$4 sm:$0xff]   ;;  %v6514_v21 = vld [vmem:[%s7220_s27 + $0x1f4] ss:$8 sps:$4 sm:$0xff]   ;;  %v6512_v63 = vld [vmem:[%s7220_s27 + $0x1f0] ss:$8 sps:$4 sm:$0xff]  }
 0x352   : > { %6575 = vtanh.f32 %v4437_v0  ;;  %v4438_v3 = vsel %vm4386_vm4, %v5975_v28, %v4418_v1  ;;  %v4436_v4 = vsel %vm4435_vm6, %v4433_v2, %v4430_v27  ;;  %v5889_v27 = vld [vmem:[%s7470_s8 + $0x40] sm:$0xff]  }
 0x353   : > { %6577 = vtanh.f32 %v4438_v3  ;;  %v4440_v5 = vsel %vm4388_vm7, %v7415_v55, %v4436_v4  ;;  %5933 = vmatprep.subr.bf16.mxu1 %v5889_v27  ;;  %v5819_v2 = vld [vmem:[%s7470_s8] sm:$0xff]   ;;  %v5890_v3 = vld [vmem:[%s7470_s8 + $0x48] sm:$0xff]   ;;  %v5115_v27 = vstv %s5114_s12 }
 0x354   : > { %6579 = vtanh.f32 %v4440_v5  ;;  %5935 = vmatpush3.bf16.msra.mxu1 %v5819_v2  ;;  %v5882_v4 = vld [vmem:[%s7470_s8 + $0x8] sm:$0xff]   ;;  %v5891_v5 = vld [vmem:[%s7470_s8 + $0x50] sm:$0xff]  }
 0x355   : > { %6581 = vpow2.f32 %v4397_v60  ;;  %5937 = vmatprep.subr.bf16.mxu1 %v5890_v3 }
 0x358   : > { %5939 = vmatpush3.bf16.msra.mxu1 %v5882_v4 }
 0x359   : > { %5941 = vmatprep.subr.bf16.mxu1 %v5891_v5 }
 0x35c   : > { %v6576_v56 = vpop.eup %6575  ;;  %5943 = vmatpush3.bf16.msra.mxu1 %v5883_v6 }
 0x35d   : > { %v6578_v8 = vpop.eup %6577  ;;  %v4445_v9 = vmul.f32 %v6576_v56, %v7413_v20  ;;  %v6473_v20 = vld [vmem:[%s7220_s27 + $0x120] ss:$8 sps:$4 sm:$0xff]   ;;  %v5892_v56 = vld [vmem:[%s7470_s8 + $0x58] sm:$0xff]  }
 0x35e   : > { %v4446_v11 = vmul.f32 %v6578_v8, %v5975_v28  ;;  %v6580_v12 = vpop.eup %6579  ;;  %v6481_v28 = vld [vmem:[%s7220_s27 + $0x144] ss:$8 sps:$4 sm:$0xff]   ;;  %5945 = vmatprep.subr.bf16.mxu1 %v5892_v56 }
 0x35f   : > { %v4448_v10 = vmul.f32 %v6580_v12, %v7415_v55  ;;  %v4513_v43 = vpack.c.bf16 %v4445_v9, %v4445_v9  ;;  %v6479_v55 = vld [vmem:[%s7220_s27 + $0x140] ss:$8 sps:$4 sm:$0xff]   ;;  %v6582_v32 = vpop.eup %6581 }
 0x360   : > { %v4514_v18 = vpack.c.bf16 %v4446_v11, %v4446_v11  ;;  %v4419_v19 = vadd.f32 1.0, %v6582_v32  ;;  %v4422_v37 = vmul.f32 -0.5, %v6582_v32  ;;  %v4425_v45 = vand.u32 2147483647, %v6582_v32  ;;  %v5893_v8 = vld [vmem:[%s7470_s8 + $0x60] sm:$0xff]   ;;  %v5894_v11 = vld [vmem:[%s7470_s8 + $0x68] sm:$0xff]  }
 0x361   : > { %v4516_v24 = vpack.c.bf16 %v4448_v10, %v4448_v10  ;;  %v5885_v9 = vld [vmem:[%s7470_s8 + $0x20] sm:$0xff]   ;;  %v5886_v12 = vld [vmem:[%s7470_s8 + $0x28] sm:$0xff]   ;;  %v5888_v10 = vld [vmem:[%s7470_s8 + $0x38] sm:$0xff]  }
 0x362   : > { %4880 = vmatprep.mubr.bf16.mxu0 %v4514_v18  ;;  %6583 = vlog2.f32 %v4419_v19  ;;  %v4423_v41 = vadd.f32 1.0, %v4422_v37  ;;  %vm4426_vm8 = vcmp.lt.f32.partialorder %v4425_v45, 0.0004427343  ;;  %v5887_v18 = vld [vmem:[%s7470_s8 + $0x30] sm:$0xff]  }
 0x363   : > { %4881 = vmatmul.mubr.bf16.vlgmr.msra.gmra.mrb[12].mxu0 %v4513_v43  ;;  %v453_v43 = vld [vmem:[%s7059_s18 + $0xc] sm:$0x3] }
 0x364   : > { %4890 = vmatpush1.bf16.msra.mxu0 %v6467_v23  ;;  %4921 = vmatprep.mubr.bf16.mxu0 %v4516_v24  ;;  %v4424_v30 = vmul.f32 %v6582_v32, %v4423_v41  ;;  %v5896_v23 = vld [vmem:[%s7470_s8 + $0x78] sm:$0xff]   ;;  %v4525_v24 = vrot.slane %v453_v43, %v7070_v16 }
 0x365   : > { %4891 = vmatprep.subr.bf16.mxu0 %v6472_v22  ;;  %v4521_v22 = vrot.slane %v453_v43, %v7064_v13 }
 0x368   : > { %4892 = vmatpush1.bf16.msra.mxu0 %v6470_v25 }
 0x369   : > { %4893 = vmatprep.subr.bf16.mxu0 %v6475_v26 }
 0x36c   : > { %4894 = vmatpush1.bf16.msra.mxu0 %v6473_v20  ;;  %v6584_v40 = vpop.eup %6583 }
 0x36d   : > { %4895 = vmatprep.subr.bf16.mxu0 %v6478_v14  ;;  %v4421_v47 = vmul.f32 0.6931472, %v6584_v40 }
 0x36f   : > { %v4427_v48 = vsel %vm4426_vm8, %v4424_v30, %v4421_v47 }
 0x370   : > { %4896 = vmatpush1.bf16.msra.mxu0 %v6476_v58  ;;  %v4439_v51 = vsel %vm4387_vm9, %v7427_v7, %v4427_v48 }
 0x371   : > { %4897 = vmatprep.subr.bf16.mxu0 %v6481_v28  ;;  %6585 = vtanh.f32 %v4439_v51 }
 0x374   : > { %4898 = vmatpush1.bf16.msra.mxu0 %v6479_v55 }
 0x375   : > { %4899 = vmatprep.subr.bf16.mxu0 %v6484_v31 }
 0x378   : > { %4900 = vmatpush1.bf16.msra.mxu0 %v6482_v15 }
 0x379   : > { %4901 = vmatprep.subr.bf16.mxu0 %v6487_v33 }
 0x37b   : > { %v6586_v62 = vpop.eup %6585 }
 0x37c   : > { %4902 = vmatpush1.bf16.msra.mxu0 %v6485_v34  ;;  %v4447_v0 = vmul.f32 %v6586_v62, %v7427_v7  ;;  %v5884_v7 = vld [vmem:[%s7470_s8 + $0x18] sm:$0xff]  }
 0x37d   : > { %4903 = vmatprep.subr.bf16.mxu0 %v6490_v35  ;;  %5947 = vmatpush3.bf16.msra.mxu1 %v5884_v7 }
 0x37e   : > { %v4515_v1 = vpack.c.bf16 %v4447_v0, %v4447_v0  ;;  %5949 = vmatprep.subr.bf16.mxu1 %v5893_v8  ;;  %v5112_v0 = vstv %s5111_s10 }
 0x380   : > { %4904 = vmatpush1.bf16.msra.mxu0 %v6488_v44 }
 0x381   : > { %4905 = vmatprep.subr.bf16.mxu0 %v6493_v36  ;;  %5951 = vmatpush3.bf16.msra.mxu1 %v5885_v9 }
 0x382   : > { %5953 = vmatprep.subr.bf16.mxu1 %v5894_v11 }
 0x384   : > { %4906 = vmatpush1.bf16.msra.mxu0 %v6491_v38 }
 0x385   : > { %4907 = vmatprep.subr.bf16.mxu0 %v6496_v39  ;;  %5955 = vmatpush3.bf16.msra.mxu1 %v5886_v12 }
 0x386   : > { %5957 = vmatprep.subr.bf16.mxu1 %v5895_v17 }
 0x388   : > { %4908 = vmatpush1.bf16.msra.mxu0 %v6494_v42 }
 0x389   : > { %4909 = vmatprep.subr.bf16.mxu0 %v6499_v46  ;;  %5959 = vmatpush3.bf16.msra.mxu1 %v5887_v18 }
 0x38a   : > { %5961 = vmatprep.subr.bf16.mxu1 %v5896_v23 }
 0x38c   : > { %4910 = vmatpush1.bf16.msra.mxu0 %v6497_v61 }
 0x38d   : > { %4911 = vmatprep.subr.bf16.mxu0 %v6502_v29  ;;  %5963 = vmatpush3.bf16.msra.mxu1 %v5888_v10 }
 0x390   : > { %4912 = vmatpush1.bf16.msra.mxu0 %v6500_v50 }
 0x391   : > { %4913 = vmatprep.subr.bf16.mxu0 %v6505_v52 }
 0x394   : > { %4914 = vmatpush1.bf16.msra.mxu0 %v6503_v53  ;;  %v5811_v53 = vld [vmem:[%s7059_s18 + $0xe] ss:$0 sm:$0xff] }
 0x395   : > { %4915 = vmatprep.subr.bf16.mxu0 %v6508_v54 }
 0x398   : > { %4916 = vmatpush1.bf16.msra.mxu0 %v6506_v57 }
 0x399   : > { %4917 = vmatprep.subr.bf16.mxu0 %v6511_v59 }
 0x39c   : > { %4918 = vmatpush1.bf16.msra.mxu0 %v6509_v49 }
 0x39d   : > { %4919 = vmatprep.subr.bf16.mxu0 %v6514_v21 }
 0x3a0   : > { %4920 = vmatpush1.bf16.msra.mxu0 %v6512_v63 }
 0x3a3   : > { %4922 = vmatmul.mubr.bf16.vlgmr.msra.gmra.mrb[12].mxu0 %v4515_v1 }
 0x476   : > { %v4923_v60 = vpop.f32.mrb[12].mxu0 }
 0x477   : > { %v5978_v25 = vadd.f32 %v4923_v60, %v4521_v22  ;;  %v4925_v26 = vpop.f32.mrb[13].mxu0 }
 0x478   : > { %v5979_v20 = vadd.f32 %v4925_v26, %v4525_v24  ;;  %v4927_v14 = vpop.f32.mrb[14].mxu0 }
 0x479   : > { %v4932_v58 = vmin.f32 %v5978_v25, 20.0  ;;  %v4928_v28 = vpop.f32.mrb[15].mxu0  ;;  %vm4930_vm11 = vcmp.gt.f32.partialorder %v5978_v25, 20.0 }
 0x47a   : > { %v4933_v55 = vmin.f32 %v5979_v20, 20.0  ;;  %vm4931_vm13 = vcmp.gt.f32.partialorder %v5979_v20, 20.0 }
 0x47b   : > { %v4934_v31 = vmul.f32 1.442695, %v4932_v58 }
 0x47c   : > { %v4936_v32 = vmul.f32 1.442695, %v4933_v55 }
 0x47d   : > { %6587 = vpow2.f32 %v4934_v31 }
 0x47e   : > { %6589 = vpow2.f32 %v4936_v32 }
 0x487   : > { %v6588_v15 = vpop.eup %6587 }
 0x488   : > { %v6590_v19 = vpop.eup %6589  ;;  %v4938_v33 = vadd.f32 1.0, %v6588_v15  ;;  %v4941_v13 = vmul.f32 -0.5, %v6588_v15  ;;  %v4944_v44 = vand.u32 2147483647, %v6588_v15 }
 0x489   : > { %v4947_v34 = vadd.f32 1.0, %v6590_v19  ;;  %v4950_v16 = vmul.f32 -0.5, %v6590_v19  ;;  %v4953_v37 = vand.u32 2147483647, %v6590_v19 }
 0x48a   : > { %6591 = vlog2.f32 %v4938_v33  ;;  %v4942_v35 = vadd.f32 1.0, %v4941_v13  ;;  %vm4945_vm10 = vcmp.lt.f32.partialorder %v4944_v44, 0.0004427343 }
 0x48b   : > { %6593 = vlog2.f32 %v4947_v34  ;;  %v4951_v36 = vadd.f32 1.0, %v4950_v16  ;;  %vm4954_vm12 = vcmp.lt.f32.partialorder %v4953_v37, 0.0004427343 }
 0x48c   : > { %v4943_v41 = vmul.f32 %v6588_v15, %v4942_v35 }
 0x48d   : > { %v4952_v45 = vmul.f32 %v6590_v19, %v4951_v36 }
 0x494   : > { %v6592_v38 = vpop.eup %6591 }
 0x495   : > { %v6594_v39 = vpop.eup %6593  ;;  %v4940_v40 = vmul.f32 0.6931472, %v6592_v38 }
 0x496   : > { %v4949_v42 = vmul.f32 0.6931472, %v6594_v39 }
 0x497   : > { %v4946_v46 = vsel %vm4945_vm10, %v4943_v41, %v4940_v40 }
 0x498   : > { %v4956_v47 = vsel %vm4930_vm11, %v5978_v25, %v4946_v46  ;;  %v4955_v30 = vsel %vm4954_vm12, %v4952_v45, %v4949_v42 }
 0x499   : > { %6595 = vtanh.f32 %v4956_v47  ;;  %v4957_v61 = vsel %vm4931_vm13, %v5979_v20, %v4955_v30 }
 0x49a   : > { %6597 = vtanh.f32 %v4957_v61 }
 0x4a3   : > { %v6596_v29 = vpop.eup %6595 }
 0x4a4   : > { %v6598_v48 = vpop.eup %6597  ;;  %v4960_v51 = vmul.f32 %v6596_v29, %v5978_v25 }
 0x4a5   : > { %v4961_v50 = vmul.f32 %v6598_v48, %v5979_v20 }
 0x4a7   : > { %5096 = vmatprep.mubr.f32.mxu1 %v4961_v50 }
 0x4a8   : > { %5097 = vmatmul.mubr.f32.vlgmr.msra.gmra.mrb[16].mxu1 %v4960_v51 }
 0x57b   : > { %v5929_v52 = vpop.f32.mrb[16].mxu1 }
 0x57c   : > { %v5930_v54 = vpop.f32.mrb[17].mxu1 }
 0x57d   : > { %v5931_v57 = vadd.f32 %v5930_v54, %v5929_v52 }
 0x57f   : > { %v5099_v59 = vadd.f32 %v5931_v57, %v5811_v53 }
 0x581   : > { %v5102_v49 = vmul.f32 %v5099_v59, %v5099_v59 }
 0x583   : > { %v5104_v21 = vsel %vm5103_vm14, %v5102_v49, 0.0 }
 0x584   : > { %5105 = vadd.xlane.f32.xlu0 %v5104_v21 }
 0x611   : > { %v5106_v62 = vpop.xlane.xlu0 %5105 }
 0x612   : > { %v5107_v63 = vmax.f32 %v5106_v62, 1e-24 }
 0x614   : > { %6599 = vrsqrt.f32 %v5107_v63 }
 0x61e   : > { %v6600_v1 = vpop.eup %6599 }
 0x61f   : > { %v5113_v2 = vmul.f32 %v6600_v1, %v5112_v0 }
 0x621   : > { %v5116_v3 = vadd.f32 %v5115_v27, %v5113_v2 }
 0x623   : > { %v5117_v4 = vmul.f32 %v5116_v3, %v5099_v59 }
 0x625   : > { %5118 = vst [vmem:[%s353_s16] sm:$0x3] %v5117_v4 }
 0x626 PF: > { %s17_s24 = sadd.s32 1, %s6608_s24  }
 0x627   : > { %p14_p5 = scmp.ge.s32.totalorder %s17_s24, 4  }
 0x629   :  { %16 = sbr.rel (!%p14_p5) target bundleno = 1 (0x1), region = 90 }

</bundles_post_ra>
